<compile_context>
chip_gen: v7x
topology: tpu7x:2x2x1
jax: 0.10.0
libtpu: 0.0.40
codegen_flags: <defaults>
</compile_context>

<pallas_src>
import functools
import math

import jax
import jax.numpy as jnp
from jax.experimental import pallas as pl
from jax.experimental.pallas import tpu as pltpu

LN_EPS = 1e-5
# Leave headroom below v7x's 64 MiB physical VMEM (v5e/v6e have 128 MiB).
_VMEM_LIMIT = 48 * 1024 * 1024


def _pick_tile(total, candidates):
    """Largest candidate that divides `total`, else `total` itself."""
    for cand in candidates:
        if total % cand == 0:
            return cand
    return total


# ---------------------------------------------------------------------------
# Kernel 1: LayerNorm + fused QKV projection over flattened (B*T, D) rows,
# column-tiled over the 3*D outputs.  LN stats are recomputed per column tile
# (cheap VPU work vs. the MXU matmul); x rows stay resident across column
# tiles (constant block index along j).
# ---------------------------------------------------------------------------
def _ln_qkv_kernel(x_ref, w_ref, b_ref, g_ref, be_ref, qkv_ref):
    x = x_ref[...]                                        # (BR, D) f32
    mean = jnp.mean(x, axis=-1, keepdims=True)
    xc = x - mean
    var = jnp.mean(xc * xc, axis=-1, keepdims=True)
    xn = xc * jax.lax.rsqrt(var + LN_EPS)
    xn = xn * g_ref[0] + be_ref[0]                        # f32 LN output

    # bf16 MXU operands, f32 accumulation.  Weight is already (D, tn) in x@W
    # orientation with q-scaling folded in; no in-kernel transpose.
    qkv = jnp.dot(xn.astype(jnp.bfloat16), w_ref[...],
                  preferred_element_type=jnp.float32) + b_ref[0]
    qkv_ref[...] = qkv.astype(jnp.bfloat16)               # (BR, tn)


# ---------------------------------------------------------------------------
# Kernel 2: per-(batch, query-tile) attention.  Heads are an internal unrolled
# loop; the output projection is a single full-depth K=D matmul at the end.
# ---------------------------------------------------------------------------
def _attn_kernel(q_ref, k_ref, v_ref, wo_ref, bo_ref, out_ref, cov_ref,
                 *, n_head, head_dim):
    ctx_heads = []
    for h in range(n_head):                               # static unroll, static slices
        lo = h * head_dim
        q = q_ref[0, :, lo:lo + head_dim]                 # (tq, hd) bf16 (pre-scaled)
        k = k_ref[0, :, lo:lo + head_dim]                 # (T,  hd) bf16
        v = v_ref[0, :, lo:lo + head_dim]                 # (T,  hd) bf16

        # scores = q @ k.T (NT matmul, f32 accumulate)
        scores = jax.lax.dot_general(q, k, (((1,), (1,)), ((), ())),
                                     preferred_element_type=jnp.float32)  # (tq, T)

        # softmax in f32; exact reciprocal on the (tq,1) row sums.
        m = jnp.max(scores, axis=-1, keepdims=True)
        e = jnp.exp(scores - m)
        inv = pl.reciprocal(jnp.sum(e, axis=-1, keepdims=True))
        p = e * inv
        cov_ref[0, h] = p                                 # coverage stays f32

        # per-head context; cast to bf16 immediately (operand of the out-proj).
        ctx_heads.append(
            jnp.dot(p.astype(jnp.bfloat16), v,
                    preferred_element_type=jnp.float32).astype(jnp.bfloat16))

    # Heads concatenated along lanes -> one full-depth output projection.
    ctx = jnp.concatenate(ctx_heads, axis=-1)             # (tq, D) bf16
    out_ref[0] = jnp.dot(ctx, wo_ref[...],
                         preferred_element_type=jnp.float32) + bo_ref[0]


# ---------------------------------------------------------------------------
# Parameter preparation (run ONCE at load time, not per forward call).
# ---------------------------------------------------------------------------
def prepare_params(params, *, n_head):
    d_model = params["ln_weight"].shape[0]
    head_dim = d_model // n_head
    scaling = head_dim ** (-0.5)

    # apex self_attn_func interprets the 3*D rows as [head, {q,k,v}, head_dim];
    # re-order once into contiguous [q | k | v] blocks (each head-major).
    # TODO(synk): verify this interleaving against the actual checkpoint layout.
    w = params["in_proj_weight"].reshape(n_head, 3, head_dim, d_model)
    w = w.transpose(1, 0, 2, 3).reshape(3 * d_model, d_model)
    b = params["in_proj_bias"].reshape(n_head, 3, head_dim)
    b = b.transpose(1, 0, 2).reshape(3 * d_model)

    # Fold q-scaling into the q rows of weight AND bias.
    qkv_scale = jnp.concatenate([jnp.full((d_model,), scaling, jnp.float32),
                                 jnp.ones((2 * d_model,), jnp.float32)])
    w = w * qkv_scale[:, None]
    b = b * qkv_scale

    return {
        "wqkv_t": w.T.astype(jnp.bfloat16),               # (D, 3D), x@W orientation
        "bqkv": b.reshape(1, 3 * d_model).astype(jnp.float32),
        "wo_t": params["out_proj_weight"].T.astype(jnp.bfloat16),  # (D, D)
        "bo": params["out_proj_bias"].reshape(1, d_model).astype(jnp.float32),
        "gamma": params["ln_weight"].reshape(1, d_model).astype(jnp.float32),
        "beta": params["ln_bias"].reshape(1, d_model).astype(jnp.float32),
    }


# ---------------------------------------------------------------------------
# Forward wrapper.
# ---------------------------------------------------------------------------
def self_multihead_attn(q_tbd, prepared, *, n_head, scale=1.0):
    """q_tbd: [T, B, D] float32. Returns (output [T, B, D], coverage [B, H, T, T])."""
    T, B, D = q_tbd.shape
    head_dim = D // n_head
    BT = B * T

    # One D-wide transpose to batch-major (replaces the old 3*D-wide head-major
    # transpose of the qkv intermediate — the biggest HBM-traffic win).
    x_btd = jnp.transpose(q_tbd, (1, 0, 2))               # (B, T, D) f32
    x2d = x_btd.reshape(BT, D)

    # Row / column tiles for kernel 1 (prefer big row tiles; keep weight block
    # small enough for v7x when D is large).
    br = _pick_tile(BT, (1024, 512, 256, 128, 64, 32, 16, 8))
    # TODO(synk): pad BT / D when not (8,128)-conforming; no masked path here.
    if D * (3 * D) * 2 <= 12 * 1024 * 1024:
        tn = 3 * D                                         # whole weight is small
    else:
        tn = _pick_tile(3 * D, (1536, 1152, 768, 384, 256, 128))

    # ---- Kernel 1: LayerNorm + QKV projection over flattened rows ----------
    qkv = pl.pallas_call(
        _ln_qkv_kernel,
        grid=(BT // br, (3 * D) // tn),
        in_specs=[
            pl.BlockSpec((br, D), lambda i, j: (i, 0)),        # x rows (resident over j)
            pl.BlockSpec((D, tn), lambda i, j: (0, j)),        # W_qkv column tile (bf16)
            pl.BlockSpec((1, tn), lambda i, j: (0, j)),        # b_qkv column tile
            pl.BlockSpec((1, D), lambda i, j: (0, 0)),         # ln gamma
            pl.BlockSpec((1, D), lambda i, j: (0, 0)),         # ln beta
        ],
        out_specs=pl.BlockSpec((br, tn), lambda i, j: (i, j)),
        out_shape=jax.ShapeDtypeStruct((BT, 3 * D), jnp.bfloat16),
        compiler_params=pltpu.CompilerParams(
            dimension_semantics=("parallel", "parallel"),
            vmem_limit_bytes=_VMEM_LIMIT),
    )(x2d, prepared["wqkv_t"], prepared["bqkv"], prepared["gamma"], prepared["beta"])

    qkv_b = qkv.reshape(B, T, 3 * D)                       # free reshape, no transpose

    # Query tiling: >=256 rows fills the MXU M dimension on v6e/v7x, bounds the
    # coverage block for v7x VMEM, and provides extra "parallel" grid steps.
    tq = _pick_tile(T, (256, 128, 64, 32, 16, 8))

    # ---- Kernel 2: attention per (batch, q-tile), single full-D out-proj ---
    kernel = functools.partial(_attn_kernel, n_head=n_head, head_dim=head_dim)
    out_btd, coverage = pl.pallas_call(
        kernel,
        grid=(B, T // tq),
        in_specs=[
            pl.BlockSpec((1, tq, D), lambda b, qi: (b, qi, 0)),   # q cols [0:D)
            pl.BlockSpec((1, T, D), lambda b, qi: (b, 0, 1)),     # k cols [D:2D)
            pl.BlockSpec((1, T, D), lambda b, qi: (b, 0, 2)),     # v cols [2D:3D)
            pl.BlockSpec((D, D), lambda b, qi: (0, 0)),           # Wo (full, resident)
            pl.BlockSpec((1, D), lambda b, qi: (0, 0)),           # b_out
        ],
        out_specs=(
            pl.BlockSpec((1, tq, D), lambda b, qi: (b, qi, 0)),               # out
            pl.BlockSpec((1, n_head, tq, T), lambda b, qi: (b, 0, qi, 0)),    # coverage
        ),
        out_shape=(
            jax.ShapeDtypeStruct((B, T, D), jnp.float32),
            jax.ShapeDtypeStruct((B, n_head, T, T), jnp.float32),
        ),
        compiler_params=pltpu.CompilerParams(
            dimension_semantics=("parallel", "parallel"),
            vmem_limit_bytes=_VMEM_LIMIT),
    )(qkv_b, qkv_b, qkv_b, prepared["wo_t"], prepared["bo"])

    # ---- XLA epilogue: output transpose fused with *scale + residual --------
    output = jnp.transpose(out_btd, (1, 0, 2)) * scale + q_tbd
    return output, coverage


def init_params(key, d_model):
    # Mirrors SelfMultiheadAttn.reset_parameters(): normal(0, sqrt(2/(2*d_model)))
    # for the projection weights, zeros for biases; LayerNorm = (ones, zeros).
    std = math.sqrt(2.0 / (d_model + d_model))
    k1, k2 = jax.random.split(key)
    return {
        "in_proj_weight": std * jax.random.normal(k1, (3 * d_model, d_model), jnp.float32),
        "in_proj_bias": jnp.zeros((3 * d_model,), jnp.float32),
        "out_proj_weight": std * jax.random.normal(k2, (d_model, d_model), jnp.float32),
        "out_proj_bias": jnp.zeros((d_model,), jnp.float32),
        "ln_weight": jnp.ones((d_model,), jnp.float32),
        "ln_bias": jnp.zeros((d_model,), jnp.float32),
    }


if __name__ == "__main__":
    # Lane-dense small shapes: T and D multiples of 128 (unmasked vst stores).
    T, B = 128, 2
    n_head, d_k = 4, 32
    d_model = n_head * d_k  # 128

    key = jax.random.PRNGKey(0)
    kx, kp = jax.random.split(key)
    q = jax.random.normal(kx, (T, B, d_model), jnp.float32)   # module input: TxBxH

    params = init_params(kp, d_model)
    prepared = prepare_params(params, n_head=n_head)          # once, at load time

    fwd = jax.jit(functools.partial(self_multihead_attn, n_head=n_head, scale=1.0))
    output, coverage = fwd(q, prepared)
    jax.block_until_ready((output, coverage))

    assert output.shape == (T, B, d_model)
    assert coverage.shape == (B, n_head, T, T)
    assert bool(jnp.isfinite(output).all()) and bool(jnp.isfinite(coverage).all())
    # Softmax rows must sum to ~1 (exact reciprocal is used in-kernel).
    assert bool(jnp.allclose(jnp.sum(coverage, axis=-1), 1.0, atol=1e-2))
    print("KERNEL_OK")
</pallas_src>

<mosaic_0001>
module attributes {stable_mosaic.version = 11 : i64} {
  func.func @_ln_qkv_kernel(%arg0: i32, %arg1: i32, %arg2: memref<256x128xf32, #tpu.memory_space<vmem>>, %arg3: memref<128x384xbf16, #tpu.memory_space<vmem>>, %arg4: memref<1x384xf32, #tpu.memory_space<vmem>>, %arg5: memref<1x128xf32, #tpu.memory_space<vmem>>, %arg6: memref<1x128xf32, #tpu.memory_space<vmem>>, %arg7: memref<256x384xbf16, #tpu.memory_space<vmem>>) attributes {dimension_semantics = [#tpu.dimension_semantics<parallel>, #tpu.dimension_semantics<parallel>], iteration_bounds = array<i64: 1, 1>, scalar_prefetch = 0 : i64, scratch_operands = 0 : i64, tpu.core_type = #tpu.core_type<tc>, window_params = [{transform_indices = @transform_0, window_bounds = array<i64: 256, 128>}, {transform_indices = @transform_1, window_bounds = array<i64: 128, 384>}, {transform_indices = @transform_2, window_bounds = array<i64: 1, 384>}, {pipeline_mode = #tpu.pipeline_mode<synchronous>, transform_indices = @transform_3, window_bounds = array<i64: 1, 128>}, {pipeline_mode = #tpu.pipeline_mode<synchronous>, transform_indices = @transform_4, window_bounds = array<i64: 1, 128>}, {transform_indices = @transform_5, window_bounds = array<i64: 256, 384>}]} {
    %c0 = arith.constant 0 : index
    %c0_0 = arith.constant 0 : index
    %0 = vector.load %arg2[%c0, %c0_0] : memref<256x128xf32, #tpu.memory_space<vmem>>, vector<256x128xf32>
    %cst = arith.constant dense<0.000000e+00> : vector<256xf32>
    %1 = vector.multi_reduction <add>, %0, %cst [1] : vector<256x128xf32> to vector<256xf32>
    %2 = vector.shape_cast %1 : vector<256xf32> to vector<256x1xf32>
    %cst_1 = arith.constant 1.280000e+02 : f32
    %3 = vector.broadcast %cst_1 : f32 to vector<256x1xf32>
    %4 = arith.divf %2, %3 : vector<256x1xf32>
    %5 = vector.broadcast %4 : vector<256x1xf32> to vector<256x128xf32>
    %6 = arith.subf %0, %5 : vector<256x128xf32>
    %7 = arith.mulf %6, %6 : vector<256x128xf32>
    %cst_2 = arith.constant dense<0.000000e+00> : vector<256xf32>
    %8 = vector.multi_reduction <add>, %7, %cst_2 [1] : vector<256x128xf32> to vector<256xf32>
    %9 = vector.shape_cast %8 : vector<256xf32> to vector<256x1xf32>
    %cst_3 = arith.constant 1.280000e+02 : f32
    %10 = vector.broadcast %cst_3 : f32 to vector<256x1xf32>
    %11 = arith.divf %9, %10 : vector<256x1xf32>
    %cst_4 = arith.constant 9.99999974E-6 : f32
    %12 = vector.broadcast %cst_4 : f32 to vector<256x1xf32>
    %13 = arith.addf %11, %12 : vector<256x1xf32>
    %14 = math.rsqrt %13 : vector<256x1xf32>
    %15 = vector.broadcast %14 : vector<256x1xf32> to vector<256x128xf32>
    %16 = arith.mulf %6, %15 : vector<256x128xf32>
    %c0_5 = arith.constant 0 : index
    %c0_6 = arith.constant 0 : index
    %17 = vector.load %arg5[%c0_5, %c0_6] : memref<1x128xf32, #tpu.memory_space<vmem>>, vector<1x128xf32>
    %18 = vector.shape_cast %17 : vector<1x128xf32> to vector<128xf32>
    %19 = vector.shape_cast %18 : vector<128xf32> to vector<1x128xf32>
    %20 = vector.broadcast %19 : vector<1x128xf32> to vector<256x128xf32>
    %21 = arith.mulf %16, %20 : vector<256x128xf32>
    %c0_7 = arith.constant 0 : index
    %c0_8 = arith.constant 0 : index
    %22 = vector.load %arg6[%c0_7, %c0_8] : memref<1x128xf32, #tpu.memory_space<vmem>>, vector<1x128xf32>
    %23 = vector.shape_cast %22 : vector<1x128xf32> to vector<128xf32>
    %24 = vector.shape_cast %23 : vector<128xf32> to vector<1x128xf32>
    %25 = vector.broadcast %24 : vector<1x128xf32> to vector<256x128xf32>
    %26 = arith.addf %21, %25 : vector<256x128xf32>
    %27 = arith.truncf %26 : vector<256x128xf32> to vector<256x128xbf16>
    %c0_9 = arith.constant 0 : index
    %c0_10 = arith.constant 0 : index
    %28 = vector.load %arg3[%c0_9, %c0_10] : memref<128x384xbf16, #tpu.memory_space<vmem>>, vector<128x384xbf16>
    %cst_11 = arith.constant dense<0.000000e+00> : vector<256x384xf32>
    %29 = tpu.matmul %27, %28, %cst_11 {dimension_numbers = #tpu.dot_dimension_numbers<[1], [0], [0], [1], [0, 0, 1, 1], [], []>} : vector<256x128xbf16>, vector<128x384xbf16>, vector<256x384xf32> -> vector<256x384xf32>
    %c0_12 = arith.constant 0 : index
    %c0_13 = arith.constant 0 : index
    %30 = vector.load %arg4[%c0_12, %c0_13] : memref<1x384xf32, #tpu.memory_space<vmem>>, vector<1x384xf32>
    %31 = vector.shape_cast %30 : vector<1x384xf32> to vector<384xf32>
    %32 = vector.shape_cast %31 : vector<384xf32> to vector<1x384xf32>
    %33 = vector.broadcast %32 : vector<1x384xf32> to vector<256x384xf32>
    %34 = arith.addf %29, %33 : vector<256x384xf32>
    %35 = arith.truncf %34 : vector<256x384xf32> to vector<256x384xbf16>
    %c0_14 = arith.constant 0 : index
    %c0_15 = arith.constant 0 : index
    %36 = vector.load %arg7[%c0_14, %c0_15] : memref<256x384xbf16, #tpu.memory_space<vmem>>, vector<256x384xbf16>
    tpu.vector_store %arg7[%c0_14, %c0_15], %35 {strides = array<i32>} : memref<256x384xbf16, #tpu.memory_space<vmem>>, vector<256x384xbf16>,
    return
  }
  func.func @transform_0(%arg0: i32, %arg1: i32) -> (i32, i32) {
    %c0_i32 = arith.constant 0 : i32
    %c0_i32_0 = arith.constant 0 : i32
    return %arg0, %c0_i32 : i32, i32
  }
  func.func @transform_1(%arg0: i32, %arg1: i32) -> (i32, i32) {
    %c0_i32 = arith.constant 0 : i32
    %c0_i32_0 = arith.constant 0 : i32
    return %c0_i32, %arg1 : i32, i32
  }
  func.func @transform_2(%arg0: i32, %arg1: i32) -> (i32, i32) {
    %c0_i32 = arith.constant 0 : i32
    %c0_i32_0 = arith.constant 0 : i32
    return %c0_i32, %arg1 : i32, i32
  }
  func.func @transform_3(%arg0: i32, %arg1: i32) -> (i32, i32) {
    %c0_i32 = arith.constant 0 : i32
    %c0_i32_0 = arith.constant 0 : i32
    %c0_i32_1 = arith.constant 0 : i32
    return %c0_i32, %c0_i32_0 : i32, i32
  }
  func.func @transform_4(%arg0: i32, %arg1: i32) -> (i32, i32) {
    %c0_i32 = arith.constant 0 : i32
    %c0_i32_0 = arith.constant 0 : i32
    %c0_i32_1 = arith.constant 0 : i32
    return %c0_i32, %c0_i32_0 : i32, i32
  }
  func.func @transform_5(%arg0: i32, %arg1: i32) -> (i32, i32) {
    %c0_i32 = arith.constant 0 : i32
    return %arg0, %arg1 : i32, i32
  }
}

module attributes {stable_mosaic.version = 11 : i64} {
  func.func @_attn_kernel(%arg0: i32, %arg1: i32, %arg2: memref<1x128x128xbf16, #tpu.memory_space<vmem>>, %arg3: memref<1x128x128xbf16, #tpu.memory_space<vmem>>, %arg4: memref<1x128x128xbf16, #tpu.memory_space<vmem>>, %arg5: memref<128x128xbf16, #tpu.memory_space<vmem>>, %arg6: memref<1x128xf32, #tpu.memory_space<vmem>>, %arg7: memref<1x128x128xf32, #tpu.memory_space<vmem>>, %arg8: memref<1x4x128x128xf32, #tpu.memory_space<vmem>>) attributes {dimension_semantics = [#tpu.dimension_semantics<parallel>, #tpu.dimension_semantics<parallel>], iteration_bounds = array<i64: 2, 1>, scalar_prefetch = 0 : i64, scratch_operands = 0 : i64, tpu.core_type = #tpu.core_type<tc>, window_params = [{transform_indices = @transform_0, window_bounds = array<i64: 1, 128, 128>}, {transform_indices = @transform_1, window_bounds = array<i64: 1, 128, 128>}, {transform_indices = @transform_2, window_bounds = array<i64: 1, 128, 128>}, {pipeline_mode = #tpu.pipeline_mode<synchronous>, transform_indices = @transform_3, window_bounds = array<i64: 128, 128>}, {pipeline_mode = #tpu.pipeline_mode<synchronous>, transform_indices = @transform_4, window_bounds = array<i64: 1, 128>}, {transform_indices = @transform_5, window_bounds = array<i64: 1, 128, 128>}, {transform_indices = @transform_6, window_bounds = array<i64: 1, 4, 128, 128>}]} {
    %c0 = arith.constant 0 : index
    %c0_0 = arith.constant 0 : index
    %c0_1 = arith.constant 0 : index
    %0 = vector.load %arg2[%c0, %c0_0, %c0_1] : memref<1x128x128xbf16, #tpu.memory_space<vmem>>, vector<1x128x32xbf16>
    %1 = vector.shape_cast %0 : vector<1x128x32xbf16> to vector<128x32xbf16>
    %c0_2 = arith.constant 0 : index
    %c0_3 = arith.constant 0 : index
    %c0_4 = arith.constant 0 : index
    %2 = vector.load %arg3[%c0_2, %c0_3, %c0_4] : memref<1x128x128xbf16, #tpu.memory_space<vmem>>, vector<1x128x32xbf16>
    %3 = vector.shape_cast %2 : vector<1x128x32xbf16> to vector<128x32xbf16>
    %c0_5 = arith.constant 0 : index
    %c0_6 = arith.constant 0 : index
    %c0_7 = arith.constant 0 : index
    %4 = vector.load %arg4[%c0_5, %c0_6, %c0_7] : memref<1x128x128xbf16, #tpu.memory_space<vmem>>, vector<1x128x32xbf16>
    %5 = vector.shape_cast %4 : vector<1x128x32xbf16> to vector<128x32xbf16>
    %cst = arith.constant dense<0.000000e+00> : vector<128x128xf32>
    %6 = tpu.matmul %1, %3, %cst {dimension_numbers = #tpu.dot_dimension_numbers<[1], [1], [0], [0], [0, 0, 1, 0], [], []>} : vector<128x32xbf16>, vector<128x32xbf16>, vector<128x128xf32> -> vector<128x128xf32>
    %cst_8 = arith.constant dense<0xFF800000> : vector<128xf32>
    %7 = vector.multi_reduction <maximumf>, %6, %cst_8 [1] : vector<128x128xf32> to vector<128xf32>
    %8 = vector.shape_cast %7 : vector<128xf32> to vector<128x1xf32>
    %9 = vector.broadcast %8 : vector<128x1xf32> to vector<128x128xf32>
    %10 = arith.subf %6, %9 : vector<128x128xf32>
    %11 = math.exp %10 : vector<128x128xf32>
    %cst_9 = arith.constant dense<0.000000e+00> : vector<128xf32>
    %12 = vector.multi_reduction <add>, %11, %cst_9 [1] : vector<128x128xf32> to vector<128xf32>
    %13 = vector.shape_cast %12 : vector<128xf32> to vector<128x1xf32>
    %14 = tpu.reciprocal %13 : vector<128x1xf32> -> vector<128x1xf32>
    %15 = vector.broadcast %14 : vector<128x1xf32> to vector<128x128xf32>
    %16 = arith.mulf %11, %15 : vector<128x128xf32>
    %c0_10 = arith.constant 0 : index
    %c0_11 = arith.constant 0 : index
    %c0_12 = arith.constant 0 : index
    %c0_13 = arith.constant 0 : index
    %17 = vector.load %arg8[%c0_10, %c0_11, %c0_12, %c0_13] : memref<1x4x128x128xf32, #tpu.memory_space<vmem>>, vector<1x1x128x128xf32>
    %18 = vector.shape_cast %17 : vector<1x1x128x128xf32> to vector<128x128xf32>
    %19 = vector.shape_cast %16 : vector<128x128xf32> to vector<1x1x128x128xf32>
    tpu.vector_store %arg8[%c0_10, %c0_11, %c0_12, %c0_13], %19 {strides = array<i32>} : memref<1x4x128x128xf32, #tpu.memory_space<vmem>>, vector<1x1x128x128xf32>,
    %20 = arith.truncf %16 : vector<128x128xf32> to vector<128x128xbf16>
    %cst_14 = arith.constant dense<0.000000e+00> : vector<128x32xf32>
    %21 = tpu.matmul %20, %5, %cst_14 {dimension_numbers = #tpu.dot_dimension_numbers<[1], [0], [0], [1], [0, 0, 1, 1], [], []>} : vector<128x128xbf16>, vector<128x32xbf16>, vector<128x32xf32> -> vector<128x32xf32>
    %22 = arith.truncf %21 : vector<128x32xf32> to vector<128x32xbf16>
    %c0_15 = arith.constant 0 : index
    %c0_16 = arith.constant 0 : index
    %c32 = arith.constant 32 : index
    %23 = vector.load %arg2[%c0_15, %c0_16, %c32] : memref<1x128x128xbf16, #tpu.memory_space<vmem>>, vector<1x128x32xbf16>
    %24 = vector.shape_cast %23 : vector<1x128x32xbf16> to vector<128x32xbf16>
    %c0_17 = arith.constant 0 : index
    %c0_18 = arith.constant 0 : index
    %c32_19 = arith.constant 32 : index
    %25 = vector.load %arg3[%c0_17, %c0_18, %c32_19] : memref<1x128x128xbf16, #tpu.memory_space<vmem>>, vector<1x128x32xbf16>
    %26 = vector.shape_cast %25 : vector<1x128x32xbf16> to vector<128x32xbf16>
    %c0_20 = arith.constant 0 : index
    %c0_21 = arith.constant 0 : index
    %c32_22 = arith.constant 32 : index
    %27 = vector.load %arg4[%c0_20, %c0_21, %c32_22] : memref<1x128x128xbf16, #tpu.memory_space<vmem>>, vector<1x128x32xbf16>
    %28 = vector.shape_cast %27 : vector<1x128x32xbf16> to vector<128x32xbf16>
    %cst_23 = arith.constant dense<0.000000e+00> : vector<128x128xf32>
    %29 = tpu.matmul %24, %26, %cst_23 {dimension_numbers = #tpu.dot_dimension_numbers<[1], [1], [0], [0], [0, 0, 1, 0], [], []>} : vector<128x32xbf16>, vector<128x32xbf16>, vector<128x128xf32> -> vector<128x128xf32>
    %cst_24 = arith.constant dense<0xFF800000> : vector<128xf32>
    %30 = vector.multi_reduction <maximumf>, %29, %cst_24 [1] : vector<128x128xf32> to vector<128xf32>
    %31 = vector.shape_cast %30 : vector<128xf32> to vector<128x1xf32>
    %32 = vector.broadcast %31 : vector<128x1xf32> to vector<128x128xf32>
    %33 = arith.subf %29, %32 : vector<128x128xf32>
    %34 = math.exp %33 : vector<128x128xf32>
    %cst_25 = arith.constant dense<0.000000e+00> : vector<128xf32>
    %35 = vector.multi_reduction <add>, %34, %cst_25 [1] : vector<128x128xf32> to vector<128xf32>
    %36 = vector.shape_cast %35 : vector<128xf32> to vector<128x1xf32>
    %37 = tpu.reciprocal %36 : vector<128x1xf32> -> vector<128x1xf32>
    %38 = vector.broadcast %37 : vector<128x1xf32> to vector<128x128xf32>
    %39 = arith.mulf %34, %38 : vector<128x128xf32>
    %c0_26 = arith.constant 0 : index
    %c1 = arith.constant 1 : index
    %c0_27 = arith.constant 0 : index
    %c0_28 = arith.constant 0 : index
    %40 = vector.load %arg8[%c0_26, %c1, %c0_27, %c0_28] : memref<1x4x128x128xf32, #tpu.memory_space<vmem>>, vector<1x1x128x128xf32>
    %41 = vector.shape_cast %40 : vector<1x1x128x128xf32> to vector<128x128xf32>
    %42 = vector.shape_cast %39 : vector<128x128xf32> to vector<1x1x128x128xf32>
    tpu.vector_store %arg8[%c0_26, %c1, %c0_27, %c0_28], %42 {strides = array<i32>} : memref<1x4x128x128xf32, #tpu.memory_space<vmem>>, vector<1x1x128x128xf32>,
    %43 = arith.truncf %39 : vector<128x128xf32> to vector<128x128xbf16>
    %cst_29 = arith.constant dense<0.000000e+00> : vector<128x32xf32>
    %44 = tpu.matmul %43, %28, %cst_29 {dimension_numbers = #tpu.dot_dimension_numbers<[1], [0], [0], [1], [0, 0, 1, 1], [], []>} : vector<128x128xbf16>, vector<128x32xbf16>, vector<128x32xf32> -> vector<128x32xf32>
    %45 = arith.truncf %44 : vector<128x32xf32> to vector<128x32xbf16>
    %c0_30 = arith.constant 0 : index
    %c0_31 = arith.constant 0 : index
    %c64 = arith.constant 64 : index
    %46 = vector.load %arg2[%c0_30, %c0_31, %c64] : memref<1x128x128xbf16, #tpu.memory_space<vmem>>, vector<1x128x32xbf16>
    %47 = vector.shape_cast %46 : vector<1x128x32xbf16> to vector<128x32xbf16>
    %c0_32 = arith.constant 0 : index
    %c0_33 = arith.constant 0 : index
    %c64_34 = arith.constant 64 : index
    %48 = vector.load %arg3[%c0_32, %c0_33, %c64_34] : memref<1x128x128xbf16, #tpu.memory_space<vmem>>, vector<1x128x32xbf16>
    %49 = vector.shape_cast %48 : vector<1x128x32xbf16> to vector<128x32xbf16>
    %c0_35 = arith.constant 0 : index
    %c0_36 = arith.constant 0 : index
    %c64_37 = arith.constant 64 : index
    %50 = vector.load %arg4[%c0_35, %c0_36, %c64_37] : memref<1x128x128xbf16, #tpu.memory_space<vmem>>, vector<1x128x32xbf16>
    %51 = vector.shape_cast %50 : vector<1x128x32xbf16> to vector<128x32xbf16>
    %cst_38 = arith.constant dense<0.000000e+00> : vector<128x128xf32>
    %52 = tpu.matmul %47, %49, %cst_38 {dimension_numbers = #tpu.dot_dimension_numbers<[1], [1], [0], [0], [0, 0, 1, 0], [], []>} : vector<128x32xbf16>, vector<128x32xbf16>, vector<128x128xf32> -> vector<128x128xf32>
    %cst_39 = arith.constant dense<0xFF800000> : vector<128xf32>
    %53 = vector.multi_reduction <maximumf>, %52, %cst_39 [1] : vector<128x128xf32> to vector<128xf32>
    %54 = vector.shape_cast %53 : vector<128xf32> to vector<128x1xf32>
    %55 = vector.broadcast %54 : vector<128x1xf32> to vector<128x128xf32>
    %56 = arith.subf %52, %55 : vector<128x128xf32>
    %57 = math.exp %56 : vector<128x128xf32>
    %cst_40 = arith.constant dense<0.000000e+00> : vector<128xf32>
    %58 = vector.multi_reduction <add>, %57, %cst_40 [1] : vector<128x128xf32> to vector<128xf32>
    %59 = vector.shape_cast %58 : vector<128xf32> to vector<128x1xf32>
    %60 = tpu.reciprocal %59 : vector<128x1xf32> -> vector<128x1xf32>
    %61 = vector.broadcast %60 : vector<128x1xf32> to vector<128x128xf32>
    %62 = arith.mulf %57, %61 : vector<128x128xf32>
    %c0_41 = arith.constant 0 : index
    %c2 = arith.constant 2 : index
    %c0_42 = arith.constant 0 : index
    %c0_43 = arith.constant 0 : index
    %63 = vector.load %arg8[%c0_41, %c2, %c0_42, %c0_43] : memref<1x4x128x128xf32, #tpu.memory_space<vmem>>, vector<1x1x128x128xf32>
    %64 = vector.shape_cast %63 : vector<1x1x128x128xf32> to vector<128x128xf32>
    %65 = vector.shape_cast %62 : vector<128x128xf32> to vector<1x1x128x128xf32>
    tpu.vector_store %arg8[%c0_41, %c2, %c0_42, %c0_43], %65 {strides = array<i32>} : memref<1x4x128x128xf32, #tpu.memory_space<vmem>>, vector<1x1x128x128xf32>,
    %66 = arith.truncf %62 : vector<128x128xf32> to vector<128x128xbf16>
    %cst_44 = arith.constant dense<0.000000e+00> : vector<128x32xf32>
    %67 = tpu.matmul %66, %51, %cst_44 {dimension_numbers = #tpu.dot_dimension_numbers<[1], [0], [0], [1], [0, 0, 1, 1], [], []>} : vector<128x128xbf16>, vector<128x32xbf16>, vector<128x32xf32> -> vector<128x32xf32>
    %68 = arith.truncf %67 : vector<128x32xf32> to vector<128x32xbf16>
    %c0_45 = arith.constant 0 : index
    %c0_46 = arith.constant 0 : index
    %c96 = arith.constant 96 : index
    %69 = vector.load %arg2[%c0_45, %c0_46, %c96] : memref<1x128x128xbf16, #tpu.memory_space<vmem>>, vector<1x128x32xbf16>
    %70 = vector.shape_cast %69 : vector<1x128x32xbf16> to vector<128x32xbf16>
    %c0_47 = arith.constant 0 : index
    %c0_48 = arith.constant 0 : index
    %c96_49 = arith.constant 96 : index
    %71 = vector.load %arg3[%c0_47, %c0_48, %c96_49] : memref<1x128x128xbf16, #tpu.memory_space<vmem>>, vector<1x128x32xbf16>
    %72 = vector.shape_cast %71 : vector<1x128x32xbf16> to vector<128x32xbf16>
    %c0_50 = arith.constant 0 : index
    %c0_51 = arith.constant 0 : index
    %c96_52 = arith.constant 96 : index
    %73 = vector.load %arg4[%c0_50, %c0_51, %c96_52] : memref<1x128x128xbf16, #tpu.memory_space<vmem>>, vector<1x128x32xbf16>
    %74 = vector.shape_cast %73 : vector<1x128x32xbf16> to vector<128x32xbf16>
    %cst_53 = arith.constant dense<0.000000e+00> : vector<128x128xf32>
    %75 = tpu.matmul %70, %72, %cst_53 {dimension_numbers = #tpu.dot_dimension_numbers<[1], [1], [0], [0], [0, 0, 1, 0], [], []>} : vector<128x32xbf16>, vector<128x32xbf16>, vector<128x128xf32> -> vector<128x128xf32>
    %cst_54 = arith.constant dense<0xFF800000> : vector<128xf32>
    %76 = vector.multi_reduction <maximumf>, %75, %cst_54 [1] : vector<128x128xf32> to vector<128xf32>
    %77 = vector.shape_cast %76 : vector<128xf32> to vector<128x1xf32>
    %78 = vector.broadcast %77 : vector<128x1xf32> to vector<128x128xf32>
    %79 = arith.subf %75, %78 : vector<128x128xf32>
    %80 = math.exp %79 : vector<128x128xf32>
    %cst_55 = arith.constant dense<0.000000e+00> : vector<128xf32>
    %81 = vector.multi_reduction <add>, %80, %cst_55 [1] : vector<128x128xf32> to vector<128xf32>
    %82 = vector.shape_cast %81 : vector<128xf32> to vector<128x1xf32>
    %83 = tpu.reciprocal %82 : vector<128x1xf32> -> vector<128x1xf32>
    %84 = vector.broadcast %83 : vector<128x1xf32> to vector<128x128xf32>
    %85 = arith.mulf %80, %84 : vector<128x128xf32>
    %c0_56 = arith.constant 0 : index
    %c3 = arith.constant 3 : index
    %c0_57 = arith.constant 0 : index
    %c0_58 = arith.constant 0 : index
    %86 = vector.load %arg8[%c0_56, %c3, %c0_57, %c0_58] : memref<1x4x128x128xf32, #tpu.memory_space<vmem>>, vector<1x1x128x128xf32>
    %87 = vector.shape_cast %86 : vector<1x1x128x128xf32> to vector<128x128xf32>
    %88 = vector.shape_cast %85 : vector<128x128xf32> to vector<1x1x128x128xf32>
    tpu.vector_store %arg8[%c0_56, %c3, %c0_57, %c0_58], %88 {strides = array<i32>} : memref<1x4x128x128xf32, #tpu.memory_space<vmem>>, vector<1x1x128x128xf32>,
    %89 = arith.truncf %85 : vector<128x128xf32> to vector<128x128xbf16>
    %cst_59 = arith.constant dense<0.000000e+00> : vector<128x32xf32>
    %90 = tpu.matmul %89, %74, %cst_59 {dimension_numbers = #tpu.dot_dimension_numbers<[1], [0], [0], [1], [0, 0, 1, 1], [], []>} : vector<128x128xbf16>, vector<128x32xbf16>, vector<128x32xf32> -> vector<128x32xf32>
    %91 = arith.truncf %90 : vector<128x32xf32> to vector<128x32xbf16>
    %92 = tpu.concatenate %22, %45, %68, %91 in 1 : vector<128x32xbf16>, vector<128x32xbf16>, vector<128x32xbf16>, vector<128x32xbf16> -> vector<128x128xbf16>
    %c0_60 = arith.constant 0 : index
    %c0_61 = arith.constant 0 : index
    %93 = vector.load %arg5[%c0_60, %c0_61] : memref<128x128xbf16, #tpu.memory_space<vmem>>, vector<128x128xbf16>
    %cst_62 = arith.constant dense<0.000000e+00> : vector<128x128xf32>
    %94 = tpu.matmul %92, %93, %cst_62 {dimension_numbers = #tpu.dot_dimension_numbers<[1], [0], [0], [1], [0, 0, 1, 1], [], []>} : vector<128x128xbf16>, vector<128x128xbf16>, vector<128x128xf32> -> vector<128x128xf32>
    %c0_63 = arith.constant 0 : index
    %c0_64 = arith.constant 0 : index
    %95 = vector.load %arg6[%c0_63, %c0_64] : memref<1x128xf32, #tpu.memory_space<vmem>>, vector<1x128xf32>
    %96 = vector.shape_cast %95 : vector<1x128xf32> to vector<128xf32>
    %97 = vector.shape_cast %96 : vector<128xf32> to vector<1x128xf32>
    %98 = vector.broadcast %97 : vector<1x128xf32> to vector<128x128xf32>
    %99 = arith.addf %94, %98 : vector<128x128xf32>
    %c0_65 = arith.constant 0 : index
    %c0_66 = arith.constant 0 : index
    %c0_67 = arith.constant 0 : index
    %100 = vector.load %arg7[%c0_65, %c0_66, %c0_67] : memref<1x128x128xf32, #tpu.memory_space<vmem>>, vector<1x128x128xf32>
    %101 = vector.shape_cast %100 : vector<1x128x128xf32> to vector<128x128xf32>
    %102 = vector.shape_cast %99 : vector<128x128xf32> to vector<1x128x128xf32>
    tpu.vector_store %arg7[%c0_65, %c0_66, %c0_67], %102 {strides = array<i32>} : memref<1x128x128xf32, #tpu.memory_space<vmem>>, vector<1x128x128xf32>,
    return
  }
  func.func @transform_0(%arg0: i32, %arg1: i32) -> (i32, i32, i32) {
    %c0_i32 = arith.constant 0 : i32
    %c0_i32_0 = arith.constant 0 : i32
    return %arg0, %arg1, %c0_i32 : i32, i32, i32
  }
  func.func @transform_1(%arg0: i32, %arg1: i32) -> (i32, i32, i32) {
    %c0_i32 = arith.constant 0 : i32
    %c1_i32 = arith.constant 1 : i32
    %c0_i32_0 = arith.constant 0 : i32
    return %arg0, %c0_i32, %c1_i32 : i32, i32, i32
  }
  func.func @transform_2(%arg0: i32, %arg1: i32) -> (i32, i32, i32) {
    %c0_i32 = arith.constant 0 : i32
    %c2_i32 = arith.constant 2 : i32
    %c0_i32_0 = arith.constant 0 : i32
    return %arg0, %c0_i32, %c2_i32 : i32, i32, i32
  }
  func.func @transform_3(%arg0: i32, %arg1: i32) -> (i32, i32) {
    %c0_i32 = arith.constant 0 : i32
    %c0_i32_0 = arith.constant 0 : i32
    %c0_i32_1 = arith.constant 0 : i32
    return %c0_i32, %c0_i32_0 : i32, i32
  }
  func.func @transform_4(%arg0: i32, %arg1: i32) -> (i32, i32) {
    %c0_i32 = arith.constant 0 : i32
    %c0_i32_0 = arith.constant 0 : i32
    %c0_i32_1 = arith.constant 0 : i32
    return %c0_i32, %c0_i32_0 : i32, i32
  }
  func.func @transform_5(%arg0: i32, %arg1: i32) -> (i32, i32, i32) {
    %c0_i32 = arith.constant 0 : i32
    %c0_i32_0 = arith.constant 0 : i32
    return %arg0, %arg1, %c0_i32 : i32, i32, i32
  }
  func.func @transform_6(%arg0: i32, %arg1: i32) -> (i32, i32, i32, i32) {
    %c0_i32 = arith.constant 0 : i32
    %c0_i32_0 = arith.constant 0 : i32
    %c0_i32_1 = arith.constant 0 : i32
    return %arg0, %c0_i32, %arg1, %c0_i32_0 : i32, i32, i32, i32
  }
}

</mosaic_0001>

<bundles_post_ra>
// kernel: self_multihead_attn.2
= control target key start
LH: loop header
LB: loop body
LE: loop exit
PB: predicated region body
PF: predicated region fallthrough
CT: control target
= control target key end

     0   :  { %s2678_s0 = inlined_call_operand.vmem [shape: f32[256,128], index: 0, kind: input, shape index: {}]   ;;  %s2679_s1 = inlined_call_operand.vmem [shape: bf16[128,384], index: 1, kind: input, shape index: {}]   ;;  %s2680_s3 = inlined_call_operand.vmem [shape: f32[1,128], index: 3, kind: input, shape index: {}]   ;;  %s2681_s4 = inlined_call_operand.vmem [shape: f32[1,128], index: 4, kind: input, shape index: {}]   ;;  %s2682_s2 = inlined_call_operand.vmem [shape: f32[1,384], index: 2, kind: input, shape index: {}]   ;;  %s2683_s5 = inlined_call_operand.vmem [shape: bf16[256,384], index: 5, kind: output, shape index: {}]  }
   0x1   :  { %v1792_v0 = vld [vmem:[%s2678_s0] sm:$0xff]  ;;  %v1804_v2 = vld [vmem:[%s2678_s0 + $0x8] sm:$0xff]  ;;  %v1816_v4 = vld [vmem:[%s2678_s0 + $0x10] sm:$0xff] }
   0x2   :  { %v1797_v1 = vld [vmem:[%s2678_s0 + $0xc0] sm:$0xff]  ;;  %53 = vadd.xlane.f32.xlu0 %v1792_v0  ;;  %v1809_v3 = vld [vmem:[%s2678_s0 + $0xc8] sm:$0xff]  ;;  %v1821_v5 = vld [vmem:[%s2678_s0 + $0x18] sm:$0xff] }
   0x3   :  { %101 = vadd.xlane.f32.xlu1 %v1797_v1  ;;  %v1828_v6 = vld [vmem:[%s2678_s0 + $0xd0] sm:$0xff]  ;;  %v1833_v7 = vld [vmem:[%s2678_s0 + $0xd8] sm:$0xff]  ;;  %v1840_v8 = vld [vmem:[%s2678_s0 + $0x20] sm:$0xff] }
   0x4   :  { %v1845_v9 = vld [vmem:[%s2678_s0 + $0x28] sm:$0xff]  ;;  %v1852_v10 = vld [vmem:[%s2678_s0 + $0xe0] sm:$0xff]  ;;  %v1864_v12 = vld [vmem:[%s2678_s0 + $0x30] sm:$0xff] }
   0x5   :  { %v1857_v11 = vld [vmem:[%s2678_s0 + $0xe8] sm:$0xff]  ;;  %v1869_v13 = vld [vmem:[%s2678_s0 + $0x38] sm:$0xff]  ;;  %v1876_v14 = vld [vmem:[%s2678_s0 + $0xf0] sm:$0xff] }
   0x6   :  { %55 = vadd.xlane.f32.xlu0 %v1804_v2  ;;  %v1881_v15 = vld [vmem:[%s2678_s0 + $0xf8] sm:$0xff]  ;;  %v1888_v16 = vld [vmem:[%s2678_s0 + $0x40] sm:$0xff]  ;;  %v1893_v17 = vld [vmem:[%s2678_s0 + $0x48] sm:$0xff] }
   0x7   :  { %103 = vadd.xlane.f32.xlu1 %v1809_v3  ;;  %v1900_v18 = vld [vmem:[%s2678_s0 + $0x50] sm:$0xff]  ;;  %v1905_v19 = vld [vmem:[%s2678_s0 + $0x58] sm:$0xff]  ;;  %v1912_v20 = vld [vmem:[%s2678_s0 + $0x60] sm:$0xff] }
   0x8   :  { %v1917_v21 = vld [vmem:[%s2678_s0 + $0x68] sm:$0xff]  ;;  %v1924_v22 = vld [vmem:[%s2678_s0 + $0x70] sm:$0xff]  ;;  %v1929_v23 = vld [vmem:[%s2678_s0 + $0x78] sm:$0xff] }
   0x9   :  { %v1936_v24 = vld [vmem:[%s2678_s0 + $0x80] sm:$0xff]  ;;  %v1941_v25 = vld [vmem:[%s2678_s0 + $0x88] sm:$0xff]  ;;  %v1948_v26 = vld [vmem:[%s2678_s0 + $0x90] sm:$0xff] }
   0xa   :  { %57 = vadd.xlane.f32.xlu0 %v1816_v4  ;;  %v1953_v27 = vld [vmem:[%s2678_s0 + $0x98] sm:$0xff]  ;;  %v1960_v28 = vld [vmem:[%s2678_s0 + $0xa0] sm:$0xff]  ;;  %v1965_v29 = vld [vmem:[%s2678_s0 + $0xa8] sm:$0xff] }
   0xb   :  { %59 = vadd.xlane.f32.xlu1 %v1821_v5  ;;  %v1972_v30 = vld [vmem:[%s2678_s0 + $0xb0] sm:$0xff]  ;;  %v1977_v31 = vld [vmem:[%s2678_s0 + $0xb8] sm:$0xff]  ;;  %v1664_v33 = vld [vmem:[%s2679_s1] ss:$12 sps:$4 sm:$0xff]  }
   0xc   :  { %v1662_v32 = vld [vmem:[%s2679_s1 + $0x4] ss:$12 sps:$4 sm:$0xff]   ;;  %v1665_v34 = vld [vmem:[%s2679_s1 + $0x1c] ss:$12 sps:$4 sm:$0xff]  }
   0xd   :  { %677 = vmatprep.subr.bf16.mxu0 %v1662_v32  ;;  %1645 = vmatprep.subr.bf16.mxu1 %v1662_v32 }
   0xe   :  { %105 = vadd.xlane.f32.xlu0 %v1828_v6  ;;  %678 = vmatpush1.bf16.msra.mxu0 %v1664_v33 }
   0xf   :  { %107 = vadd.xlane.f32.xlu1 %v1833_v7  ;;  %1653 = vmatpush1.bf16.msra.mxu1 %v1664_v33  ;;  %v1667_v33 = vld [vmem:[%s2679_s1 + $0x18] ss:$12 sps:$4 sm:$0xff]  }
  0x10   :  { %679 = vmatprep.subr.bf16.mxu0 %v1665_v34  ;;  %1646 = vmatprep.subr.bf16.mxu1 %v1665_v34 }
  0x12   :  { %61 = vadd.xlane.f32.xlu0 %v1840_v8  ;;  %680 = vmatpush1.bf16.msra.mxu0 %v1667_v33 }
  0x13   :  { %63 = vadd.xlane.f32.xlu1 %v1845_v9  ;;  %1654 = vmatpush1.bf16.msra.mxu1 %v1667_v33 }
  0x16   :  { %109 = vadd.xlane.f32.xlu0 %v1852_v10 }
  0x17   :  { %111 = vadd.xlane.f32.xlu1 %v1857_v11 }
  0x1a   :  { %65 = vadd.xlane.f32.xlu0 %v1864_v12 }
  0x1b   :  { %67 = vadd.xlane.f32.xlu1 %v1869_v13 }
  0x1e   :  { %113 = vadd.xlane.f32.xlu0 %v1876_v14 }
  0x1f   :  { %115 = vadd.xlane.f32.xlu1 %v1881_v15 }
  0x22   :  { %69 = vadd.xlane.f32.xlu0 %v1888_v16 }
  0x23   :  { %71 = vadd.xlane.f32.xlu1 %v1893_v17 }
  0x26   :  { %73 = vadd.xlane.f32.xlu0 %v1900_v18 }
  0x27   :  { %75 = vadd.xlane.f32.xlu1 %v1905_v19 }
  0x2a   :  { %77 = vadd.xlane.f32.xlu0 %v1912_v20 }
  0x2b   :  { %79 = vadd.xlane.f32.xlu1 %v1917_v21 }
  0x2e   :  { %81 = vadd.xlane.f32.xlu0 %v1924_v22 }
  0x2f   :  { %83 = vadd.xlane.f32.xlu1 %v1929_v23 }
  0x32   :  { %85 = vadd.xlane.f32.xlu0 %v1936_v24 }
  0x33   :  { %87 = vadd.xlane.f32.xlu1 %v1941_v25 }
  0x36   :  { %89 = vadd.xlane.f32.xlu0 %v1948_v26 }
  0x37   :  { %91 = vadd.xlane.f32.xlu1 %v1953_v27 }
  0x3a   :  { %93 = vadd.xlane.f32.xlu0 %v1960_v28 }
  0x3b   :  { %95 = vadd.xlane.f32.xlu1 %v1965_v29 }
  0x3e   :  { %97 = vadd.xlane.f32.xlu0 %v1972_v30 }
  0x3f   :  { %99 = vadd.xlane.f32.xlu1 %v1977_v31 }
  0x8f   :  { %v54_v35 = vpop.xlane.xlu0 %53 }
  0x90   :  { %v102_v36 = vpop.xlane.xlu1 %101  ;;  %v118_v37 = vmul.f32 0.0078125, %v54_v35 }
  0x91   :  { %v142_v38 = vmul.f32 0.0078125, %v102_v36 }
  0x92   :  { %v1991_v39 = vsub.f32 %v1792_v0, %v118_v37 }
  0x93   :  { %v1994_v40 = vsub.f32 %v1797_v1, %v142_v38  ;;  %v56_v41 = vpop.xlane.xlu0 %55 }
  0x94   :  { %v104_v42 = vpop.xlane.xlu1 %103  ;;  %v119_v43 = vmul.f32 0.0078125, %v56_v41  ;;  %v182_v44 = vmul.f32 %v1991_v39, %v1991_v39 }
  0x95   :  { %v143_v45 = vmul.f32 0.0078125, %v104_v42  ;;  %v206_v48 = vmul.f32 %v1994_v40, %v1994_v40 }
  0x96   :  { %v1999_v46 = vsub.f32 %v1804_v2, %v119_v43  ;;  %214 = vadd.xlane.f32.xlu0 %v182_v44 }
  0x97   :  { %v2002_v47 = vsub.f32 %v1809_v3, %v143_v45  ;;  %v58_v49 = vpop.xlane.xlu0 %57  ;;  %v1670_v45 = vld [vmem:[%s2679_s1 + $0x30] ss:$12 sps:$4 sm:$0xff]  }
  0x98   :  { %v60_v50 = vpop.xlane.xlu1 %59  ;;  %v120_v51 = vmul.f32 0.0078125, %v58_v49  ;;  %v183_v52 = vmul.f32 %v1999_v46, %v1999_v46 }
  0x99   :  { %v121_v53 = vmul.f32 0.0078125, %v60_v50  ;;  %v207_v56 = vmul.f32 %v2002_v47, %v2002_v47 }
  0x9a   :  { %v2009_v54 = vsub.f32 %v1816_v4, %v120_v51  ;;  %262 = vadd.xlane.f32.xlu0 %v206_v48  ;;  %216 = vadd.xlane.f32.xlu1 %v183_v52  ;;  %v1671_v52 = vld [vmem:[%s2679_s1 + $0x4c] ss:$12 sps:$4 sm:$0xff]  }
  0x9b   :  { %v2012_v55 = vsub.f32 %v1821_v5, %v121_v53  ;;  %v106_v57 = vpop.xlane.xlu0 %105 }
  0x9c   :  { %v108_v58 = vpop.xlane.xlu1 %107  ;;  %v144_v59 = vmul.f32 0.0078125, %v106_v57  ;;  %v184_v60 = vmul.f32 %v2009_v54, %v2009_v54  ;;  %v1673_v57 = vld [vmem:[%s2679_s1 + $0x48] ss:$12 sps:$4 sm:$0xff]  }
  0x9d   :  { %v145_v61 = vmul.f32 0.0078125, %v108_v58  ;;  %v185_v0 = vmul.f32 %v2012_v55, %v2012_v55 }
  0x9e   :  { %v2019_v62 = vsub.f32 %v1828_v6, %v144_v59  ;;  %264 = vadd.xlane.f32.xlu1 %v207_v56  ;;  %218 = vadd.xlane.f32.xlu0 %v184_v60 }
  0x9f   :  { %v2022_v63 = vsub.f32 %v1833_v7, %v145_v61  ;;  %v62_v1 = vpop.xlane.xlu0 %61 }
  0xa0   :  { %v64_v2 = vpop.xlane.xlu1 %63  ;;  %v122_v3 = vmul.f32 0.0078125, %v62_v1  ;;  %v208_v4 = vmul.f32 %v2019_v62, %v2019_v62 }
  0xa1   :  { %v123_v5 = vmul.f32 0.0078125, %v64_v2  ;;  %v209_v7 = vmul.f32 %v2022_v63, %v2022_v63 }
  0xa2   :  { %v2029_v32 = vsub.f32 %v1840_v8, %v122_v3  ;;  %220 = vadd.xlane.f32.xlu1 %v185_v0  ;;  %266 = vadd.xlane.f32.xlu0 %v208_v4  ;;  %v1674_v0 = vld [vmem:[%s2679_s1 + $0x64] ss:$12 sps:$4 sm:$0xff]   ;;  %v1676_v3 = vld [vmem:[%s2679_s1 + $0x60] ss:$12 sps:$4 sm:$0xff]  }
  0xa3   :  { %v2032_v6 = vsub.f32 %v1845_v9, %v123_v5  ;;  %v110_v34 = vpop.xlane.xlu0 %109  ;;  %v1668_v9 = vld [vmem:[%s2679_s1 + $0x34] ss:$12 sps:$4 sm:$0xff]  }
  0xa4   :  { %v112_v35 = vpop.xlane.xlu1 %111  ;;  %v146_v36 = vmul.f32 0.0078125, %v110_v34  ;;  %v186_v37 = vmul.f32 %v2029_v32, %v2029_v32  ;;  %681 = vmatprep.subr.bf16.mxu0 %v1668_v9  ;;  %1647 = vmatprep.subr.bf16.mxu1 %v1668_v9  ;;  %v1677_v34 = vld [vmem:[%s2679_s1 + $0x7c] ss:$12 sps:$4 sm:$0xff]  }
  0xa5   :  { %v147_v8 = vmul.f32 0.0078125, %v112_v35  ;;  %v187_v42 = vmul.f32 %v2032_v6, %v2032_v6  ;;  %682 = vmatpush1.bf16.msra.mxu0 %v1670_v45  ;;  %1655 = vmatpush1.bf16.msra.mxu1 %v1670_v45 }
  0xa6   :  { %v2045_v38 = vsub.f32 %v1852_v10, %v146_v36  ;;  %268 = vadd.xlane.f32.xlu1 %v209_v7  ;;  %222 = vadd.xlane.f32.xlu0 %v186_v37  ;;  %v1679_v37 = vld [vmem:[%s2679_s1 + $0x78] ss:$12 sps:$4 sm:$0xff]  }
  0xa7   :  { %v2048_v41 = vsub.f32 %v1857_v11, %v147_v8  ;;  %v66_v43 = vpop.xlane.xlu0 %65  ;;  %683 = vmatprep.subr.bf16.mxu0 %v1671_v52  ;;  %1648 = vmatprep.subr.bf16.mxu1 %v1671_v52 }
  0xa8   :  { %v68_v44 = vpop.xlane.xlu1 %67  ;;  %v124_v48 = vmul.f32 0.0078125, %v66_v43  ;;  %v210_v10 = vmul.f32 %v2045_v38, %v2045_v38 }
  0xa9   :  { %v125_v49 = vmul.f32 0.0078125, %v68_v44  ;;  %v211_v51 = vmul.f32 %v2048_v41, %v2048_v41  ;;  %684 = vmatpush1.bf16.msra.mxu0 %v1673_v57  ;;  %1656 = vmatpush1.bf16.msra.mxu1 %v1673_v57  ;;  %v1680_v44 = vld [vmem:[%s2679_s1 + $0x94] ss:$12 sps:$4 sm:$0xff]  }
  0xaa   :  { %v2058_v11 = vsub.f32 %v1864_v12, %v124_v48  ;;  %224 = vadd.xlane.f32.xlu1 %v187_v42  ;;  %270 = vadd.xlane.f32.xlu0 %v210_v10  ;;  %v1682_v10 = vld [vmem:[%s2679_s1 + $0x90] ss:$12 sps:$4 sm:$0xff]  }
  0xab   :  { %v2061_v50 = vsub.f32 %v1869_v13, %v125_v49  ;;  %v114_v53 = vpop.xlane.xlu0 %113  ;;  %685 = vmatprep.subr.bf16.mxu0 %v1674_v0  ;;  %1649 = vmatprep.subr.bf16.mxu1 %v1674_v0 }
  0xac   :  { %v116_v56 = vpop.xlane.xlu1 %115  ;;  %v148_v12 = vmul.f32 0.0078125, %v114_v53  ;;  %v188_v58 = vmul.f32 %v2058_v11, %v2058_v11 }
  0xad   :  { %v149_v59 = vmul.f32 0.0078125, %v116_v56  ;;  %v189_v61 = vmul.f32 %v2061_v50, %v2061_v50  ;;  %686 = vmatpush1.bf16.msra.mxu0 %v1676_v3  ;;  %1657 = vmatpush1.bf16.msra.mxu1 %v1676_v3  ;;  %v1683_v56 = vld [vmem:[%s2679_s1 + $0xac] ss:$12 sps:$4 sm:$0xff]  }
  0xae   :  { %v2074_v13 = vsub.f32 %v1876_v14, %v148_v12  ;;  %272 = vadd.xlane.f32.xlu1 %v211_v51  ;;  %226 = vadd.xlane.f32.xlu0 %v188_v58  ;;  %v1685_v58 = vld [vmem:[%s2679_s1 + $0xa8] ss:$12 sps:$4 sm:$0xff]  }
  0xaf   :  { %v2077_v60 = vsub.f32 %v1881_v15, %v149_v59  ;;  %v70_v1 = vpop.xlane.xlu0 %69  ;;  %687 = vmatprep.subr.bf16.mxu0 %v1677_v34  ;;  %1650 = vmatprep.subr.bf16.mxu1 %v1677_v34 }
  0xb0   :  { %v72_v2 = vpop.xlane.xlu1 %71  ;;  %v126_v14 = vmul.f32 0.0078125, %v70_v1  ;;  %v212_v4 = vmul.f32 %v2074_v13, %v2074_v13 }
  0xb1   :  { %v127_v5 = vmul.f32 0.0078125, %v72_v2  ;;  %v213_v33 = vmul.f32 %v2077_v60, %v2077_v60  ;;  %688 = vmatpush1.bf16.msra.mxu0 %v1679_v37  ;;  %1658 = vmatpush1.bf16.msra.mxu1 %v1679_v37 }
  0xb2   :  { %v2090_v15 = vsub.f32 %v1888_v16, %v126_v14  ;;  %228 = vadd.xlane.f32.xlu1 %v189_v61  ;;  %274 = vadd.xlane.f32.xlu0 %v212_v4  ;;  %v1758_v14 = vmov 0  }
  0xb3   :  { %v2093_v7 = vsub.f32 %v1893_v17, %v127_v5  ;;  %v74_v35 = vpop.xlane.xlu0 %73  ;;  %689 = vmatprep.subr.bf16.mxu0 %v1680_v44  ;;  %1651 = vmatprep.subr.bf16.mxu1 %v1680_v44 }
  0xb4   :  { %v76_v36 = vpop.xlane.xlu1 %75  ;;  %v128_v16 = vmul.f32 0.0078125, %v74_v35  ;;  %v190_v8 = vmul.f32 %v2090_v15, %v2090_v15  ;;  %709 = vmatprep.mubr.bf16.mxu0 %v1758_v14  ;;  %829 = vmatprep.mubr.bf16.mxu1 %v1758_v14  ;;  %v2160_v35 = vld [vmem:[%s2679_s1 + $0x8] ss:$12 sps:$4 sm:$0xff]  }
  0xb5   :  { %v129_v9 = vmul.f32 0.0078125, %v76_v36  ;;  %v191_v43 = vmul.f32 %v2093_v7, %v2093_v7  ;;  %690 = vmatpush1.bf16.msra.mxu0 %v1682_v10  ;;  %1659 = vmatpush1.bf16.msra.mxu1 %v1682_v10 }
  0xb6   :  { %v2106_v17 = vsub.f32 %v1900_v18, %v128_v16  ;;  %276 = vadd.xlane.f32.xlu1 %v213_v33  ;;  %230 = vadd.xlane.f32.xlu0 %v190_v8 }
  0xb7   :  { %v2109_v42 = vsub.f32 %v1905_v19, %v129_v9  ;;  %v78_v45 = vpop.xlane.xlu0 %77  ;;  %691 = vmatprep.subr.bf16.mxu0 %v1683_v56  ;;  %1652 = vmatprep.subr.bf16.mxu1 %v1683_v56 }
  0xb8   :  { %v80_v48 = vpop.xlane.xlu1 %79  ;;  %v130_v18 = vmul.f32 0.0078125, %v78_v45  ;;  %v192_v49 = vmul.f32 %v2106_v17, %v2106_v17 }
  0xb9   :  { %v131_v51 = vmul.f32 0.0078125, %v80_v48  ;;  %v193_v53 = vmul.f32 %v2109_v42, %v2109_v42  ;;  %692 = vmatpush1.bf16.msra.mxu0 %v1685_v58  ;;  %1660 = vmatpush1.bf16.msra.mxu1 %v1685_v58 }
  0xba   :  { %v2122_v19 = vsub.f32 %v1912_v20, %v130_v18  ;;  %232 = vadd.xlane.f32.xlu1 %v191_v43  ;;  %234 = vadd.xlane.f32.xlu0 %v192_v49 }
  0xbb   :  { %v2125_v52 = vsub.f32 %v1917_v21, %v131_v51  ;;  %v82_v57 = vpop.xlane.xlu0 %81  ;;  %1597 = vmatprep.subr.bf16.mxu1 %v2160_v35 }
  0xbc   :  { %v84_v12 = vpop.xlane.xlu1 %83  ;;  %v132_v20 = vmul.f32 0.0078125, %v82_v57  ;;  %v194_v59 = vmul.f32 %v2122_v19, %v2122_v19 }
  0xbd   :  { %v133_v61 = vmul.f32 0.0078125, %v84_v12  ;;  %v195_v1 = vmul.f32 %v2125_v52, %v2125_v52 }
  0xbe   :  { %v2138_v21 = vsub.f32 %v1924_v22, %v132_v20  ;;  %236 = vadd.xlane.f32.xlu1 %v193_v53  ;;  %238 = vadd.xlane.f32.xlu0 %v194_v59 }
  0xbf   :  { %v2141_v0 = vsub.f32 %v1929_v23, %v133_v61  ;;  %v86_v2 = vpop.xlane.xlu0 %85 }
  0xc0   :  { %v88_v3 = vpop.xlane.xlu1 %87  ;;  %v134_v4 = vmul.f32 0.0078125, %v86_v2  ;;  %v196_v22 = vmul.f32 %v2138_v21, %v2138_v21 }
  0xc1   :  { %v135_v5 = vmul.f32 0.0078125, %v88_v3  ;;  %v197_v34 = vmul.f32 %v2141_v0, %v2141_v0 }
  0xc2   :  { %v2150_v33 = vsub.f32 %v1936_v24, %v134_v4  ;;  %240 = vadd.xlane.f32.xlu1 %v195_v1  ;;  %242 = vadd.xlane.f32.xlu0 %v196_v22 }
  0xc3   :  { %v2153_v23 = vsub.f32 %v1941_v25, %v135_v5  ;;  %v90_v36 = vpop.xlane.xlu0 %89 }
  0xc4   :  { %v92_v37 = vpop.xlane.xlu1 %91  ;;  %v136_v16 = vmul.f32 0.0078125, %v90_v36  ;;  %v198_v24 = vmul.f32 %v2150_v33, %v2150_v33 }
  0xc5   :  { %v137_v8 = vmul.f32 0.0078125, %v92_v37  ;;  %v199_v43 = vmul.f32 %v2153_v23, %v2153_v23 }
  0xc6   :  { %v2166_v25 = vsub.f32 %v1948_v26, %v136_v16  ;;  %244 = vadd.xlane.f32.xlu1 %v197_v34  ;;  %246 = vadd.xlane.f32.xlu0 %v198_v24 }
  0xc7   :  { %v2169_v9 = vsub.f32 %v1953_v27, %v137_v8  ;;  %v94_v44 = vpop.xlane.xlu0 %93 }
  0xc8   :  { %v96_v45 = vpop.xlane.xlu1 %95  ;;  %v138_v48 = vmul.f32 0.0078125, %v94_v44  ;;  %v200_v10 = vmul.f32 %v2166_v25, %v2166_v25 }
  0xc9   :  { %v139_v18 = vmul.f32 0.0078125, %v96_v45  ;;  %v201_v27 = vmul.f32 %v2169_v9, %v2169_v9 }
  0xca   :  { %v2176_v49 = vsub.f32 %v1960_v28, %v138_v48  ;;  %248 = vadd.xlane.f32.xlu1 %v199_v43  ;;  %250 = vadd.xlane.f32.xlu0 %v200_v10 }
  0xcb   :  { %v2179_v26 = vsub.f32 %v1965_v29, %v139_v18  ;;  %v98_v51 = vpop.xlane.xlu0 %97 }
  0xcc   :  { %v100_v53 = vpop.xlane.xlu1 %99  ;;  %v140_v56 = vmul.f32 0.0078125, %v98_v51  ;;  %v202_v57 = vmul.f32 %v2176_v49, %v2176_v49 }
  0xcd   :  { %v141_v12 = vmul.f32 0.0078125, %v100_v53  ;;  %v203_v29 = vmul.f32 %v2179_v26, %v2179_v26 }
  0xce   :  { %v2186_v58 = vsub.f32 %v1972_v30, %v140_v56  ;;  %252 = vadd.xlane.f32.xlu1 %v201_v27  ;;  %254 = vadd.xlane.f32.xlu0 %v202_v57 }
  0xcf   :  { %v2189_v28 = vsub.f32 %v1977_v31, %v141_v12 }
  0xd0   :  { %v204_v20 = vmul.f32 %v2186_v58, %v2186_v58 }
  0xd1   :  { %v205_v59 = vmul.f32 %v2189_v28, %v2189_v28 }
  0xd2   :  { %256 = vadd.xlane.f32.xlu1 %v203_v29  ;;  %258 = vadd.xlane.f32.xlu0 %v204_v20  ;;  %v2201_v29 = vld [vmem:[%s2680_s3] ss:$0 sm:$0xff] }
  0xd6   :  { %260 = vadd.xlane.f32.xlu1 %v205_v59 }
 0x123   :  { %v215_v61 = vpop.xlane.xlu0 %214 }
 0x124   :  { %v278_v30 = vmul.f32 0.0078125, %v215_v61 }
 0x126   :  { %v310_v1 = vadd.f32 1e-05, %v278_v30 }
 0x127   :  { %v217_v2 = vpop.xlane.xlu1 %216  ;;  %v263_v3 = vpop.xlane.xlu0 %262 }
 0x128   :  { %1694 = vrsqrt.f32 %v310_v1  ;;  %v279_v31 = vmul.f32 0.0078125, %v217_v2  ;;  %v302_v4 = vmul.f32 0.0078125, %v263_v3 }
 0x12a   :  { %v311_v22 = vadd.f32 1e-05, %v279_v31  ;;  %v334_v5 = vadd.f32 1e-05, %v302_v4 }
 0x12b   :  { %v265_v34 = vpop.xlane.xlu1 %264  ;;  %v219_v36 = vpop.xlane.xlu0 %218 }
 0x12c   :  { %1696 = vrsqrt.f32 %v311_v22  ;;  %v303_v37 = vmul.f32 0.0078125, %v265_v34  ;;  %v280_v16 = vmul.f32 0.0078125, %v219_v36  ;;  %v2208_v22 = vld [vmem:[%s2681_s4] ss:$0 sm:$0xff] }
 0x12d   :  { %1698 = vrsqrt.f32 %v334_v5 }
 0x12e   :  { %v335_v24 = vadd.f32 1e-05, %v303_v37  ;;  %v312_v8 = vadd.f32 1e-05, %v280_v16 }
 0x12f   :  { %v221_v43 = vpop.xlane.xlu1 %220  ;;  %v267_v44 = vpop.xlane.xlu0 %266 }
 0x130   :  { %1700 = vrsqrt.f32 %v335_v24  ;;  %v281_v45 = vmul.f32 0.0078125, %v221_v43  ;;  %v304_v48 = vmul.f32 0.0078125, %v267_v44 }
 0x131   :  { %1702 = vrsqrt.f32 %v312_v8 }
 0x132   :  { %v1695_v10 = vpop.eup %1694  ;;  %v313_v18 = vadd.f32 1e-05, %v281_v45  ;;  %v336_v27 = vadd.f32 1e-05, %v304_v48 }
 0x133   :  { %v269_v51 = vpop.xlane.xlu1 %268  ;;  %v223_v53 = vpop.xlane.xlu0 %222  ;;  %v374_v56 = vmul.f32 %v1695_v10, %v1991_v39 }
 0x134   :  { %1704 = vrsqrt.f32 %v313_v18  ;;  %v305_v57 = vmul.f32 0.0078125, %v269_v51  ;;  %v282_v12 = vmul.f32 0.0078125, %v223_v53 }
 0x135   :  { %1706 = vrsqrt.f32 %v336_v27  ;;  %v413_v31 = vmul.f32 %v2201_v29, %v374_v56 }
 0x136   :  { %v1697_v20 = vpop.eup %1696  ;;  %v337_v59 = vadd.f32 1e-05, %v305_v57  ;;  %v314_v61 = vadd.f32 1e-05, %v282_v12 }
 0x137   :  { %v1699_v30 = vpop.eup %1698  ;;  %v225_v1 = vpop.xlane.xlu1 %224  ;;  %v375_v3 = vmul.f32 %v1697_v20, %v1999_v46  ;;  %v452_v43 = vadd.f32 %v2208_v22, %v413_v31 }
 0x138   :  { %v271_v2 = vpop.xlane.xlu0 %270  ;;  %1708 = vrsqrt.f32 %v337_v59  ;;  %v283_v39 = vmul.f32 0.0078125, %v225_v1  ;;  %v398_v5 = vmul.f32 %v1699_v30, %v1994_v40 }
 0x139   :  { %v306_v4 = vmul.f32 0.0078125, %v271_v2  ;;  %1710 = vrsqrt.f32 %v314_v61  ;;  %v414_v34 = vmul.f32 %v2201_v29, %v375_v3 }
 0x13a   :  { %v1701_v36 = vpop.eup %1700  ;;  %v315_v37 = vadd.f32 1e-05, %v283_v39  ;;  %v437_v48 = vmul.f32 %v2201_v29, %v398_v5  ;;  %v1687_v39 = vld [vmem:[%s2679_s1 + $0x20] ss:$12 sps:$4 sm:$0xff]  }
 0x13b   :  { %v338_v16 = vadd.f32 1e-05, %v306_v4  ;;  %v1703_v24 = vpop.eup %1702  ;;  %v273_v46 = vpop.xlane.xlu1 %272  ;;  %v453_v44 = vadd.f32 %v2208_v22, %v414_v34  ;;  %v399_v45 = vmul.f32 %v1701_v36, %v2002_v47 }
 0x13c   :  { %v227_v8 = vpop.xlane.xlu0 %226  ;;  %1712 = vrsqrt.f32 %v315_v37  ;;  %v307_v10 = vmul.f32 0.0078125, %v273_v46  ;;  %v376_v51 = vmul.f32 %v1703_v24, %v2009_v54  ;;  %v476_v59 = vadd.f32 %v2208_v22, %v437_v48  ;;  %v1688_v48 = vld [vmem:[%s2679_s1 + $0x38] ss:$12 sps:$4 sm:$0xff]  }
 0x13d   :  { %v284_v40 = vmul.f32 0.0078125, %v227_v8  ;;  %1714 = vrsqrt.f32 %v338_v16  ;;  %v2216_v18 = vpack.c.bf16 %v453_v44, %v452_v43  ;;  %v438_v27 = vmul.f32 %v2201_v29, %v399_v45 }
 0x13e   :  { %v1705_v53 = vpop.eup %1704  ;;  %v339_v56 = vadd.f32 1e-05, %v307_v10  ;;  %v415_v1 = vmul.f32 %v2201_v29, %v376_v51 }
 0x13f   :  { %v316_v57 = vadd.f32 1e-05, %v284_v40  ;;  %v1707_v12 = vpop.eup %1706  ;;  %v229_v20 = vpop.xlane.xlu1 %228  ;;  %710 = vmatmul.mubr.bf16.vlgmr.msra.gmra.mrb[0].mxu0 %v2216_v18  ;;  %v477_v61 = vadd.f32 %v2208_v22, %v438_v27  ;;  %v377_v30 = vmul.f32 %v1705_v53, %v2012_v55 }
 0x140   :  { %v275_v47 = vpop.xlane.xlu0 %274  ;;  %1716 = vrsqrt.f32 %v339_v56  ;;  %v285_v2 = vmul.f32 0.0078125, %v229_v20  ;;  %719 = vmatprep.mubr.bf16.mxu0 %v1758_v14  ;;  %v400_v54 = vmul.f32 %v1707_v12, %v2019_v62  ;;  %v454_v24 = vadd.f32 %v2208_v22, %v415_v1  ;;  %v1689_v1 = vld [vmem:[%s2679_s1 + $0x50] ss:$12 sps:$4 sm:$0xff]  }
 0x141   :  { %v308_v3 = vmul.f32 0.0078125, %v275_v47  ;;  %1718 = vrsqrt.f32 %v316_v57  ;;  %v2227_v31 = vpack.c.bf16 %v477_v61, %v476_v59  ;;  %v416_v4 = vmul.f32 %v2201_v29, %v377_v30 }
 0x142   :  { %v1709_v5 = vpop.eup %1708  ;;  %v317_v55 = vadd.f32 1e-05, %v285_v2  ;;  %v439_v8 = vmul.f32 %v2201_v29, %v400_v54 }
 0x143   :  { %v340_v34 = vadd.f32 1e-05, %v308_v3  ;;  %v1711_v36 = vpop.eup %1710  ;;  %v277_v37 = vpop.xlane.xlu1 %276  ;;  %830 = vmatmul.mubr.bf16.vlgmr.msra.gmra.mrb[0].mxu1 %v2227_v31  ;;  %v455_v62 = vadd.f32 %v2208_v22, %v416_v4  ;;  %v401_v46 = vmul.f32 %v1709_v5, %v2022_v63 }
 0x144   :  { %v231_v16 = vpop.xlane.xlu0 %230  ;;  %1720 = vrsqrt.f32 %v317_v55  ;;  %v309_v43 = vmul.f32 0.0078125, %v277_v37  ;;  %1598 = vmatpush3.bf16.msra.mxu1 %v2160_v35  ;;  %839 = vmatprep.mubr.bf16.mxu1 %v1758_v14  ;;  %v378_v63 = vmul.f32 %v1711_v36, %v2029_v32  ;;  %v478_v57 = vadd.f32 %v2208_v22, %v439_v8 }
 0x145   :  { %v286_v44 = vmul.f32 0.0078125, %v231_v16  ;;  %1722 = vrsqrt.f32 %v340_v34  ;;  %1599 = vmatprep.subr.bf16.mxu1 %v1687_v39  ;;  %v2240_v45 = vpack.c.bf16 %v455_v62, %v454_v24  ;;  %v440_v10 = vmul.f32 %v2201_v29, %v401_v46  ;;  %v1690_v24 = vld [vmem:[%s2679_s1 + $0x68] ss:$12 sps:$4 sm:$0xff]  }
 0x146   :  { %v1713_v40 = vpop.eup %1712  ;;  %v341_v27 = vadd.f32 1e-05, %v309_v43  ;;  %v417_v47 = vmul.f32 %v2201_v29, %v378_v63 }
 0x147   :  { %v318_v51 = vadd.f32 1e-05, %v286_v44  ;;  %v1715_v53 = vpop.eup %1714  ;;  %v233_v35 = vpop.xlane.xlu1 %232  ;;  %720 = vmatmul.mubr.bf16.gmra.mrb[4].mxu0 %v2240_v45  ;;  %v479_v12 = vadd.f32 %v2208_v22, %v440_v10  ;;  %v379_v20 = vmul.f32 %v1713_v40, %v2032_v6 }
 0x148   :  { %v235_v56 = vpop.xlane.xlu0 %234  ;;  %1724 = vrsqrt.f32 %v341_v27  ;;  %v287_v59 = vmul.f32 0.0078125, %v233_v35  ;;  %1600 = vmatpush3.bf16.msra.mxu1 %v1687_v39  ;;  %729 = vmatprep.mubr.bf16.mxu0 %v1758_v14  ;;  %v402_v61 = vmul.f32 %v1715_v53, %v2045_v38  ;;  %v456_v38 = vadd.f32 %v2208_v22, %v417_v47 }
 0x149   :  { %v288_v32 = vmul.f32 0.0078125, %v235_v56  ;;  %1726 = vrsqrt.f32 %v318_v51  ;;  %1601 = vmatprep.subr.bf16.mxu1 %v1688_v48  ;;  %v2254_v30 = vpack.c.bf16 %v479_v12, %v478_v57  ;;  %v418_v6 = vmul.f32 %v2201_v29, %v379_v20  ;;  %v1691_v56 = vld [vmem:[%s2679_s1 + $0x80] ss:$12 sps:$4 sm:$0xff]  }
 0x14a   :  { %v1717_v2 = vpop.eup %1716  ;;  %v319_v3 = vadd.f32 1e-05, %v287_v59  ;;  %v441_v36 = vmul.f32 %v2201_v29, %v402_v61 }
 0x14b   :  { %v320_v54 = vadd.f32 1e-05, %v288_v32  ;;  %v1719_v4 = vpop.eup %1718  ;;  %v237_v39 = vpop.xlane.xlu1 %236  ;;  %840 = vmatmul.mubr.bf16.gmra.mrb[4].mxu1 %v2254_v30  ;;  %v457_v55 = vadd.f32 %v2208_v22, %v418_v6  ;;  %v403_v34 = vmul.f32 %v1717_v2, %v2048_v41 }
 0x14c   :  { %v239_v5 = vpop.xlane.xlu0 %238  ;;  %1728 = vrsqrt.f32 %v319_v3  ;;  %v289_v37 = vmul.f32 0.0078125, %v237_v39  ;;  %1602 = vmatpush3.bf16.msra.mxu1 %v1688_v48  ;;  %849 = vmatprep.mubr.bf16.mxu1 %v1758_v14  ;;  %v380_v46 = vmul.f32 %v1719_v4, %v2058_v11  ;;  %v480_v63 = vadd.f32 %v2208_v22, %v441_v36 }
 0x14d   :  { %1730 = vrsqrt.f32 %v320_v54  ;;  %1603 = vmatprep.subr.bf16.mxu1 %v1689_v1  ;;  %v2266_v16 = vpack.c.bf16 %v457_v55, %v456_v38  ;;  %v442_v62 = vmul.f32 %v2201_v29, %v403_v34  ;;  %v290_v43 = vmul.f32 0.0078125, %v239_v5  ;;  %v1692_v54 = vld [vmem:[%s2679_s1 + $0x98] ss:$12 sps:$4 sm:$0xff]  }
 0x14e   :  { %v1721_v41 = vpop.eup %1720  ;;  %v321_v8 = vadd.f32 1e-05, %v289_v37  ;;  %v419_v51 = vmul.f32 %v2201_v29, %v380_v46 }
 0x14f   :  { %v1723_v44 = vpop.eup %1722  ;;  %v241_v10 = vpop.xlane.xlu1 %240  ;;  %730 = vmatmul.mubr.bf16.gmra.mrb[8].mxu0 %v2266_v16  ;;  %v481_v40 = vadd.f32 %v2208_v22, %v442_v62  ;;  %v381_v27 = vmul.f32 %v1721_v41, %v2061_v50  ;;  %v322_v50 = vadd.f32 1e-05, %v290_v43  ;;  %v1693_v43 = vld [vmem:[%s2679_s1 + $0xb0] ss:$12 sps:$4 sm:$0xff]  }
 0x150   :  { %v243_v48 = vpop.xlane.xlu0 %242  ;;  %1732 = vrsqrt.f32 %v321_v8  ;;  %v291_v53 = vmul.f32 0.0078125, %v241_v10  ;;  %1604 = vmatpush3.bf16.msra.mxu1 %v1689_v1  ;;  %739 = vmatprep.mubr.bf16.mxu0 %v1758_v14  ;;  %v404_v11 = vmul.f32 %v1723_v44, %v2074_v13  ;;  %v458_v61 = vadd.f32 %v2208_v22, %v419_v51 }
 0x151   :  { %1605 = vmatprep.subr.bf16.mxu1 %v1690_v24  ;;  %v2280_v35 = vpack.c.bf16 %v481_v40, %v480_v63  ;;  %v420_v57 = vmul.f32 %v2201_v29, %v381_v27 }
 0x152   :  { %v1725_v12 = vpop.eup %1724  ;;  %v323_v20 = vadd.f32 1e-05, %v291_v53  ;;  %v443_v6 = vmul.f32 %v2201_v29, %v404_v11 }
 0x153   :  { %v1727_v47 = vpop.eup %1726  ;;  %v245_v59 = vpop.xlane.xlu1 %244  ;;  %850 = vmatmul.mubr.bf16.gmra.mrb[8].mxu1 %v2280_v35  ;;  %v459_v13 = vadd.f32 %v2208_v22, %v420_v57  ;;  %v405_v1 = vmul.f32 %v1725_v12, %v2077_v60  ;;  %v292_v60 = vmul.f32 0.0078125, %v243_v48 }
 0x154   :  { %v247_v32 = vpop.xlane.xlu0 %246  ;;  %1734 = vrsqrt.f32 %v323_v20  ;;  %v293_v2 = vmul.f32 0.0078125, %v245_v59  ;;  %1606 = vmatpush3.bf16.msra.mxu1 %v1690_v24  ;;  %859 = vmatprep.mubr.bf16.mxu1 %v1758_v14  ;;  %v382_v39 = vmul.f32 %v1727_v47, %v2090_v15  ;;  %v482_v36 = vadd.f32 %v2208_v22, %v443_v6 }
 0x155   :  { %1607 = vmatprep.subr.bf16.mxu1 %v1691_v56  ;;  %v2292_v3 = vpack.c.bf16 %v459_v13, %v458_v61  ;;  %v444_v4 = vmul.f32 %v2201_v29, %v405_v1  ;;  %1736 = vrsqrt.f32 %v322_v50  ;;  %v324_v48 = vadd.f32 1e-05, %v292_v60 }
 0x156   :  { %v1729_v5 = vpop.eup %1728  ;;  %v421_v62 = vmul.f32 %v2201_v29, %v382_v39  ;;  %v325_v46 = vadd.f32 1e-05, %v293_v2 }
 0x157   :  { %v1731_v38 = vpop.eup %1730  ;;  %v249_v55 = vpop.xlane.xlu1 %248  ;;  %740 = vmatmul.mubr.bf16.gmra.mrb[12].mxu0 %v2292_v3  ;;  %v483_v37 = vadd.f32 %v2208_v22, %v444_v4  ;;  %v383_v24 = vmul.f32 %v1729_v5, %v2093_v7  ;;  %v294_v7 = vmul.f32 0.0078125, %v247_v32 }
 0x158   :  { %v251_v34 = vpop.xlane.xlu0 %250  ;;  %v295_v41 = vmul.f32 0.0078125, %v249_v55  ;;  %1608 = vmatpush3.bf16.msra.mxu1 %v1691_v56  ;;  %749 = vmatprep.mubr.bf16.mxu0 %v1758_v14  ;;  %v384_v40 = vmul.f32 %v1731_v38, %v2106_v17  ;;  %v460_v11 = vadd.f32 %v2208_v22, %v421_v62  ;;  %1738 = vrsqrt.f32 %v325_v46 }
 0x159   :  { %v296_v15 = vmul.f32 0.0078125, %v251_v34  ;;  %1609 = vmatprep.subr.bf16.mxu1 %v1692_v54  ;;  %v2305_v8 = vpack.c.bf16 %v483_v37, %v482_v36  ;;  %v422_v44 = vmul.f32 %v2201_v29, %v383_v24  ;;  %v326_v61 = vadd.f32 1e-05, %v294_v7 }
 0x15a   :  { %v1733_v10 = vpop.eup %1732  ;;  %v327_v27 = vadd.f32 1e-05, %v295_v41  ;;  %v423_v1 = vmul.f32 %v2201_v29, %v384_v40 }
 0x15b   :  { %v328_v63 = vadd.f32 1e-05, %v296_v15  ;;  %v253_v51 = vpop.xlane.xlu1 %252  ;;  %860 = vmatmul.mubr.bf16.gmra.mrb[12].mxu1 %v2305_v8  ;;  %v461_v56 = vadd.f32 %v2208_v22, %v422_v44  ;;  %v385_v57 = vmul.f32 %v1733_v10, %v2109_v42 }
 0x15c   :  { %v255_v53 = vpop.xlane.xlu0 %254  ;;  %v297_v12 = vmul.f32 0.0078125, %v253_v51  ;;  %1610 = vmatpush3.bf16.msra.mxu1 %v1692_v54  ;;  %1613 = vmatprep.mubr.bf16.mxu1 %v2216_v18  ;;  %v462_v38 = vadd.f32 %v2208_v22, %v423_v1 }
 0x15d   :  { %v298_v50 = vmul.f32 0.0078125, %v255_v53  ;;  %1740 = vrsqrt.f32 %v328_v63  ;;  %1611 = vmatprep.subr.bf16.mxu1 %v1693_v43  ;;  %v488_v17 = vpack.c.bf16 %v461_v56, %v460_v11  ;;  %v424_v20 = vmul.f32 %v2201_v29, %v385_v57 }
 0x15e   :  { %v1735_v47 = vpop.eup %1734  ;;  %1742 = vrsqrt.f32 %v324_v48  ;;  %v329_v59 = vadd.f32 1e-05, %v297_v12 }
 0x15f   :  { %v330_v32 = vadd.f32 1e-05, %v298_v50  ;;  %1744 = vrsqrt.f32 %v327_v27  ;;  %v257_v13 = vpop.xlane.xlu1 %256  ;;  %750 = vmatmul.mubr.bf16.gmra.mrb[16].mxu0 %v488_v17  ;;  %v1737_v6 = vpop.eup %1736  ;;  %v463_v54 = vadd.f32 %v2208_v22, %v424_v20  ;;  %v387_v4 = vmul.f32 %v1735_v47, %v2125_v52 }
 0x160   :  { %v259_v42 = vpop.xlane.xlu0 %258  ;;  %1746 = vrsqrt.f32 %v329_v59  ;;  %v299_v2 = vmul.f32 0.0078125, %v257_v13  ;;  %1612 = vmatpush3.bf16.msra.mxu1 %v1693_v43  ;;  %759 = vmatprep.mubr.bf16.mxu0 %v1758_v14  ;;  %v386_v55 = vmul.f32 %v1737_v6, %v2122_v19 }
 0x161   :  { %v300_v18 = vmul.f32 0.0078125, %v259_v42  ;;  %1748 = vrsqrt.f32 %v330_v32  ;;  %v489_v36 = vpack.c.bf16 %v463_v54, %v462_v38  ;;  %v426_v37 = vmul.f32 %v2201_v29, %v387_v4 }
 0x162   :  { %v331_v39 = vadd.f32 1e-05, %v299_v2  ;;  %1750 = vrsqrt.f32 %v326_v61  ;;  %v1739_v24 = vpop.eup %1738  ;;  %v425_v46 = vmul.f32 %v2201_v29, %v386_v55 }
 0x163   :  { %v332_v5 = vadd.f32 1e-05, %v300_v18  ;;  %v261_v60 = vpop.xlane.xlu1 %260  ;;  %1614 = vmatmul.mubr.bf16.vlgmr.msra.gmra.mrb[16].mxu1 %v2240_v45  ;;  %v465_v15 = vadd.f32 %v2208_v22, %v426_v37 }
 0x164   :  { %1752 = vrsqrt.f32 %v331_v39  ;;  %v301_v34 = vmul.f32 0.0078125, %v261_v60  ;;  %1617 = vmatprep.mubr.bf16.mxu1 %v2266_v16  ;;  %v389_v16 = vmul.f32 %v1739_v24, %v2141_v0  ;;  %v464_v48 = vadd.f32 %v2208_v22, %v425_v46  ;;  %v2377_v60 = vld [vmem:[%s2682_s2] sm:$0x7] }
 0x165   :  { %1754 = vrsqrt.f32 %v332_v5 }
 0x166   :  { %v333_v52 = vadd.f32 1e-05, %v301_v34  ;;  %v490_v51 = vpack.c.bf16 %v465_v15, %v464_v48  ;;  %v428_v0 = vmul.f32 %v2201_v29, %v389_v16 }
 0x167   :  { %v1741_v62 = vpop.eup %1740  ;;  %760 = vmatmul.mubr.bf16.gmra.mrb[20].mxu0 %v489_v36 }
 0x168   :  { %v1743_v41 = vpop.eup %1742  ;;  %1756 = vrsqrt.f32 %v333_v52  ;;  %769 = vmatprep.mubr.bf16.mxu0 %v1758_v14  ;;  %v392_v19 = vmul.f32 %v1741_v62, %v2166_v25 }
 0x169   :  { %v1745_v45 = vpop.eup %1744  ;;  %v388_v7 = vmul.f32 %v1743_v41, %v2138_v21 }
 0x16a   :  { %v1747_v43 = vpop.eup %1746  ;;  %v431_v44 = vmul.f32 %v2201_v29, %v392_v19 }
 0x16b   :  { %v1749_v10 = vpop.eup %1748  ;;  %1618 = vmatmul.mubr.bf16.gmra.mrb[20].mxu1 %v2292_v3  ;;  %v393_v63 = vmul.f32 %v1747_v43, %v2169_v9  ;;  %v391_v3 = vmul.f32 %v1745_v45, %v2153_v23  ;;  %v427_v21 = vmul.f32 %v2201_v29, %v388_v7  ;;  %v467_v23 = vadd.f32 %v2208_v22, %v428_v0 }
 0x16c   :  { %1621 = vmatprep.mubr.bf16.mxu1 %v488_v17  ;;  %v470_v25 = vadd.f32 %v2208_v22, %v431_v44  ;;  %v394_v40 = vmul.f32 %v1749_v10, %v2176_v49  ;;  %v1751_v27 = vpop.eup %1750 }
 0x16d   :  { %v432_v53 = vmul.f32 %v2201_v29, %v393_v63  ;;  %v390_v49 = vmul.f32 %v1751_v27, %v2150_v33  ;;  %v430_v32 = vmul.f32 %v2201_v29, %v391_v3 }
 0x16e   :  { %v1753_v11 = vpop.eup %1752  ;;  %v433_v56 = vmul.f32 %v2201_v29, %v394_v40 }
 0x16f   :  { %v1755_v57 = vpop.eup %1754  ;;  %770 = vmatmul.mubr.bf16.gmra.mrb[24].mxu0 %v490_v51  ;;  %v471_v9 = vadd.f32 %v2208_v22, %v432_v53  ;;  %v395_v12 = vmul.f32 %v1753_v11, %v2179_v26  ;;  %v466_v26 = vadd.f32 %v2208_v22, %v427_v21  ;;  %v469_v18 = vadd.f32 %v2208_v22, %v430_v32 }
 0x170   :  { %779 = vmatprep.mubr.bf16.mxu0 %v1758_v14  ;;  %v472_v50 = vadd.f32 %v2208_v22, %v433_v56  ;;  %v396_v17 = vmul.f32 %v1755_v57, %v2186_v58  ;;  %v429_v58 = vmul.f32 %v2201_v29, %v390_v49 }
 0x171   :  { %v493_v20 = vpack.c.bf16 %v471_v9, %v470_v25  ;;  %v434_v47 = vmul.f32 %v2201_v29, %v395_v12  ;;  %v491_v1 = vpack.c.bf16 %v467_v23, %v466_v26 }
 0x172   :  { %v1757_v59 = vpop.eup %1756  ;;  %v435_v61 = vmul.f32 %v2201_v29, %v396_v17  ;;  %v468_v4 = vadd.f32 %v2208_v22, %v429_v58 }
 0x173   :  { %1622 = vmatmul.mubr.bf16.gmra.mrb[24].mxu1 %v489_v36  ;;  %v473_v13 = vadd.f32 %v2208_v22, %v434_v47  ;;  %v397_v33 = vmul.f32 %v1757_v59, %v2189_v28 }
 0x174   :  { %1625 = vmatprep.mubr.bf16.mxu1 %v490_v51  ;;  %v474_v42 = vadd.f32 %v2208_v22, %v435_v61  ;;  %v492_v28 = vpack.c.bf16 %v469_v18, %v468_v4 }
 0x175   :  { %v494_v6 = vpack.c.bf16 %v473_v13, %v472_v50  ;;  %v436_v2 = vmul.f32 %v2201_v29, %v397_v33  ;;  %v534_v29 = vlaneseq }
 0x177   :  { %780 = vmatmul.mubr.bf16.gmra.mrb[28].mxu0 %v491_v1  ;;  %v475_v54 = vadd.f32 %v2208_v22, %v436_v2  ;;  %v2371_v22 = vshrl.u32 %v534_v29, 7 }
 0x178   :  { %789 = vmatprep.mubr.bf16.mxu0 %v1758_v14 }
 0x179   :  { %v495_v39 = vpack.c.bf16 %v475_v54, %v474_v42  ;;  %v536_v5 = vsub.s32 0, %v2371_v22 }
 0x17b   :  { %1626 = vmatmul.mubr.bf16.gmra.mrb[28].mxu1 %v491_v1 }
 0x17c   :  { %1629 = vmatprep.mubr.bf16.mxu1 %v492_v28 }
 0x17f   :  { %790 = vmatmul.mubr.bf16.gmra.mrb[32].mxu0 %v492_v28 }
 0x180   :  { %799 = vmatprep.mubr.bf16.mxu0 %v1758_v14 }
 0x183   :  { %1630 = vmatmul.mubr.bf16.gmra.mrb[32].mxu1 %v493_v20 }
 0x184   :  { %1633 = vmatprep.mubr.bf16.mxu1 %v494_v6 }
 0x187   :  { %800 = vmatmul.mubr.bf16.gmra.mrb[36].mxu0 %v493_v20 }
 0x188   :  { %809 = vmatprep.mubr.bf16.mxu0 %v1758_v14 }
 0x18b   :  { %1634 = vmatmul.mubr.bf16.gmra.mrb[36].mxu1 %v495_v39 }
 0x18c   :  { %1637 = vmatprep.mubr.bf16.mxu1 %v2227_v31  ;;  %v540_v31 = vsub.s32 1, %v2371_v22 }
 0x18f   :  { %810 = vmatmul.mubr.bf16.gmra.mrb[40].mxu0 %v494_v6 }
 0x190   :  { %819 = vmatprep.mubr.bf16.mxu0 %v1758_v14  ;;  %v2381_v14 = vrot.slane %v2377_v60, %v536_v5 }
 0x193   :  { %1638 = vmatmul.mubr.bf16.gmra.mrb[40].mxu1 %v2254_v30  ;;  %v2384_v30 = vrot.slane %v2377_v60, %v540_v31 }
 0x194   :  { %1641 = vmatprep.mubr.bf16.mxu1 %v2280_v35 }
 0x197   :  { %820 = vmatmul.mubr.bf16.gmra.mrb[44].mxu0 %v495_v39 }
 0x19b   :  { %1642 = vmatmul.mubr.bf16.gmra.mrb[44].mxu1 %v2305_v8 }
 0x212   :  { %v711_v35 = vpop.f32.mrb[0].mxu0 }
 0x213   :  { %v712_v8 = vadd.f32 %v711_v35, %v2381_v14  ;;  %v713_v38 = vpop.f32.mrb[1].mxu0 }
 0x214   :  { %v714_v55 = vadd.f32 %v713_v38, %v2384_v30  ;;  %v715_v34 = vpop.f32.mrb[2].mxu0 }
 0x215   :  { %v716_v36 = vadd.f32 %v715_v34, %v2381_v14  ;;  %v717_v37 = vpop.f32.mrb[3].mxu0 }
 0x216   :  { %v1509_v24 = vpack.c.bf16 %v714_v55, %v712_v8  ;;  %v718_v52 = vadd.f32 %v717_v37, %v2384_v30  ;;  %v831_v62 = vpop.f32.mrb[0].mxu1 }
 0x217   :  { %v832_v46 = vadd.f32 %v831_v62, %v2381_v14  ;;  %v833_v41 = vpop.f32.mrb[1].mxu1 }
 0x218   :  { %1351 = vst [vmem:[%s2683_s5] sm:$0xff] %v1509_v24  ;;  %v1511_v19 = vpack.c.bf16 %v718_v52, %v716_v36  ;;  %v834_v45 = vadd.f32 %v833_v41, %v2384_v30  ;;  %v835_v15 = vpop.f32.mrb[2].mxu1 }
 0x219   :  { %v836_v16 = vadd.f32 %v835_v15, %v2381_v14  ;;  %v837_v43 = vpop.f32.mrb[3].mxu1 }
 0x21a   :  { %1353 = vst [vmem:[%s2683_s5 + $0xc] sm:$0xff] %v1511_v19  ;;  %v1557_v44 = vpack.c.bf16 %v834_v45, %v832_v46  ;;  %v838_v10 = vadd.f32 %v837_v43, %v2384_v30  ;;  %v721_v48 = vpop.f32.mrb[4].mxu0  ;;  %v544_v19 = vsub.s32 2, %v2371_v22 }
 0x21b   :  { %v722_v7 = vadd.f32 %v721_v48, %v2381_v14  ;;  %v723_v63 = vpop.f32.mrb[5].mxu0 }
 0x21c   :  { %1399 = vst [vmem:[%s2683_s5 + $0x120] sm:$0xff] %v1557_v44  ;;  %v1559_v25 = vpack.c.bf16 %v838_v10, %v836_v16  ;;  %v724_v40 = vadd.f32 %v723_v63, %v2384_v30  ;;  %v725_v27 = vpop.f32.mrb[6].mxu0 }
 0x21d   :  { %v726_v51 = vadd.f32 %v725_v27, %v2381_v14  ;;  %v727_v0 = vpop.f32.mrb[7].mxu0 }
 0x21e   :  { %1401 = vst [vmem:[%s2683_s5 + $0x12c] sm:$0xff] %v1559_v25  ;;  %v1513_v53 = vpack.c.bf16 %v724_v40, %v722_v7  ;;  %v728_v11 = vadd.f32 %v727_v0, %v2384_v30  ;;  %v841_v3 = vpop.f32.mrb[4].mxu1  ;;  %v2463_v25 = vrot.slane %v2377_v60, %v544_v19 }
 0x21f   :  { %v842_v56 = vadd.f32 %v841_v3, %v2381_v14  ;;  %v843_v57 = vpop.f32.mrb[5].mxu1 }
 0x220   :  { %1355 = vst [vmem:[%s2683_s5 + $0x18] sm:$0xff] %v1513_v53  ;;  %v1515_v21 = vpack.c.bf16 %v728_v11, %v726_v51  ;;  %v844_v9 = vadd.f32 %v843_v57, %v2384_v30  ;;  %v845_v12 = vpop.f32.mrb[6].mxu1 }
 0x221   :  { %v846_v49 = vadd.f32 %v845_v12, %v2381_v14  ;;  %v847_v50 = vpop.f32.mrb[7].mxu1 }
 0x222   :  { %1357 = vst [vmem:[%s2683_s5 + $0x24] sm:$0xff] %v1515_v21  ;;  %v1561_v17 = vpack.c.bf16 %v844_v9, %v842_v56  ;;  %v848_v23 = vadd.f32 %v847_v50, %v2384_v30  ;;  %v731_v20 = vpop.f32.mrb[8].mxu0 }
 0x223   :  { %v732_v47 = vadd.f32 %v731_v20, %v2381_v14  ;;  %v733_v59 = vpop.f32.mrb[9].mxu0 }
 0x224   :  { %1403 = vst [vmem:[%s2683_s5 + $0x138] sm:$0xff] %v1561_v17  ;;  %v1563_v32 = vpack.c.bf16 %v848_v23, %v846_v49  ;;  %v734_v61 = vadd.f32 %v733_v59, %v2384_v30  ;;  %v735_v26 = vpop.f32.mrb[10].mxu0 }
 0x225   :  { %v736_v13 = vadd.f32 %v735_v26, %v2381_v14  ;;  %v737_v33 = vpop.f32.mrb[11].mxu0 }
 0x226   :  { %1405 = vst [vmem:[%s2683_s5 + $0x144] sm:$0xff] %v1563_v32  ;;  %v1517_v58 = vpack.c.bf16 %v734_v61, %v732_v47  ;;  %v738_v42 = vadd.f32 %v737_v33, %v2384_v30  ;;  %v851_v1 = vpop.f32.mrb[8].mxu1 }
 0x227   :  { %v852_v6 = vadd.f32 %v851_v1, %v2381_v14  ;;  %v853_v2 = vpop.f32.mrb[9].mxu1 }
 0x228   :  { %1359 = vst [vmem:[%s2683_s5 + $0x30] sm:$0xff] %v1517_v58  ;;  %v1519_v18 = vpack.c.bf16 %v738_v42, %v736_v13  ;;  %v854_v54 = vadd.f32 %v853_v2, %v2384_v30  ;;  %v855_v4 = vpop.f32.mrb[10].mxu1 }
 0x229   :  { %v856_v39 = vadd.f32 %v855_v4, %v2381_v14  ;;  %v857_v28 = vpop.f32.mrb[11].mxu1 }
 0x22a   :  { %1361 = vst [vmem:[%s2683_s5 + $0x3c] sm:$0xff] %v1519_v18  ;;  %v1565_v29 = vpack.c.bf16 %v854_v54, %v852_v6  ;;  %v858_v5 = vadd.f32 %v857_v28, %v2384_v30  ;;  %v741_v31 = vpop.f32.mrb[12].mxu0 }
 0x22b   :  { %v742_v35 = vadd.f32 %v741_v31, %v2381_v14  ;;  %v743_v8 = vpop.f32.mrb[13].mxu0 }
 0x22c   :  { %1407 = vst [vmem:[%s2683_s5 + $0x150] sm:$0xff] %v1565_v29  ;;  %v1567_v38 = vpack.c.bf16 %v858_v5, %v856_v39  ;;  %v744_v55 = vadd.f32 %v743_v8, %v2384_v30  ;;  %v745_v34 = vpop.f32.mrb[14].mxu0 }
 0x22d   :  { %v746_v36 = vadd.f32 %v745_v34, %v2381_v14  ;;  %v747_v37 = vpop.f32.mrb[15].mxu0 }
 0x22e   :  { %1409 = vst [vmem:[%s2683_s5 + $0x15c] sm:$0xff] %v1567_v38  ;;  %v1521_v24 = vpack.c.bf16 %v744_v55, %v742_v35  ;;  %v748_v52 = vadd.f32 %v747_v37, %v2384_v30  ;;  %v861_v62 = vpop.f32.mrb[12].mxu1 }
 0x22f   :  { %v862_v46 = vadd.f32 %v861_v62, %v2381_v14  ;;  %v863_v41 = vpop.f32.mrb[13].mxu1 }
 0x230   :  { %1363 = vst [vmem:[%s2683_s5 + $0x48] sm:$0xff] %v1521_v24  ;;  %v1523_v45 = vpack.c.bf16 %v748_v52, %v746_v36  ;;  %v864_v15 = vadd.f32 %v863_v41, %v2384_v30  ;;  %v865_v16 = vpop.f32.mrb[14].mxu1 }
 0x231   :  { %v866_v43 = vadd.f32 %v865_v16, %v2381_v14  ;;  %v867_v44 = vpop.f32.mrb[15].mxu1 }
 0x232   :  { %1365 = vst [vmem:[%s2683_s5 + $0x54] sm:$0xff] %v1523_v45  ;;  %v1569_v10 = vpack.c.bf16 %v864_v15, %v862_v46  ;;  %v868_v48 = vadd.f32 %v867_v44, %v2384_v30  ;;  %v751_v7 = vpop.f32.mrb[16].mxu0 }
 0x233   :  { %v752_v22 = vadd.f32 %v751_v7, %v2381_v14  ;;  %v753_v63 = vpop.f32.mrb[17].mxu0 }
 0x234   :  { %1411 = vst [vmem:[%s2683_s5 + $0x168] sm:$0xff] %v1569_v10  ;;  %v1571_v40 = vpack.c.bf16 %v868_v48, %v866_v43  ;;  %v754_v27 = vadd.f32 %v753_v63, %v2384_v30  ;;  %v755_v51 = vpop.f32.mrb[18].mxu0 }
 0x235   :  { %v756_v0 = vadd.f32 %v755_v51, %v2381_v14  ;;  %v757_v53 = vpop.f32.mrb[19].mxu0 }
 0x236   :  { %1413 = vst [vmem:[%s2683_s5 + $0x174] sm:$0xff] %v1571_v40  ;;  %v1525_v11 = vpack.c.bf16 %v754_v27, %v752_v22  ;;  %v758_v3 = vadd.f32 %v757_v53, %v2384_v30  ;;  %v1615_v60 = vpop.f32.mrb[16].mxu1 }
 0x237   :  { %v913_v56 = vadd.f32 %v1615_v60, %v2463_v25  ;;  %v904_v57 = vpop.f32.mrb[17].mxu1 }
 0x238   :  { %1367 = vst [vmem:[%s2683_s5 + $0x60] sm:$0xff] %v1525_v11  ;;  %v1527_v21 = vpack.c.bf16 %v758_v3, %v756_v0  ;;  %v905_v9 = vadd.f32 %v904_v57, %v2463_v25  ;;  %v1616_v12 = vpop.f32.mrb[18].mxu1 }
 0x239   :  { %v1514_v49 = vpack.c.bf16 %v913_v56, %v913_v56  ;;  %v916_v50 = vadd.f32 %v1616_v12, %v2463_v25  ;;  %v907_v17 = vpop.f32.mrb[19].mxu1 }
 0x23a   :  { %1369 = vst [vmem:[%s2683_s5 + $0x6c] sm:$0xff] %v1527_v21  ;;  %v1510_v23 = vpack.c.bf16 %v905_v9, %v905_v9  ;;  %v908_v20 = vadd.f32 %v907_v17, %v2463_v25  ;;  %v761_v47 = vpop.f32.mrb[20].mxu0 }
 0x23b   :  { %1356 = vst [vmem:[%s2683_s5 + $0x20] sm:$0xf] %v1514_v49  ;;  %v1516_v59 = vpack.c.bf16 %v916_v50, %v916_v50  ;;  %v762_v32 = vadd.f32 %v761_v47, %v2381_v14  ;;  %v763_v61 = vpop.f32.mrb[21].mxu0 }
 0x23c   :  { %1352 = vst [vmem:[%s2683_s5 + $0x8] sm:$0xf] %v1510_v23  ;;  %v1512_v26 = vpack.c.bf16 %v908_v20, %v908_v20  ;;  %v764_v13 = vadd.f32 %v763_v61, %v2384_v30  ;;  %v765_v33 = vpop.f32.mrb[22].mxu0 }
 0x23d   :  { %1358 = vst [vmem:[%s2683_s5 + $0x2c] sm:$0xf] %v1516_v59  ;;  %v766_v58 = vadd.f32 %v765_v33, %v2381_v14  ;;  %v767_v42 = vpop.f32.mrb[23].mxu0 }
 0x23e   :  { %1354 = vst [vmem:[%s2683_s5 + $0x14] sm:$0xf] %v1512_v26  ;;  %v1529_v1 = vpack.c.bf16 %v764_v13, %v762_v32  ;;  %v768_v6 = vadd.f32 %v767_v42, %v2384_v30  ;;  %v1619_v2 = vpop.f32.mrb[20].mxu1 }
 0x23f   :  { %v929_v18 = vadd.f32 %v1619_v2, %v2463_v25  ;;  %v920_v54 = vpop.f32.mrb[21].mxu1 }
 0x240   :  { %1371 = vst [vmem:[%s2683_s5 + $0x78] sm:$0xff] %v1529_v1  ;;  %v1531_v4 = vpack.c.bf16 %v768_v6, %v766_v58  ;;  %v921_v39 = vadd.f32 %v920_v54, %v2463_v25  ;;  %v1620_v28 = vpop.f32.mrb[22].mxu1 }
 0x241   :  { %v1522_v29 = vpack.c.bf16 %v929_v18, %v929_v18  ;;  %v932_v5 = vadd.f32 %v1620_v28, %v2463_v25  ;;  %v923_v31 = vpop.f32.mrb[23].mxu1 }
 0x242   :  { %1373 = vst [vmem:[%s2683_s5 + $0x84] sm:$0xff] %v1531_v4  ;;  %v1518_v35 = vpack.c.bf16 %v921_v39, %v921_v39  ;;  %v924_v8 = vadd.f32 %v923_v31, %v2463_v25  ;;  %v771_v38 = vpop.f32.mrb[24].mxu0 }
 0x243   :  { %1364 = vst [vmem:[%s2683_s5 + $0x50] sm:$0xf] %v1522_v29  ;;  %v1524_v55 = vpack.c.bf16 %v932_v5, %v932_v5  ;;  %v772_v34 = vadd.f32 %v771_v38, %v2381_v14  ;;  %v773_v36 = vpop.f32.mrb[25].mxu0 }
 0x244   :  { %1360 = vst [vmem:[%s2683_s5 + $0x38] sm:$0xf] %v1518_v35  ;;  %v1520_v37 = vpack.c.bf16 %v924_v8, %v924_v8  ;;  %v774_v24 = vadd.f32 %v773_v36, %v2384_v30  ;;  %v775_v52 = vpop.f32.mrb[26].mxu0 }
 0x245   :  { %1366 = vst [vmem:[%s2683_s5 + $0x5c] sm:$0xf] %v1524_v55  ;;  %v776_v62 = vadd.f32 %v775_v52, %v2381_v14  ;;  %v777_v46 = vpop.f32.mrb[27].mxu0 }
 0x246   :  { %1362 = vst [vmem:[%s2683_s5 + $0x44] sm:$0xf] %v1520_v37  ;;  %v1533_v41 = vpack.c.bf16 %v774_v24, %v772_v34  ;;  %v778_v19 = vadd.f32 %v777_v46, %v2384_v30  ;;  %v1623_v45 = vpop.f32.mrb[24].mxu1 }
 0x247   :  { %v945_v15 = vadd.f32 %v1623_v45, %v2463_v25  ;;  %v936_v16 = vpop.f32.mrb[25].mxu1 }
 0x248   :  { %1375 = vst [vmem:[%s2683_s5 + $0x90] sm:$0xff] %v1533_v41  ;;  %v1535_v43 = vpack.c.bf16 %v778_v19, %v776_v62  ;;  %v937_v44 = vadd.f32 %v936_v16, %v2463_v25  ;;  %v1624_v10 = vpop.f32.mrb[26].mxu1 }
 0x249   :  { %v1530_v48 = vpack.c.bf16 %v945_v15, %v945_v15  ;;  %v948_v7 = vadd.f32 %v1624_v10, %v2463_v25  ;;  %v939_v22 = vpop.f32.mrb[27].mxu1 }
 0x24a   :  { %1377 = vst [vmem:[%s2683_s5 + $0x9c] sm:$0xff] %v1535_v43  ;;  %v1526_v63 = vpack.c.bf16 %v937_v44, %v937_v44  ;;  %v940_v40 = vadd.f32 %v939_v22, %v2463_v25  ;;  %v781_v27 = vpop.f32.mrb[28].mxu0 }
 0x24b   :  { %1372 = vst [vmem:[%s2683_s5 + $0x80] sm:$0xf] %v1530_v48  ;;  %v1532_v51 = vpack.c.bf16 %v948_v7, %v948_v7  ;;  %v782_v0 = vadd.f32 %v781_v27, %v2381_v14  ;;  %v783_v53 = vpop.f32.mrb[29].mxu0 }
 0x24c   :  { %1368 = vst [vmem:[%s2683_s5 + $0x68] sm:$0xf] %v1526_v63  ;;  %v1528_v11 = vpack.c.bf16 %v940_v40, %v940_v40  ;;  %v784_v3 = vadd.f32 %v783_v53, %v2384_v30  ;;  %v785_v60 = vpop.f32.mrb[30].mxu0 }
 0x24d   :  { %1374 = vst [vmem:[%s2683_s5 + $0x8c] sm:$0xf] %v1532_v51  ;;  %v786_v56 = vadd.f32 %v785_v60, %v2381_v14  ;;  %v787_v57 = vpop.f32.mrb[31].mxu0 }
 0x24e   :  { %1370 = vst [vmem:[%s2683_s5 + $0x74] sm:$0xf] %v1528_v11  ;;  %v1537_v21 = vpack.c.bf16 %v784_v3, %v782_v0  ;;  %v788_v9 = vadd.f32 %v787_v57, %v2384_v30  ;;  %v1627_v12 = vpop.f32.mrb[28].mxu1 }
 0x24f   :  { %v961_v49 = vadd.f32 %v1627_v12, %v2463_v25  ;;  %v952_v50 = vpop.f32.mrb[29].mxu1 }
 0x250   :  { %1379 = vst [vmem:[%s2683_s5 + $0xa8] sm:$0xff] %v1537_v21  ;;  %v1539_v17 = vpack.c.bf16 %v788_v9, %v786_v56  ;;  %v953_v23 = vadd.f32 %v952_v50, %v2463_v25  ;;  %v1628_v20 = vpop.f32.mrb[30].mxu1 }
 0x251   :  { %v1538_v47 = vpack.c.bf16 %v961_v49, %v961_v49  ;;  %v964_v59 = vadd.f32 %v1628_v20, %v2463_v25  ;;  %v955_v32 = vpop.f32.mrb[31].mxu1 }
 0x252   :  { %1381 = vst [vmem:[%s2683_s5 + $0xb4] sm:$0xff] %v1539_v17  ;;  %v1534_v61 = vpack.c.bf16 %v953_v23, %v953_v23  ;;  %v956_v26 = vadd.f32 %v955_v32, %v2463_v25  ;;  %v791_v13 = vpop.f32.mrb[32].mxu0 }
 0x253   :  { %1380 = vst [vmem:[%s2683_s5 + $0xb0] sm:$0xf] %v1538_v47  ;;  %v1540_v33 = vpack.c.bf16 %v964_v59, %v964_v59  ;;  %v792_v58 = vadd.f32 %v791_v13, %v2381_v14  ;;  %v793_v42 = vpop.f32.mrb[33].mxu0 }
 0x254   :  { %1376 = vst [vmem:[%s2683_s5 + $0x98] sm:$0xf] %v1534_v61  ;;  %v1536_v1 = vpack.c.bf16 %v956_v26, %v956_v26  ;;  %v794_v6 = vadd.f32 %v793_v42, %v2384_v30  ;;  %v795_v2 = vpop.f32.mrb[34].mxu0 }
 0x255   :  { %1382 = vst [vmem:[%s2683_s5 + $0xbc] sm:$0xf] %v1540_v33  ;;  %v796_v18 = vadd.f32 %v795_v2, %v2381_v14  ;;  %v797_v54 = vpop.f32.mrb[35].mxu0 }
 0x256   :  { %1378 = vst [vmem:[%s2683_s5 + $0xa4] sm:$0xf] %v1536_v1  ;;  %v1541_v4 = vpack.c.bf16 %v794_v6, %v792_v58  ;;  %v798_v39 = vadd.f32 %v797_v54, %v2384_v30  ;;  %v1631_v28 = vpop.f32.mrb[32].mxu1 }
 0x257   :  { %v977_v29 = vadd.f32 %v1631_v28, %v2463_v25  ;;  %v968_v5 = vpop.f32.mrb[33].mxu1 }
 0x258   :  { %1383 = vst [vmem:[%s2683_s5 + $0xc0] sm:$0xff] %v1541_v4  ;;  %v1543_v31 = vpack.c.bf16 %v798_v39, %v796_v18  ;;  %v969_v35 = vadd.f32 %v968_v5, %v2463_v25  ;;  %v1632_v8 = vpop.f32.mrb[34].mxu1 }
 0x259   :  { %v1546_v38 = vpack.c.bf16 %v977_v29, %v977_v29  ;;  %v980_v55 = vadd.f32 %v1632_v8, %v2463_v25  ;;  %v971_v34 = vpop.f32.mrb[35].mxu1 }
 0x25a   :  { %1385 = vst [vmem:[%s2683_s5 + $0xcc] sm:$0xff] %v1543_v31  ;;  %v1542_v36 = vpack.c.bf16 %v969_v35, %v969_v35  ;;  %v972_v37 = vadd.f32 %v971_v34, %v2463_v25  ;;  %v801_v24 = vpop.f32.mrb[36].mxu0 }
 0x25b   :  { %1388 = vst [vmem:[%s2683_s5 + $0xe0] sm:$0xf] %v1546_v38  ;;  %v1548_v52 = vpack.c.bf16 %v980_v55, %v980_v55  ;;  %v802_v62 = vadd.f32 %v801_v24, %v2381_v14  ;;  %v803_v46 = vpop.f32.mrb[37].mxu0 }
 0x25c   :  { %1384 = vst [vmem:[%s2683_s5 + $0xc8] sm:$0xf] %v1542_v36  ;;  %v1544_v41 = vpack.c.bf16 %v972_v37, %v972_v37  ;;  %v804_v19 = vadd.f32 %v803_v46, %v2384_v30  ;;  %v805_v45 = vpop.f32.mrb[38].mxu0 }
 0x25d   :  { %1390 = vst [vmem:[%s2683_s5 + $0xec] sm:$0xf] %v1548_v52  ;;  %v806_v15 = vadd.f32 %v805_v45, %v2381_v14  ;;  %v807_v16 = vpop.f32.mrb[39].mxu0 }
 0x25e   :  { %1386 = vst [vmem:[%s2683_s5 + $0xd4] sm:$0xf] %v1544_v41  ;;  %v1545_v43 = vpack.c.bf16 %v804_v19, %v802_v62  ;;  %v808_v44 = vadd.f32 %v807_v16, %v2384_v30  ;;  %v1635_v10 = vpop.f32.mrb[36].mxu1 }
 0x25f   :  { %v993_v48 = vadd.f32 %v1635_v10, %v2463_v25  ;;  %v984_v7 = vpop.f32.mrb[37].mxu1 }
 0x260   :  { %1387 = vst [vmem:[%s2683_s5 + $0xd8] sm:$0xff] %v1545_v43  ;;  %v1547_v22 = vpack.c.bf16 %v808_v44, %v806_v15  ;;  %v985_v63 = vadd.f32 %v984_v7, %v2463_v25  ;;  %v1636_v40 = vpop.f32.mrb[38].mxu1 }
 0x261   :  { %v1554_v27 = vpack.c.bf16 %v993_v48, %v993_v48  ;;  %v996_v51 = vadd.f32 %v1636_v40, %v2463_v25  ;;  %v987_v0 = vpop.f32.mrb[39].mxu1 }
 0x262   :  { %1389 = vst [vmem:[%s2683_s5 + $0xe4] sm:$0xff] %v1547_v22  ;;  %v1550_v53 = vpack.c.bf16 %v985_v63, %v985_v63  ;;  %v988_v11 = vadd.f32 %v987_v0, %v2463_v25  ;;  %v811_v3 = vpop.f32.mrb[40].mxu0 }
 0x263   :  { %1396 = vst [vmem:[%s2683_s5 + $0x110] sm:$0xf] %v1554_v27  ;;  %v1556_v60 = vpack.c.bf16 %v996_v51, %v996_v51  ;;  %v812_v56 = vadd.f32 %v811_v3, %v2381_v14  ;;  %v813_v57 = vpop.f32.mrb[41].mxu0 }
 0x264   :  { %1392 = vst [vmem:[%s2683_s5 + $0xf8] sm:$0xf] %v1550_v53  ;;  %v1552_v21 = vpack.c.bf16 %v988_v11, %v988_v11  ;;  %v814_v9 = vadd.f32 %v813_v57, %v2384_v30  ;;  %v815_v12 = vpop.f32.mrb[42].mxu0 }
 0x265   :  { %1398 = vst [vmem:[%s2683_s5 + $0x11c] sm:$0xf] %v1556_v60  ;;  %v816_v49 = vadd.f32 %v815_v12, %v2381_v14  ;;  %v817_v50 = vpop.f32.mrb[43].mxu0 }
 0x266   :  { %1394 = vst [vmem:[%s2683_s5 + $0x104] sm:$0xf] %v1552_v21  ;;  %v1549_v17 = vpack.c.bf16 %v814_v9, %v812_v56  ;;  %v818_v23 = vadd.f32 %v817_v50, %v2384_v30  ;;  %v1639_v20 = vpop.f32.mrb[40].mxu1 }
 0x267   :  { %v1009_v47 = vadd.f32 %v1639_v20, %v2463_v25  ;;  %v1000_v59 = vpop.f32.mrb[41].mxu1 }
 0x268   :  { %1391 = vst [vmem:[%s2683_s5 + $0xf0] sm:$0xff] %v1549_v17  ;;  %v1551_v32 = vpack.c.bf16 %v818_v23, %v816_v49  ;;  %v1001_v61 = vadd.f32 %v1000_v59, %v2463_v25  ;;  %v1640_v26 = vpop.f32.mrb[42].mxu1 }
 0x269   :  { %v1562_v13 = vpack.c.bf16 %v1009_v47, %v1009_v47  ;;  %v1012_v33 = vadd.f32 %v1640_v26, %v2463_v25  ;;  %v1003_v58 = vpop.f32.mrb[43].mxu1 }
 0x26a   :  { %1393 = vst [vmem:[%s2683_s5 + $0xfc] sm:$0xff] %v1551_v32  ;;  %v1558_v42 = vpack.c.bf16 %v1001_v61, %v1001_v61  ;;  %v1004_v1 = vadd.f32 %v1003_v58, %v2463_v25  ;;  %v821_v6 = vpop.f32.mrb[44].mxu0 }
 0x26b   :  { %1404 = vst [vmem:[%s2683_s5 + $0x140] sm:$0xf] %v1562_v13  ;;  %v1564_v2 = vpack.c.bf16 %v1012_v33, %v1012_v33  ;;  %v822_v18 = vadd.f32 %v821_v6, %v2381_v14  ;;  %v823_v54 = vpop.f32.mrb[45].mxu0 }
 0x26c   :  { %1400 = vst [vmem:[%s2683_s5 + $0x128] sm:$0xf] %v1558_v42  ;;  %v1560_v4 = vpack.c.bf16 %v1004_v1, %v1004_v1  ;;  %v824_v39 = vadd.f32 %v823_v54, %v2384_v30  ;;  %v825_v28 = vpop.f32.mrb[46].mxu0 }
 0x26d   :  { %1406 = vst [vmem:[%s2683_s5 + $0x14c] sm:$0xf] %v1564_v2  ;;  %v826_v29 = vadd.f32 %v825_v28, %v2381_v14  ;;  %v827_v5 = vpop.f32.mrb[47].mxu0 }
 0x26e   :  { %1402 = vst [vmem:[%s2683_s5 + $0x134] sm:$0xf] %v1560_v4  ;;  %v1553_v31 = vpack.c.bf16 %v824_v39, %v822_v18  ;;  %v828_v35 = vadd.f32 %v827_v5, %v2384_v30  ;;  %v1643_v8 = vpop.f32.mrb[44].mxu1 }
 0x26f   :  { %v1025_v38 = vadd.f32 %v1643_v8, %v2463_v25  ;;  %v1016_v55 = vpop.f32.mrb[45].mxu1 }
 0x270   :  { %1395 = vst [vmem:[%s2683_s5 + $0x108] sm:$0xff] %v1553_v31  ;;  %v1555_v34 = vpack.c.bf16 %v828_v35, %v826_v29  ;;  %v1017_v36 = vadd.f32 %v1016_v55, %v2463_v25  ;;  %v1644_v14 = vpop.f32.mrb[46].mxu1 }
 0x271   :  { %v1570_v37 = vpack.c.bf16 %v1025_v38, %v1025_v38  ;;  %v1028_v24 = vadd.f32 %v1644_v14, %v2463_v25  ;;  %v1019_v52 = vpop.f32.mrb[47].mxu1 }
 0x272   :  { %1397 = vst [vmem:[%s2683_s5 + $0x114] sm:$0xff] %v1555_v34  ;;  %v1566_v30 = vpack.c.bf16 %v1017_v36, %v1017_v36  ;;  %v1020_v62 = vadd.f32 %v1019_v52, %v2463_v25 }
 0x273   :  { %1412 = vst [vmem:[%s2683_s5 + $0x170] sm:$0xf] %v1570_v37  ;;  %v1572_v46 = vpack.c.bf16 %v1028_v24, %v1028_v24 }
 0x274   :  { %1408 = vst [vmem:[%s2683_s5 + $0x158] sm:$0xf] %v1566_v30  ;;  %v1568_v41 = vpack.c.bf16 %v1020_v62, %v1020_v62 }
 0x275   :  { %1414 = vst [vmem:[%s2683_s5 + $0x17c] sm:$0xf] %v1572_v46 }
 0x276   :  { %1410 = vst [vmem:[%s2683_s5 + $0x164] sm:$0xf] %v1568_v41 }

// kernel: self_multihead_attn.3
= control target key start
LH: loop header
LB: loop body
LE: loop exit
PB: predicated region body
PF: predicated region fallthrough
CT: control target
= control target key end

     0   :  { %12 = vsyncpa [#allocation6], 0  ;;  %s6271_s0 = inlined_call_operand.vmem [shape: bf16[2,128,384], index: 0, kind: input, shape index: {}, may-alias: {0,1,2}]   ;;  %s6272_s1 = inlined_call_operand.vmem [shape: bf16[2,128,384], index: 1, kind: input, shape index: {}, may-alias: {0,1,2}]   ;;  %s6273_s2 = inlined_call_operand.vmem [shape: bf16[2,128,384], index: 2, kind: input, shape index: {}, may-alias: {0,1,2}]   ;;  %s6274_s3 = inlined_call_operand.vmem [shape: bf16[128,128], index: 3, kind: input, shape index: {}]   ;;  %s6275_s4 = inlined_call_operand.vmem [shape: f32[1,128], index: 4, kind: input, shape index: {}]   ;;  %s6276_s5 = inlined_call_operand.vmem [shape: f32[2,128,128], index: 5, kind: output, shape index: {0}]   ;;  %s6277_s6 = inlined_call_operand.hbm [shape: f32[2,4,128,128], index: 6, kind: output, shape index: {1}]  }
   0x1   :  { %14 = vsyncpa [#allocation6 + $0x1], 0  ;;  %s4941_s21 = smov 0   ;;  %s4943_s22 = smov 0  }
   0x2   :  { %s4945_s23 = smov 0   ;;  %s4947_s24 = smov 0  }
   0x3   :  { %s4949_s25 = smov 0   ;;  %s4951_s26 = smov 0  }
   0x4 LB: > { %s3678_s27 = sadd.s32 4294967295, %s4898_s26   ;;  %s3679_s28 = sadd.s32 4294967294, %s4898_s26   ;;  %s4898_s26 = sphi %s4951_s26, %s20_s26   ;;  %s4894_s25 = sphi %s4949_s25, %s6360_s25   ;;  %s4890_s24 = sphi %s4947_s24, %s6359_s24   ;;  %s4886_s23 = sphi %s4945_s23, %s6358_s23   ;;  %s4882_s22 = sphi %s4943_s22, %s6357_s22   ;;  %s4878_s21 = sphi %s4941_s21, %s6356_s21  }
   0x5   : > { %s32_s29 = sadd.s32 1, %s4894_s25  ;;  %s41_s30 = sadd.s32 1, %s4886_s23 }
   0x6   : > { %p34_p0 = scmp.ge.s32.totalorder %s32_s29, 2  ;;  %p48_p1 = scmp.ne.s32.totalorder %s4886_s23, %s4882_s22 }
   0x7   : > { %p49_p2 = scmp.eq.s32.totalorder %s4898_s26, 0  ;;  %p202_p3 = scmp.eq.s32.totalorder %s3678_s27, 1 }
   0x8   : > { %s6362_s29 = smov (%p34_p0, %s32_s29), 0  ;;  %p207_p6 = scmp.ne.s32.totalorder %s4882_s22, %s4878_s21 }
   0x9   : > { %p4980_p4 = por %p49_p2, %p48_p1  ;;  %p4984_p5 = por %p202_p3, %p48_p1 }
   0xa   : > { %s36_s9 = ssub.s32 %s4894_s25, %s6362_s29  ;;  %p208_p8 = scmp.eq.s32.totalorder %s3679_s28, 1 }
   0xb   : > { %p39_p7 = scmp.eq.s32.totalorder %s36_s9, 0  ;;  %p3681_p10 = scmp.ge.s32.totalorder %s4898_s26, 2 }
   0xc   : > { %p4995_p9 = por %p208_p8, %p207_p6 }
   0xd   : > { %s4993_s10 = scalar_select %p39_p7, %s4886_s23, %s41_s30  }
   0xe   : > { %230 = sbr.rel (%p3681_p10) target bundleno = 66 (0x42), region = 24 }
  0x15   : > { %233 = sbr.rel (!%p4980_p4) target bundleno = 36 (0x24), region = 28  ;;  %s235_s12 = sand.u32 (%p4980_p4), 1, %s4886_s23  }
  0x16   : > { %s4399_s13 = smul.u32 (%p4980_p4), 192, %s4894_s25  ;;  %s3682_s14 = sshll.u32 (%p4980_p4), %s235_s12, 6 }
  0x17   : > { %s237_s18 = scalar_lea.vmem (%p4980_p4), [#allocation2], %s3682_s14 }
  0x18   : > { %s5009_s17 = scalar_lea.vmem (%p4980_p4), %s6271_s0, %s4399_s13 }
  0x19   : > { %v259_v0 = vld [vmem:[%s5009_s17] sm:$0xf] (%p4980_p4)  ;;  %v261_v1 = vld [vmem:[%s5009_s17 + $0xc] sm:$0xf] (%p4980_p4)  ;;  %v263_v2 = vld [vmem:[%s5009_s17 + $0x18] sm:$0xf] (%p4980_p4) }
  0x1a   : > { %260 = vst [vmem:[%s237_s18] sm:$0xf] (%p4980_p4), %v259_v0  ;;  %262 = vst [vmem:[%s237_s18 + $0x4] sm:$0xf] (%p4980_p4), %v261_v1  ;;  %v265_v3 = vld [vmem:[%s5009_s17 + $0x24] sm:$0xf] (%p4980_p4) }
  0x1b   : > { %264 = vst [vmem:[%s237_s18 + $0x8] sm:$0xf] (%p4980_p4), %v263_v2  ;;  %v267_v4 = vld [vmem:[%s5009_s17 + $0x30] sm:$0xf] (%p4980_p4)  ;;  %v269_v5 = vld [vmem:[%s5009_s17 + $0x3c] sm:$0xf] (%p4980_p4) }
  0x1c   : > { %266 = vst [vmem:[%s237_s18 + $0xc] sm:$0xf] %v265_v3  ;;  %268 = vst [vmem:[%s237_s18 + $0x10] sm:$0xf] %v267_v4  ;;  %v271_v6 = vld [vmem:[%s5009_s17 + $0x48] sm:$0xf] }
  0x1d   : > { %270 = vst [vmem:[%s237_s18 + $0x14] sm:$0xf] %v269_v5  ;;  %v273_v7 = vld [vmem:[%s5009_s17 + $0x54] sm:$0xf]  ;;  %v275_v8 = vld [vmem:[%s5009_s17 + $0x60] sm:$0xf] }
  0x1e   : > { %272 = vst [vmem:[%s237_s18 + $0x18] sm:$0xf] %v271_v6  ;;  %274 = vst [vmem:[%s237_s18 + $0x1c] sm:$0xf] %v273_v7  ;;  %v277_v9 = vld [vmem:[%s5009_s17 + $0x6c] sm:$0xf] }
  0x1f   : > { %276 = vst [vmem:[%s237_s18 + $0x20] sm:$0xf] %v275_v8  ;;  %v279_v10 = vld [vmem:[%s5009_s17 + $0x78] sm:$0xf]  ;;  %v281_v11 = vld [vmem:[%s5009_s17 + $0x84] sm:$0xf] }
  0x20   : > { %278 = vst [vmem:[%s237_s18 + $0x24] sm:$0xf] %v277_v9  ;;  %280 = vst [vmem:[%s237_s18 + $0x28] sm:$0xf] %v279_v10  ;;  %v283_v12 = vld [vmem:[%s5009_s17 + $0x90] sm:$0xf] }
  0x21   : > { %282 = vst [vmem:[%s237_s18 + $0x2c] sm:$0xf] %v281_v11  ;;  %v285_v13 = vld [vmem:[%s5009_s17 + $0x9c] sm:$0xf]  ;;  %v287_v14 = vld [vmem:[%s5009_s17 + $0xa8] sm:$0xf] }
  0x22   : > { %284 = vst [vmem:[%s237_s18 + $0x30] sm:$0xf] %v283_v12  ;;  %286 = vst [vmem:[%s237_s18 + $0x34] sm:$0xf] %v285_v13  ;;  %v289_v15 = vld [vmem:[%s5009_s17 + $0xb4] sm:$0xf] }
  0x23   : > { %288 = vst [vmem:[%s237_s18 + $0x38] sm:$0xf] %v287_v14  ;;  %290 = vst [vmem:[%s237_s18 + $0x3c] sm:$0xf] %v289_v15 }
  0x24 PF: > { %345 = sbr.rel (!%p4980_p4) target bundleno = 51 (0x33), region = 69  ;;  %s347_s19 = sand.u32 (%p4980_p4), 1, %s4886_s23  }
  0x25   : > { %s3685_s20 = smul.u32 (%p4980_p4), 192, %s4894_s25  ;;  %s3684_s27 = sshll.u32 (%p4980_p4), %s347_s19, 6 }
  0x26   : > { %s349_s12 = scalar_lea.vmem (%p4980_p4), [#allocation3], %s3684_s27 }
  0x27   : > { %s5034_s9 = scalar_lea.vmem (%p4980_p4), %s6272_s1, %s3685_s20 }
  0x28   : > { %v3686_v16 = vld [vmem:[%s5034_s9 + $0x4] sm:$0xf] (%p4980_p4)  ;;  %v3687_v17 = vld [vmem:[%s5034_s9 + $0x10] sm:$0xf] (%p4980_p4)  ;;  %v3688_v18 = vld [vmem:[%s5034_s9 + $0x1c] sm:$0xf] (%p4980_p4) }
  0x29   : > { %370 = vst [vmem:[%s349_s12] sm:$0xf] (%p4980_p4), %v3686_v16  ;;  %372 = vst [vmem:[%s349_s12 + $0x4] sm:$0xf] (%p4980_p4), %v3687_v17  ;;  %v3689_v19 = vld [vmem:[%s5034_s9 + $0x28] sm:$0xf] (%p4980_p4) }
  0x2a   : > { %374 = vst [vmem:[%s349_s12 + $0x8] sm:$0xf] (%p4980_p4), %v3688_v18  ;;  %v3690_v20 = vld [vmem:[%s5034_s9 + $0x34] sm:$0xf] (%p4980_p4)  ;;  %v3691_v21 = vld [vmem:[%s5034_s9 + $0x40] sm:$0xf] (%p4980_p4) }
  0x2b   : > { %376 = vst [vmem:[%s349_s12 + $0xc] sm:$0xf] %v3689_v19  ;;  %378 = vst [vmem:[%s349_s12 + $0x10] sm:$0xf] %v3690_v20  ;;  %v3692_v22 = vld [vmem:[%s5034_s9 + $0x4c] sm:$0xf] }
  0x2c   : > { %380 = vst [vmem:[%s349_s12 + $0x14] sm:$0xf] %v3691_v21  ;;  %v3693_v23 = vld [vmem:[%s5034_s9 + $0x58] sm:$0xf]  ;;  %v3694_v24 = vld [vmem:[%s5034_s9 + $0x64] sm:$0xf] }
  0x2d   : > { %382 = vst [vmem:[%s349_s12 + $0x18] sm:$0xf] %v3692_v22  ;;  %384 = vst [vmem:[%s349_s12 + $0x1c] sm:$0xf] %v3693_v23  ;;  %v3695_v25 = vld [vmem:[%s5034_s9 + $0x70] sm:$0xf] }
  0x2e   : > { %386 = vst [vmem:[%s349_s12 + $0x20] sm:$0xf] %v3694_v24  ;;  %v3696_v26 = vld [vmem:[%s5034_s9 + $0x7c] sm:$0xf]  ;;  %v3697_v27 = vld [vmem:[%s5034_s9 + $0x88] sm:$0xf] }
  0x2f   : > { %388 = vst [vmem:[%s349_s12 + $0x24] sm:$0xf] %v3695_v25  ;;  %390 = vst [vmem:[%s349_s12 + $0x28] sm:$0xf] %v3696_v26  ;;  %v3698_v28 = vld [vmem:[%s5034_s9 + $0x94] sm:$0xf] }
  0x30   : > { %392 = vst [vmem:[%s349_s12 + $0x2c] sm:$0xf] %v3697_v27  ;;  %v3699_v29 = vld [vmem:[%s5034_s9 + $0xa0] sm:$0xf]  ;;  %v3700_v30 = vld [vmem:[%s5034_s9 + $0xac] sm:$0xf] }
  0x31   : > { %394 = vst [vmem:[%s349_s12 + $0x30] sm:$0xf] %v3698_v28  ;;  %396 = vst [vmem:[%s349_s12 + $0x34] sm:$0xf] %v3699_v29  ;;  %v3701_v31 = vld [vmem:[%s5034_s9 + $0xb8] sm:$0xf] }
  0x32   : > { %398 = vst [vmem:[%s349_s12 + $0x38] sm:$0xf] %v3700_v30  ;;  %400 = vst [vmem:[%s349_s12 + $0x3c] sm:$0xf] %v3701_v31 }
  0x33 PF: > { %455 = sbr.rel (!%p4980_p4) target bundleno = 66 (0x42), region = 110  ;;  %s457_s13 = sand.u32 (%p4980_p4), 1, %s4886_s23  }
  0x34   : > { %s3703_s14 = smul.u32 (%p4980_p4), 192, %s4894_s25  ;;  %s3702_s15 = sshll.u32 (%p4980_p4), %s457_s13, 6 }
  0x35   : > { %s459_s7 = scalar_lea.vmem (%p4980_p4), [#allocation4], %s3702_s15 }
  0x36   : > { %s5059_s18 = scalar_lea.vmem (%p4980_p4), %s6273_s2, %s3703_s14 }
  0x37   : > { %v3704_v32 = vld [vmem:[%s5059_s18 + $0x8] sm:$0xf] (%p4980_p4)  ;;  %v3705_v33 = vld [vmem:[%s5059_s18 + $0x14] sm:$0xf] (%p4980_p4)  ;;  %v3706_v34 = vld [vmem:[%s5059_s18 + $0x20] sm:$0xf] (%p4980_p4) }
  0x38   : > { %480 = vst [vmem:[%s459_s7] sm:$0xf] (%p4980_p4), %v3704_v32  ;;  %482 = vst [vmem:[%s459_s7 + $0x4] sm:$0xf] (%p4980_p4), %v3705_v33  ;;  %v3707_v35 = vld [vmem:[%s5059_s18 + $0x2c] sm:$0xf] (%p4980_p4) }
  0x39   : > { %484 = vst [vmem:[%s459_s7 + $0x8] sm:$0xf] (%p4980_p4), %v3706_v34  ;;  %v3708_v36 = vld [vmem:[%s5059_s18 + $0x38] sm:$0xf] (%p4980_p4)  ;;  %v3709_v37 = vld [vmem:[%s5059_s18 + $0x44] sm:$0xf] (%p4980_p4) }
  0x3a   : > { %486 = vst [vmem:[%s459_s7 + $0xc] sm:$0xf] %v3707_v35  ;;  %488 = vst [vmem:[%s459_s7 + $0x10] sm:$0xf] %v3708_v36  ;;  %v3710_v38 = vld [vmem:[%s5059_s18 + $0x50] sm:$0xf] }
  0x3b   : > { %490 = vst [vmem:[%s459_s7 + $0x14] sm:$0xf] %v3709_v37  ;;  %v3711_v39 = vld [vmem:[%s5059_s18 + $0x5c] sm:$0xf]  ;;  %v3712_v40 = vld [vmem:[%s5059_s18 + $0x68] sm:$0xf] }
  0x3c   : > { %492 = vst [vmem:[%s459_s7 + $0x18] sm:$0xf] %v3710_v38  ;;  %494 = vst [vmem:[%s459_s7 + $0x1c] sm:$0xf] %v3711_v39  ;;  %v3713_v41 = vld [vmem:[%s5059_s18 + $0x74] sm:$0xf] }
  0x3d   : > { %496 = vst [vmem:[%s459_s7 + $0x20] sm:$0xf] %v3712_v40  ;;  %v3714_v42 = vld [vmem:[%s5059_s18 + $0x80] sm:$0xf]  ;;  %v3715_v43 = vld [vmem:[%s5059_s18 + $0x8c] sm:$0xf] }
  0x3e   : > { %498 = vst [vmem:[%s459_s7 + $0x24] sm:$0xf] %v3713_v41  ;;  %500 = vst [vmem:[%s459_s7 + $0x28] sm:$0xf] %v3714_v42  ;;  %v3716_v44 = vld [vmem:[%s5059_s18 + $0x98] sm:$0xf] }
  0x3f   : > { %502 = vst [vmem:[%s459_s7 + $0x2c] sm:$0xf] %v3715_v43  ;;  %v3717_v45 = vld [vmem:[%s5059_s18 + $0xa4] sm:$0xf]  ;;  %v3718_v46 = vld [vmem:[%s5059_s18 + $0xb0] sm:$0xf] }
  0x40   : > { %504 = vst [vmem:[%s459_s7 + $0x30] sm:$0xf] %v3716_v44  ;;  %506 = vst [vmem:[%s459_s7 + $0x34] sm:$0xf] %v3717_v45  ;;  %v3719_v47 = vld [vmem:[%s5059_s18 + $0xbc] sm:$0xf] }
  0x41   : > { %508 = vst [vmem:[%s459_s7 + $0x38] sm:$0xf] %v3718_v46  ;;  %510 = vst [vmem:[%s459_s7 + $0x3c] sm:$0xf] %v3719_v47 }
  0x42 PF: > { %p3720_p11 = scmp.ge.s32.totalorder %s4898_s26, 1  ;;  %p564_p12 = scmp.lt.s32.totalorder %s4898_s26, 3 }
  0x44   : > { %p565_p13 = pnand %p3720_p11, %p564_p12 }
  0x46   : > { %568 = sbr.rel (%p565_p13) target bundleno = 3179 (0xc6b), region = 151 }
  0x4d   : > { %s5080_s19 = sand.u32 1, %s4882_s22   ;;  %vm772_vm0 = vcmask 261120   ;;  %s4900_s30 = smov 96   ;;  %vm3264_vm1 = vcmask 523264   ;;  %vm3281_vm2 = vcmask 785408  }
  0x4e   : > { %s5083_s20 = sshll.u32 %s5080_s19, 6  ;;  %s3724_s12 = sshll.u32 %s5080_s19, 9 }
  0x4f   : > { %s5086_s27 = scalar_lea.vmem [#allocation3], %s5083_s20  ;;  %s5096_s28 = scalar_lea.vmem [#allocation2], %s5083_s20 }
  0x50   : > { %v4460_v48 = vld [vmem:[%s5086_s27] sm:$0xff]   ;;  %v4461_v49 = vld [vmem:[%s5086_s27 + $0x8] sm:$0xff]   ;;  %v4462_v51 = vld [vmem:[%s5086_s27 + $0x10] sm:$0xff]   ;;  %s5136_s9 = scalar_lea.vmem [#allocation4], %s5083_s20  ;;  %s5280_s13 = scalar_lea.vmem [#allocation5], %s3724_s12 }
  0x51   : > { %4367 = vmatprep.subr.msk.bf16.mxu0 %vm772_vm0, %v4460_v48  ;;  %v798_v50 = vsel %vm772_vm0, %v4460_v48, 0  ;;  %v801_v52 = vsel %vm772_vm0, %v4461_v49, 0  ;;  %v4468_v53 = vld [vmem:[%s5096_s28] sm:$0xff]   ;;  %v4463_v54 = vld [vmem:[%s5086_s27 + $0x18] sm:$0xff]   ;;  %v4465_v56 = vld [vmem:[%s5086_s27 + $0x28] sm:$0xff]   ;;  %v804_v58 = vsel %vm772_vm0, %v4462_v51, 0 }
  0x52   : > { %4064 = vmatpush3.bf16.xpose.msra.mxu0 %v798_v50  ;;  %4079 = vmatprep.mubr.msk.bf16.mxu0 %vm772_vm0, %v4468_v53  ;;  %v4464_v55 = vld [vmem:[%s5086_s27 + $0x20] sm:$0xff]   ;;  %v4466_v57 = vld [vmem:[%s5086_s27 + $0x30] sm:$0xff]   ;;  %v807_v59 = vsel %vm772_vm0, %v4463_v54, 0  ;;  %v813_v61 = vsel %vm772_vm0, %v4465_v56, 0  ;;  %v4476_v62 = vld [vmem:[%s5086_s27 + $0x8] sm:$0xff]   ;;  %s4901_s14 = smov 64  }
  0x53   : > { %4368 = vmatprep.subr.msk.bf16.mxu0 %vm772_vm0, %v4461_v49  ;;  %v810_v60 = vsel %vm772_vm0, %v4464_v55, 0  ;;  %v816_v63 = vsel %vm772_vm0, %v4466_v57, 0  ;;  %v4477_v0 = vld [vmem:[%s5086_s27] sm:$0xff]   ;;  %1385 = vrot.lane.b32.xlu1 %v4476_v62, %s4900_s30  ;;  %v4467_v1 = vld [vmem:[%s5086_s27 + $0x38] sm:$0xff]   ;;  %v4469_v3 = vld [vmem:[%s5096_s28 + $0x8] sm:$0xff]   ;;  %s4902_s15 = smov 32  }
  0x54   : > { %1383 = vrot.lane.b32.xlu0 %v4477_v0, %s4900_s30  ;;  %v819_v2 = vsel %vm772_vm0, %v4467_v1, 0  ;;  %v4470_v4 = vld [vmem:[%s5096_s28 + $0x10] sm:$0xff]   ;;  %v4471_v5 = vld [vmem:[%s5096_s28 + $0x18] sm:$0xff]   ;;  %v4472_v6 = vld [vmem:[%s5096_s28 + $0x20] sm:$0xff]   ;;  %s4903_s17 = smov [#allocation5]  }
  0x55   : > { %v4473_v7 = vld [vmem:[%s5096_s28 + $0x28] sm:$0xff]   ;;  %v4474_v8 = vld [vmem:[%s5096_s28 + $0x30] sm:$0xff]   ;;  %v4475_v9 = vld [vmem:[%s5096_s28 + $0x38] sm:$0xff]   ;;  %s4824_s18 = sshll.u32 %s4903_s17, 4  ;;  %s4825_s18 = int_to_ptr.vmem [resolvable:$false] %s4824_s18 }
  0x56   : > { %v4479_v10 = vld [vmem:[%s5136_s9] sm:$0xff]   ;;  %v4480_v11 = vld [vmem:[%s5136_s9 + $0x8] sm:$0xff]   ;;  %v4481_v12 = vld [vmem:[%s5136_s9 + $0x10] sm:$0xff]  }
  0x57   : > { %4095 = vmatprep.subr.bf16.mxu1 %v4479_v10  ;;  %v4482_v13 = vld [vmem:[%s5136_s9 + $0x18] sm:$0xff]   ;;  %v4483_v14 = vld [vmem:[%s5136_s9 + $0x20] sm:$0xff]   ;;  %v4484_v15 = vld [vmem:[%s5136_s9 + $0x28] sm:$0xff]  }
  0x58   : > { %4096 = vmatpush3.bf16.msra.mxu1 %v4479_v10  ;;  %v4485_v16 = vld [vmem:[%s5136_s9 + $0x30] sm:$0xff]   ;;  %v4486_v17 = vld [vmem:[%s5136_s9 + $0x38] sm:$0xff]  }
  0x59   : > { %4097 = vmatprep.subr.bf16.mxu1 %v4480_v11  ;;  %v4478_v35 = vld [vmem:[%s5086_s27 + $0x18] sm:$0xff]   ;;  %v4487_v36 = vld [vmem:[%s5086_s27 + $0x10] sm:$0xff]  }
  0x5a   : > { %4066 = vmatpush3.bf16.xpose.msra.mxu0 %v801_v52 }
  0x5b   : > { %4369 = vmatprep.subr.msk.bf16.mxu0 %vm772_vm0, %v4462_v51 }
  0x5c   : > { %4098 = vmatpush3.bf16.msra.mxu1 %v4480_v11 }
  0x5d   : > { %4099 = vmatprep.subr.bf16.mxu1 %v4481_v12 }
  0x60   : > { %4100 = vmatpush3.bf16.msra.mxu1 %v4481_v12 }
  0x61   : > { %4101 = vmatprep.subr.bf16.mxu1 %v4482_v13 }
  0x62   : > { %4068 = vmatpush3.bf16.xpose.msra.mxu0 %v804_v58 }
  0x63   : > { %4370 = vmatprep.subr.msk.bf16.mxu0 %vm772_vm0, %v4463_v54 }
  0x64   : > { %4102 = vmatpush3.bf16.msra.mxu1 %v4482_v13 }
  0x65   : > { %4103 = vmatprep.subr.bf16.mxu1 %v4483_v14 }
  0x68   : > { %4104 = vmatpush3.bf16.msra.mxu1 %v4483_v14 }
  0x69   : > { %4105 = vmatprep.subr.bf16.mxu1 %v4484_v15 }
  0x6a   : > { %4070 = vmatpush3.bf16.xpose.msra.mxu0 %v807_v59 }
  0x6b   : > { %4371 = vmatprep.subr.msk.bf16.mxu0 %vm772_vm0, %v4464_v55  ;;  %v4488_v55 = vld [vmem:[%s5086_s27 + $0x28] sm:$0xff]  }
  0x6c   : > { %4106 = vmatpush3.bf16.msra.mxu1 %v4484_v15 }
  0x6d   : > { %4107 = vmatprep.subr.bf16.mxu1 %v4485_v16 }
  0x70   : > { %4108 = vmatpush3.bf16.msra.mxu1 %v4485_v16 }
  0x71   : > { %4109 = vmatprep.subr.bf16.mxu1 %v4486_v17 }
  0x72   : > { %4072 = vmatpush3.bf16.xpose.msra.mxu0 %v810_v60 }
  0x73   : > { %4372 = vmatprep.subr.msk.bf16.mxu0 %vm772_vm0, %v4465_v56  ;;  %v4489_v56 = vld [vmem:[%s5086_s27 + $0x20] sm:$0xff]  }
  0x74   : > { %4110 = vmatpush3.bf16.msra.mxu1 %v4486_v17 }
  0x7a   : > { %4074 = vmatpush3.bf16.xpose.msra.mxu0 %v813_v61 }
  0x7b   : > { %4373 = vmatprep.subr.msk.bf16.mxu0 %vm772_vm0, %v4466_v57 }
  0x82   : > { %4076 = vmatpush3.bf16.xpose.msra.mxu0 %v816_v63 }
  0x83   : > { %4374 = vmatprep.subr.msk.bf16.mxu0 %vm772_vm0, %v4467_v1 }
  0x8a   : > { %4078 = vmatpush3.bf16.xpose.msra.mxu0 %v819_v2 }
  0x91   : > { %4080 = vmatmul.mubr.msk.bf16.vlgmr.msra.gmra.mrb[0].mxu0 %vm772_vm0, %v4469_v3 }
  0x92   : > { %4083 = vmatprep.mubr.msk.bf16.mxu0 %vm772_vm0, %v4470_v4 }
  0x99   : > { %4084 = vmatmul.mubr.msk.bf16.gmra.mrb[4].mxu0 %vm772_vm0, %v4471_v5 }
  0x9a   : > { %4087 = vmatprep.mubr.msk.bf16.mxu0 %vm772_vm0, %v4472_v6 }
  0xa1   : > { %4088 = vmatmul.mubr.msk.bf16.gmra.mrb[8].mxu0 %vm772_vm0, %v4473_v7 }
  0xa2   : > { %4091 = vmatprep.mubr.msk.bf16.mxu0 %vm772_vm0, %v4474_v8 }
  0xa9   : > { %4092 = vmatmul.mubr.msk.bf16.gmra.mrb[12].mxu0 %vm772_vm0, %v4475_v9 }
  0xc5   : > { %v5190_v37 = vpop.permute.xlu1 %1385 }
  0xc6   : > { %v5146_v18 = vpop.permute.xlu0 %1383 }
  0xc7   : > { %4375 = vmatprep.subr.msk.bf16.mxu1 %vm772_vm0, %v5146_v18 }
 0x164   : > { %v4081_v19 = vpop.f32.mrb[0].mxu0 }
 0x165   : > { %922 = vmax.xlane.f32.xlu1 %v4081_v19  ;;  %v855_v20 = vpop.f32.mrb[1].mxu0 }
 0x166   : > { %918 = vmax.xlane.f32.xlu0 %v855_v20  ;;  %v4082_v21 = vpop.f32.mrb[2].mxu0 }
 0x167   : > { %v858_v22 = vpop.f32.mrb[3].mxu0 }
 0x169   : > { %924 = vmax.xlane.f32.xlu1 %v4082_v21 }
 0x16a   : > { %920 = vmax.xlane.f32.xlu0 %v858_v22 }
 0x16c   : > { %v5150_v23 = vpop.f32.mrb[4].mxu0 }
 0x16d   : > { %v5152_v24 = vpop.f32.mrb[5].mxu0 }
 0x16e   : > { %930 = vmax.xlane.f32.xlu0 %v5150_v23  ;;  %v5155_v25 = vpop.f32.mrb[6].mxu0 }
 0x16f   : > { %932 = vmax.xlane.f32.xlu1 %v5155_v25  ;;  %v5158_v26 = vpop.f32.mrb[7].mxu0 }
 0x172   : > { %926 = vmax.xlane.f32.xlu0 %v5152_v24 }
 0x173   : > { %928 = vmax.xlane.f32.xlu1 %v5158_v26 }
 0x174   : > { %v5162_v27 = vpop.f32.mrb[8].mxu0 }
 0x175   : > { %v5164_v28 = vpop.f32.mrb[9].mxu0 }
 0x176   : > { %938 = vmax.xlane.f32.xlu0 %v5162_v27  ;;  %v5167_v29 = vpop.f32.mrb[10].mxu0 }
 0x177   : > { %940 = vmax.xlane.f32.xlu1 %v5167_v29  ;;  %v5170_v30 = vpop.f32.mrb[11].mxu0 }
 0x17a   : > { %934 = vmax.xlane.f32.xlu0 %v5164_v28 }
 0x17b   : > { %936 = vmax.xlane.f32.xlu1 %v5170_v30 }
 0x17c   : > { %v5174_v31 = vpop.f32.mrb[12].mxu0 }
 0x17d   : > { %v5176_v32 = vpop.f32.mrb[13].mxu0 }
 0x17e   : > { %946 = vmax.xlane.f32.xlu0 %v5174_v31  ;;  %v5179_v33 = vpop.f32.mrb[14].mxu0 }
 0x17f   : > { %v5181_v34 = vpop.f32.mrb[15].mxu0 }
 0x182   : > { %942 = vmax.xlane.f32.xlu0 %v5176_v32 }
 0x18c   : > { %1389 = vrot.lane.b32.xlu1 %v4478_v35, %s4900_s30 }
 0x198   : > { %1387 = vrot.lane.b32.xlu0 %v4487_v36, %s4900_s30 }
 0x1b0   : > { %948 = vmax.xlane.f32.xlu1 %v5179_v33 }
 0x1b4   : > { %944 = vmax.xlane.f32.xlu1 %v5181_v34 }
 0x1f2   : > { %v923_v38 = vpop.xlane.xlu1 %922 }
 0x1f3   : > { %v952_v39 = vsub.f32 %v4081_v19, %v923_v38  ;;  %v919_v40 = vpop.xlane.xlu0 %918 }
 0x1f4   : > { %v950_v41 = vsub.f32 %v855_v20, %v919_v40 }
 0x1f5   : > { %v970_v42 = vmul.f32 1.442695, %v952_v39 }
 0x1f6   : > { %v966_v43 = vmul.f32 1.442695, %v950_v41  ;;  %v925_v44 = vpop.xlane.xlu1 %924 }
 0x1f7   : > { %4564 = vpow2.f32 %v970_v42  ;;  %v953_v45 = vsub.f32 %v4082_v21, %v925_v44  ;;  %v921_v46 = vpop.xlane.xlu0 %920  ;;  %v4492_v44 = vld [vmem:[%s5096_s28] sm:$0xff]  }
 0x1f8   : > { %v951_v47 = vsub.f32 %v858_v22, %v921_v46  ;;  %4566 = vpow2.f32 %v966_v43  ;;  %v4490_v43 = vld [vmem:[%s5086_s27 + $0x30] sm:$0xff]  }
 0x1f9   : > { %v972_v48 = vmul.f32 1.442695, %v953_v45  ;;  %v4491_v45 = vld [vmem:[%s5086_s27 + $0x38] sm:$0xff]   ;;  %v4494_v46 = vld [vmem:[%s5096_s28 + $0x10] sm:$0xff]  }
 0x1fa   : > { %v968_v49 = vmul.f32 1.442695, %v951_v47  ;;  %v4493_v47 = vld [vmem:[%s5096_s28 + $0x8] sm:$0xff]  }
 0x1fb   : > { %4568 = vpow2.f32 %v972_v48  ;;  %v931_v54 = vpop.xlane.xlu0 %930  ;;  %v4496_v48 = vld [vmem:[%s5096_s28 + $0x20] sm:$0xff]  }
 0x1fc   : > { %4570 = vpow2.f32 %v968_v49  ;;  %v933_v59 = vpop.xlane.xlu1 %932  ;;  %v956_v62 = vsub.f32 %v5150_v23, %v931_v54  ;;  %v4495_v49 = vld [vmem:[%s5096_s28 + $0x18] sm:$0xff]   ;;  %v4498_v54 = vld [vmem:[%s5096_s28 + $0x30] sm:$0xff]  }
 0x1fd   : > { %v957_v4 = vsub.f32 %v5155_v25, %v933_v59 }
 0x1fe   : > { %v978_v1 = vmul.f32 1.442695, %v956_v62 }
 0x1ff   : > { %v927_v57 = vpop.xlane.xlu0 %926  ;;  %v980_v9 = vmul.f32 1.442695, %v957_v4 }
 0x200   : > { %v929_v61 = vpop.xlane.xlu1 %928  ;;  %v954_v63 = vsub.f32 %v5152_v24, %v927_v57  ;;  %4572 = vpow2.f32 %v978_v1 }
 0x201   : > { %v5192_v50 = vpop.eup %4564  ;;  %v955_v2 = vsub.f32 %v5158_v26, %v929_v61 }
 0x202   : > { %1002 = vadd.xlane.f32.xlu0 %v5192_v50  ;;  %v5195_v51 = vpop.eup %4566  ;;  %v974_v5 = vmul.f32 1.442695, %v954_v63 }
 0x203   : > { %v939_v58 = vpop.xlane.xlu0 %938  ;;  %v976_v6 = vmul.f32 1.442695, %v955_v2 }
 0x204   : > { %v941_v3 = vpop.xlane.xlu1 %940  ;;  %4574 = vpow2.f32 %v974_v5  ;;  %v960_v10 = vsub.f32 %v5162_v27, %v939_v58 }
 0x205   : > { %v5197_v52 = vpop.eup %4568  ;;  %4576 = vpow2.f32 %v976_v6  ;;  %v961_v20 = vsub.f32 %v5167_v29, %v941_v3 }
 0x206   : > { %998 = vadd.xlane.f32.xlu0 %v5195_v51  ;;  %1004 = vadd.xlane.f32.xlu1 %v5197_v52  ;;  %v5201_v53 = vpop.eup %4570  ;;  %4578 = vpow2.f32 %v980_v9  ;;  %v986_v14 = vmul.f32 1.442695, %v960_v10 }
 0x207   : > { %v935_v60 = vpop.xlane.xlu0 %934  ;;  %v988_v26 = vmul.f32 1.442695, %v961_v20 }
 0x208   : > { %v937_v11 = vpop.xlane.xlu1 %936  ;;  %v958_v15 = vsub.f32 %v5164_v28, %v935_v60 }
 0x209   : > { %v959_v27 = vsub.f32 %v5170_v30, %v937_v11 }
 0x20a   : > { %1000 = vadd.xlane.f32.xlu1 %v5201_v53  ;;  %v5218_v19 = vpop.eup %4572  ;;  %v982_v21 = vmul.f32 1.442695, %v958_v15 }
 0x20b   : > { %v947_v0 = vpop.xlane.xlu0 %946 }
 0x20c   : > { %v964_v7 = vsub.f32 %v5174_v31, %v947_v0  ;;  %v5216_v17 = vpop.permute.xlu1 %1389 }
 0x20e   : > { %v994_v12 = vmul.f32 1.442695, %v964_v7  ;;  %v5222_v22 = vpop.eup %4574  ;;  %v1424_v7 = vsel %vm772_vm0, %v5146_v18, 0 }
 0x20f   : > { %v943_v8 = vpop.xlane.xlu0 %942  ;;  %v5224_v24 = vpop.eup %4576 }
 0x210   : > { %v962_v13 = vsub.f32 %v5176_v32, %v943_v8  ;;  %4580 = vpow2.f32 %v994_v12  ;;  %v5230_v31 = vpop.eup %4578 }
 0x211   : > { %4582 = vpow2.f32 %v986_v14 }
 0x212   : > { %v990_v16 = vmul.f32 1.442695, %v962_v13 }
 0x213   : > { %v1388_v57 = vpop.permute.xlu0 %1387 }
 0x214   : > { %4584 = vpow2.f32 %v990_v16 }
 0x215   : > { %4586 = vpow2.f32 %v982_v21 }
 0x21a   : > { %v5232_v32 = vpop.eup %4580 }
 0x21b   : > { %1393 = vrot.lane.b32.xlu1 %v4488_v55, %s4900_s30  ;;  %v5237_v36 = vpop.eup %4582  ;;  %v4497_v55 = vld [vmem:[%s5096_s28 + $0x28] sm:$0xff]  }
 0x21c   : > { %1391 = vrot.lane.b32.xlu0 %v4489_v56, %s4900_s30  ;;  %v4499_v56 = vld [vmem:[%s5096_s28 + $0x38] sm:$0xff]  }
 0x21e   : > { %v5239_v38 = vpop.eup %4584 }
 0x21f   : > { %v5243_v39 = vpop.eup %4586 }
 0x23b   : > { %1010 = vadd.xlane.f32.xlu0 %v5218_v19 }
 0x23d   : > { %v949_v23 = vpop.xlane.xlu1 %948 }
 0x23e   : > { %v965_v25 = vsub.f32 %v5179_v33, %v949_v23  ;;  %v984_v33 = vmul.f32 1.442695, %v959_v27 }
 0x23f   : > { %1008 = vadd.xlane.f32.xlu0 %v5224_v24  ;;  %1006 = vadd.xlane.f32.xlu1 %v5222_v22 }
 0x240   : > { %v996_v28 = vmul.f32 1.442695, %v965_v25 }
 0x241   : > { %v945_v29 = vpop.xlane.xlu1 %944 }
 0x242   : > { %4588 = vpow2.f32 %v996_v28  ;;  %v963_v35 = vsub.f32 %v5181_v34, %v945_v29 }
 0x243   : > { %1026 = vadd.xlane.f32.xlu0 %v5232_v32  ;;  %1012 = vadd.xlane.f32.xlu1 %v5230_v31  ;;  %4590 = vpow2.f32 %v988_v26 }
 0x244   : > { %4592 = vpow2.f32 %v984_v33  ;;  %v992_v30 = vmul.f32 1.442695, %v963_v35 }
 0x246   : > { %4594 = vpow2.f32 %v992_v30 }
 0x247   : > { %1022 = vadd.xlane.f32.xlu0 %v5239_v38  ;;  %1018 = vadd.xlane.f32.xlu1 %v5237_v36 }
 0x24b   : > { %1014 = vadd.xlane.f32.xlu1 %v5243_v39 }
 0x24c   : > { %v5246_v40 = vpop.eup %4588 }
 0x24d   : > { %1028 = vadd.xlane.f32.xlu0 %v5246_v40  ;;  %v5249_v34 = vpop.eup %4590 }
 0x24e   : > { %v5252_v41 = vpop.eup %4592 }
 0x24f   : > { %1020 = vadd.xlane.f32.xlu1 %v5249_v34 }
 0x250   : > { %v5255_v42 = vpop.eup %4594 }
 0x253   : > { %1016 = vadd.xlane.f32.xlu1 %v5252_v41 }
 0x257   : > { %1024 = vadd.xlane.f32.xlu1 %v5255_v42 }
 0x263   : > { %1395 = vrot.lane.b32.xlu0 %v4490_v43, %s4900_s30 }
 0x267   : > { %1327 = vrot.lane.b32.xlu0 %v4492_v44, %s4900_s30 }
 0x268   : > { %1397 = vrot.lane.b32.xlu1 %v4491_v45, %s4900_s30 }
 0x26b   : > { %1331 = vrot.lane.b32.xlu0 %v4494_v46, %s4900_s30 }
 0x26c   : > { %1329 = vrot.lane.b32.xlu1 %v4493_v47, %s4900_s30 }
 0x26f   : > { %1335 = vrot.lane.b32.xlu0 %v4496_v48, %s4900_s30 }
 0x270   : > { %1333 = vrot.lane.b32.xlu1 %v4495_v49, %s4900_s30 }
 0x273   : > { %1339 = vrot.lane.b32.xlu0 %v4498_v54, %s4900_s30 }
 0x274   : > { %1337 = vrot.lane.b32.xlu1 %v4497_v55, %s4900_s30 }
 0x278   : > { %1341 = vrot.lane.b32.xlu1 %v4499_v56, %s4900_s30 }
 0x28f   : > { %v1003_v58 = vpop.xlane.xlu0 %1002 }
 0x290   : > { %4596 = vrcp.f32 %v1003_v58 }
 0x293   : > { %v999_v59 = vpop.xlane.xlu0 %998  ;;  %v1005_v60 = vpop.xlane.xlu1 %1004 }
 0x294   : > { %4598 = vrcp.f32 %v999_v59 }
 0x295   : > { %4600 = vrcp.f32 %v1005_v60 }
 0x297   : > { %v1001_v61 = vpop.xlane.xlu1 %1000  ;;  %v1392_v18 = vpop.permute.xlu0 %1391 }
 0x298   : > { %4602 = vrcp.f32 %v1001_v61 }
 0x29a   : > { %v4597_v62 = vpop.eup %4596 }
 0x29b   : > { %v1048_v63 = vmul.f32 %v4597_v62, %v5192_v50  ;;  %v1394_v8 = vpop.permute.xlu1 %1393 }
 0x29c   : > { %v1439_v13 = vsel %vm772_vm0, %v1394_v8, 0 }
 0x29d   : > { %1064 = vst [vmem:[%s5280_s13 + $0x10] sm:$0xff] %v1048_v63 }
 0x29e   : > { %v4599_v0 = vpop.eup %4598 }
 0x29f   : > { %v4601_v1 = vpop.eup %4600  ;;  %v1046_v2 = vmul.f32 %v4599_v0, %v5195_v51  ;;  %v1427_v51 = vsel %vm772_vm0, %v5190_v37, 0 }
 0x2a0   : > { %v1049_v3 = vmul.f32 %v4601_v1, %v5197_v52  ;;  %v1430_v52 = vsel %vm772_vm0, %v1388_v57, 0 }
 0x2a1   : > { %1062 = vst [vmem:[%s5280_s13] sm:$0xff] %v1046_v2 }
 0x2a2   : > { %v4603_v4 = vpop.eup %4602  ;;  %1065 = vst [vmem:[%s5280_s13 + $0x18] sm:$0xff] %v1049_v3  ;;  %v1079_v6 = vpack.c.bf16 %v1049_v3, %v1048_v63  ;;  %v4501_v3 = vld [vmem:[%s5136_s9 + $0x8] sm:$0xff]  }
 0x2a3   : > { %v1047_v5 = vmul.f32 %v4603_v4, %v5201_v53  ;;  %v1433_v53 = vsel %vm772_vm0, %v5216_v17, 0  ;;  %1755 = vrot.lane.b32.xlu1 %v4501_v3, %s4900_s30  ;;  %v4503_v4 = vld [vmem:[%s5136_s9 + $0x18] sm:$0xff]   ;;  %v4511_v3 = vld [vmem:[%s5086_s27 + $0x10] sm:$0xff]  }
 0x2a5   : > { %1063 = vst [vmem:[%s5280_s13 + $0x8] sm:$0xff] %v1047_v5  ;;  %v1078_v50 = vpack.c.bf16 %v1047_v5, %v1046_v2  ;;  %v4500_v2 = vld [vmem:[%s5136_s9] sm:$0xff]  }
 0x2a6   : > { %1753 = vrot.lane.b32.xlu0 %v4500_v2, %s4900_s30  ;;  %v4504_v5 = vld [vmem:[%s5136_s9 + $0x20] sm:$0xff]   ;;  %v4510_v2 = vld [vmem:[%s5086_s27 + $0x18] sm:$0xff]  }
 0x2a7   : > { %4111 = vmatprep.mubr.bf16.mxu1 %v1078_v50  ;;  %1759 = vrot.lane.b32.xlu1 %v4503_v4, %s4900_s30 }
 0x2a8   : > { %4112 = vmatmul.mubr.bf16.vlgmr.msra.gmra.mrb[0].mxu1 %v1079_v6  ;;  %v4505_v6 = vld [vmem:[%s5136_s9 + $0x28] sm:$0xff]  }
 0x2a9   : > { %4128 = vmatpush3.bf16.xpose.msra.mxu1 %v1424_v7 }
 0x2aa   : > { %4376 = vmatprep.subr.msk.bf16.mxu1 %vm772_vm0, %v5190_v37  ;;  %v1436_v37 = vsel %vm772_vm0, %v1392_v18, 0 }
 0x2ab   : > { %1763 = vrot.lane.b32.xlu1 %v4505_v6, %s4900_s30 }
 0x2b1   : > { %4130 = vmatpush3.bf16.xpose.msra.mxu1 %v1427_v51  ;;  %v4506_v51 = vld [vmem:[%s5136_s9 + $0x30] sm:$0xff]  }
 0x2b2   : > { %4377 = vmatprep.subr.msk.bf16.mxu1 %vm772_vm0, %v1388_v57 }
 0x2b9   : > { %4132 = vmatpush3.bf16.xpose.msra.mxu1 %v1430_v52  ;;  %v4507_v52 = vld [vmem:[%s5136_s9 + $0x38] sm:$0xff]  }
 0x2ba   : > { %4378 = vmatprep.subr.msk.bf16.mxu1 %vm772_vm0, %v5216_v17  ;;  %1767 = vrot.lane.b32.xlu1 %v4507_v52, %s4900_s30 }
 0x2c1   : > { %4134 = vmatpush3.bf16.xpose.msra.mxu1 %v1433_v53 }
 0x2c2   : > { %4379 = vmatprep.subr.msk.bf16.mxu1 %vm772_vm0, %v1392_v18 }
 0x2c8   : > { %v1011_v9 = vpop.xlane.xlu0 %1010 }
 0x2c9   : > { %4604 = vrcp.f32 %v1011_v9  ;;  %4136 = vmatpush3.bf16.xpose.msra.mxu1 %v1436_v37  ;;  %v4508_v9 = vld [vmem:[%s5086_s27 + $0x8] sm:$0xff]   ;;  %v4509_v37 = vld [vmem:[%s5086_s27] sm:$0xff]  }
 0x2ca   : > { %4380 = vmatprep.subr.msk.bf16.mxu1 %vm772_vm0, %v1394_v8  ;;  %2028 = vrot.lane.b32.xlu1 %v4508_v9, %s4901_s14 }
 0x2cc   : > { %v1009_v10 = vpop.xlane.xlu0 %1008  ;;  %v1007_v11 = vpop.xlane.xlu1 %1006 }
 0x2cd   : > { %4606 = vrcp.f32 %v1009_v10 }
 0x2ce   : > { %4608 = vrcp.f32 %v1007_v11 }
 0x2d0   : > { %v1027_v12 = vpop.xlane.xlu0 %1026  ;;  %v1013_v14 = vpop.xlane.xlu1 %1012 }
 0x2d1   : > { %4610 = vrcp.f32 %v1027_v12  ;;  %4138 = vmatpush3.bf16.xpose.msra.mxu1 %v1439_v13 }
 0x2d2   : > { %4612 = vrcp.f32 %v1013_v14 }
 0x2d3   : > { %v4605_v15 = vpop.eup %4604 }
 0x2d4   : > { %v1023_v16 = vpop.xlane.xlu0 %1022  ;;  %v1019_v17 = vpop.xlane.xlu1 %1018  ;;  %v1052_v20 = vmul.f32 %v4605_v15, %v5218_v19 }
 0x2d5   : > { %4614 = vrcp.f32 %v1023_v16 }
 0x2d6   : > { %4616 = vrcp.f32 %v1019_v17  ;;  %1068 = vst [vmem:[%s5280_s13 + $0x30] sm:$0xff] %v1052_v20 }
 0x2d7   : > { %v4607_v21 = vpop.eup %4606 }
 0x2d8   : > { %v4609_v23 = vpop.eup %4608  ;;  %v1015_v25 = vpop.xlane.xlu1 %1014  ;;  %v1051_v26 = vmul.f32 %v4607_v21, %v5224_v24 }
 0x2d9   : > { %4618 = vrcp.f32 %v1015_v25  ;;  %v1050_v27 = vmul.f32 %v4609_v23, %v5222_v22 }
 0x2da   : > { %v1029_v28 = vpop.xlane.xlu0 %1028  ;;  %1067 = vst [vmem:[%s5280_s13 + $0x28] sm:$0xff] %v1051_v26 }
 0x2db   : > { %v4611_v29 = vpop.eup %4610  ;;  %4620 = vrcp.f32 %v1029_v28  ;;  %1066 = vst [vmem:[%s5280_s13 + $0x20] sm:$0xff] %v1050_v27  ;;  %v1080_v33 = vpack.c.bf16 %v1051_v26, %v1050_v27 }
 0x2dc   : > { %v4613_v19 = vpop.eup %4612  ;;  %v1021_v35 = vpop.xlane.xlu1 %1020  ;;  %v1060_v30 = vmul.f32 %v4611_v29, %v5232_v32 }
 0x2dd   : > { %4115 = vmatprep.mubr.bf16.mxu1 %v1080_v33  ;;  %4622 = vrcp.f32 %v1021_v35  ;;  %v1053_v24 = vmul.f32 %v4613_v19, %v5230_v31 }
 0x2de   : > { %v1396_v43 = vpop.permute.xlu0 %1395  ;;  %1076 = vst [vmem:[%s5280_s13 + $0x70] sm:$0xff] %v1060_v30 }
 0x2df   : > { %v4615_v22 = vpop.eup %4614  ;;  %1069 = vst [vmem:[%s5280_s13 + $0x38] sm:$0xff] %v1053_v24  ;;  %v1081_v44 = vpack.c.bf16 %v1053_v24, %v1052_v20  ;;  %4381 = vmatprep.subr.msk.bf16.mxu1 %vm772_vm0, %v1396_v43  ;;  %v1442_v45 = vsel %vm772_vm0, %v1396_v43, 0 }
 0x2e0   : > { %v4617_v46 = vpop.eup %4616  ;;  %v1017_v47 = vpop.xlane.xlu1 %1016  ;;  %4140 = vmatpush3.bf16.xpose.msra.mxu1 %v1442_v45  ;;  %v1058_v32 = vmul.f32 %v4615_v22, %v5239_v38  ;;  %v4535_v45 = vld [vmem:[%s5086_s27 + $0x10] sm:$0xff]  }
 0x2e1   : > { %4116 = vmatmul.mubr.bf16.gmra.mrb[4].mxu1 %v1081_v44  ;;  %4624 = vrcp.f32 %v1017_v47  ;;  %v1056_v31 = vmul.f32 %v4617_v46, %v5237_v36 }
 0x2e2   : > { %1074 = vst [vmem:[%s5280_s13 + $0x60] sm:$0xff] %v1058_v32  ;;  %v1328_v0 = vpop.permute.xlu0 %1327 }
 0x2e3   : > { %v4619_v48 = vpop.eup %4618  ;;  %1072 = vst [vmem:[%s5280_s13 + $0x50] sm:$0xff] %v1056_v31 }
 0x2e4   : > { %v1025_v49 = vpop.xlane.xlu1 %1024  ;;  %v1054_v54 = vmul.f32 %v4619_v48, %v5243_v39 }
 0x2e5   : > { %v4621_v55 = vpop.eup %4620  ;;  %4626 = vrcp.f32 %v1025_v49 }
 0x2e6   : > { %1070 = vst [vmem:[%s5280_s13 + $0x40] sm:$0xff] %v1054_v54  ;;  %v1061_v56 = vmul.f32 %v4621_v55, %v5246_v40  ;;  %v1332_v1 = vpop.permute.xlu0 %1331  ;;  %v4534_v55 = vld [vmem:[%s5086_s27 + $0x18] sm:$0xff]  }
 0x2e7   : > { %v4623_v57 = vpop.eup %4622 }
 0x2e8   : > { %v1057_v38 = vmul.f32 %v4623_v57, %v5249_v34  ;;  %v1398_v58 = vpop.permute.xlu1 %1397  ;;  %1077 = vst [vmem:[%s5280_s13 + $0x78] sm:$0xff] %v1061_v56  ;;  %v1085_v63 = vpack.c.bf16 %v1061_v56, %v1060_v30 }
 0x2e9   : > { %4382 = vmatprep.subr.msk.bf16.mxu1 %vm772_vm0, %v1398_v58  ;;  %v1445_v36 = vsel %vm772_vm0, %v1398_v58, 0 }
 0x2ea   : > { %1073 = vst [vmem:[%s5280_s13 + $0x58] sm:$0xff] %v1057_v38  ;;  %4142 = vmatpush3.bf16.xpose.msra.mxu1 %v1445_v36  ;;  %v1083_v61 = vpack.c.bf16 %v1057_v38, %v1056_v31  ;;  %v1336_v7 = vpop.permute.xlu0 %1335 }
 0x2eb   : > { %v4625_v59 = vpop.eup %4624 }
 0x2ec   : > { %v1055_v39 = vmul.f32 %v4625_v59, %v5252_v41  ;;  %v1330_v41 = vpop.permute.xlu1 %1329 }
 0x2ee   : > { %1071 = vst [vmem:[%s5280_s13 + $0x48] sm:$0xff] %v1055_v39  ;;  %v1082_v60 = vpack.c.bf16 %v1055_v39, %v1054_v54  ;;  %v1340_v18 = vpop.permute.xlu0 %1339 }
 0x2ef   : > { %v4627_v40 = vpop.eup %4626 }
 0x2f0   : > { %4119 = vmatprep.mubr.bf16.mxu1 %v1082_v60  ;;  %v1059_v34 = vmul.f32 %v4627_v40, %v5255_v42  ;;  %v4502_v42 = vld [vmem:[%s5136_s9 + $0x10] sm:$0xff]   ;;  %v1334_v50 = vpop.permute.xlu1 %1333 }
 0x2f1   : > { %4120 = vmatmul.mubr.bf16.gmra.mrb[8].mxu1 %v1083_v61  ;;  %1757 = vrot.lane.b32.xlu0 %v4502_v42, %s4900_s30 }
 0x2f2   : > { %1075 = vst [vmem:[%s5280_s13 + $0x68] sm:$0xff] %v1059_v34  ;;  %v1084_v62 = vpack.c.bf16 %v1059_v34, %v1058_v32 }
 0x2f4   : > { %4123 = vmatprep.mubr.bf16.mxu1 %v1084_v62  ;;  %v1338_v53 = vpop.permute.xlu1 %1337 }
 0x2f5   : > { %1761 = vrot.lane.b32.xlu0 %v4504_v5, %s4900_s30 }
 0x2f8   : > { %v1342_v8 = vpop.permute.xlu1 %1341 }
 0x2f9   : > { %4124 = vmatmul.mubr.bf16.gmra.mrb[12].mxu1 %v1085_v63  ;;  %1765 = vrot.lane.b32.xlu0 %v4506_v51, %s4900_s30 }
 0x2fa   : > { %4143 = vmatprep.mubr.msk.bf16.mxu1 %vm772_vm0, %v1328_v0 }
 0x2fd   : > { %2026 = vrot.lane.b32.xlu0 %v4509_v37, %s4901_s14 }
 0x301   : > { %4144 = vmatmul.mubr.msk.bf16.vlgmr.msra.gmra.mrb[16].mxu1 %vm772_vm0, %v1330_v41 }
 0x302   : > { %4147 = vmatprep.mubr.msk.bf16.mxu1 %vm772_vm0, %v1332_v1 }
 0x309   : > { %4148 = vmatmul.mubr.msk.bf16.gmra.mrb[20].mxu1 %vm772_vm0, %v1334_v50 }
 0x30a   : > { %4151 = vmatprep.mubr.msk.bf16.mxu1 %vm772_vm0, %v1336_v7 }
 0x311   : > { %4152 = vmatmul.mubr.msk.bf16.gmra.mrb[24].mxu1 %vm772_vm0, %v1338_v53 }
 0x312   : > { %4155 = vmatprep.mubr.msk.bf16.mxu1 %vm772_vm0, %v1340_v18 }
 0x315   : > { %v1756_v14 = vpop.permute.xlu1 %1755 }
 0x318   : > { %v1754_v12 = vpop.permute.xlu0 %1753 }
 0x319   : > { %4156 = vmatmul.mubr.msk.bf16.gmra.mrb[28].mxu1 %vm772_vm0, %v1342_v8  ;;  %4159 = vmatprep.subr.bf16.mxu0 %v1754_v12  ;;  %v1760_v21 = vpop.permute.xlu1 %1759 }
 0x31a   : > { %4160 = vmatpush3.bf16.msra.mxu0 %v1754_v12 }
 0x31b   : > { %4161 = vmatprep.subr.bf16.mxu0 %v1756_v14 }
 0x31d   : > { %v1764_v25 = vpop.permute.xlu1 %1763 }
 0x31e   : > { %4162 = vmatpush3.bf16.msra.mxu0 %v1756_v14 }
 0x32c   : > { %v1768_v27 = vpop.permute.xlu1 %1767 }
 0x33c   : > { %v5453_v42 = vpop.permute.xlu1 %2028 }
 0x363   : > { %v1758_v20 = vpop.permute.xlu0 %1757 }
 0x364   : > { %4163 = vmatprep.subr.bf16.mxu0 %v1758_v20 }
 0x365   : > { %4164 = vmatpush3.bf16.msra.mxu0 %v1758_v20 }
 0x366   : > { %4165 = vmatprep.subr.bf16.mxu0 %v1760_v21 }
 0x367   : > { %v1762_v23 = vpop.permute.xlu0 %1761 }
 0x369   : > { %4166 = vmatpush3.bf16.msra.mxu0 %v1760_v21 }
 0x36a   : > { %4167 = vmatprep.subr.bf16.mxu0 %v1762_v23 }
 0x36b   : > { %v1766_v26 = vpop.permute.xlu0 %1765 }
 0x36d   : > { %4168 = vmatpush3.bf16.msra.mxu0 %v1762_v23 }
 0x36e   : > { %4169 = vmatprep.subr.bf16.mxu0 %v1764_v25 }
 0x36f   : > { %v5373_v28 = vpop.permute.xlu0 %2026 }
 0x371   : > { %4170 = vmatpush3.bf16.msra.mxu0 %v1764_v25  ;;  %v4512_v25 = vld [vmem:[%s5086_s27 + $0x28] sm:$0xff]  }
 0x372   : > { %4171 = vmatprep.subr.bf16.mxu0 %v1766_v26 }
 0x375   : > { %4172 = vmatpush3.bf16.msra.mxu0 %v1766_v26  ;;  %v4513_v26 = vld [vmem:[%s5086_s27 + $0x20] sm:$0xff]  }
 0x376   : > { %4173 = vmatprep.subr.bf16.mxu0 %v1768_v27 }
 0x379   : > { %4174 = vmatpush3.bf16.msra.mxu0 %v1768_v27 }
 0x37a   : > { %4383 = vmatprep.subr.msk.bf16.mxu0 %vm772_vm0, %v5373_v28 }
 0x37b   : > { %v5361_v10 = vpop.f32.mrb[0].mxu1 }
 0x37c   : > { %6298 = vst [vmem:[#allocation8_spill] sm:$0xff] %v5361_v10  ;;  %v5363_v11 = vpop.f32.mrb[1].mxu1 }
 0x37d   : > { %6299 = vst [vmem:[#allocation9_spill] sm:$0xff] %v5363_v11  ;;  %v5365_v13 = vpop.f32.mrb[2].mxu1 }
 0x37e   : > { %6300 = vst [vmem:[#allocation10_spill] sm:$0xff] %v5365_v13  ;;  %v5369_v16 = vpop.f32.mrb[3].mxu1 }
 0x37f   : > { %6301 = vst [vmem:[#allocation11_spill] sm:$0xff] %v5369_v16 }
 0x3b4   : > { %v5377_v29 = vpop.f32.mrb[4].mxu1 }
 0x3b5   : > { %6302 = vst [vmem:[#allocation12_spill] sm:$0xff] %v5377_v29  ;;  %v5379_v33 = vpop.f32.mrb[5].mxu1 }
 0x3b6   : > { %6303 = vst [vmem:[#allocation13_spill] sm:$0xff] %v5379_v33  ;;  %v5381_v19 = vpop.f32.mrb[6].mxu1 }
 0x3b7   : > { %6304 = vst [vmem:[#allocation14_spill] sm:$0xff] %v5381_v19  ;;  %v5385_v30 = vpop.f32.mrb[7].mxu1 }
 0x3b8   : > { %6305 = vst [vmem:[#allocation15_spill] sm:$0xff] %v5385_v30 }
 0x3c4   : > { %v5389_v43 = vpop.f32.mrb[8].mxu1 }
 0x3c5   : > { %6306 = vst [vmem:[#allocation16_spill] sm:$0xff] %v5389_v43  ;;  %v5391_v22 = vpop.f32.mrb[9].mxu1 }
 0x3c6   : > { %6307 = vst [vmem:[#allocation17_spill] sm:$0xff] %v5391_v22  ;;  %v5393_v44 = vpop.f32.mrb[10].mxu1 }
 0x3c7   : > { %6308 = vst [vmem:[#allocation18_spill] sm:$0xff] %v5393_v44  ;;  %v5397_v46 = vpop.f32.mrb[11].mxu1 }
 0x3c8   : > { %6309 = vst [vmem:[#allocation19_spill] sm:$0xff] %v5397_v46 }
 0x3cc   : > { %v5401_v32 = vpop.f32.mrb[12].mxu1 }
 0x3cd   : > { %6310 = vst [vmem:[#allocation20_spill] sm:$0xff] %v5401_v32  ;;  %v5403_v31 = vpop.f32.mrb[13].mxu1 }
 0x3ce   : > { %6311 = vst [vmem:[#allocation21_spill] sm:$0xff] %v5403_v31  ;;  %v5405_v48 = vpop.f32.mrb[14].mxu1 }
 0x3cf   : > { %6312 = vst [vmem:[#allocation22_spill] sm:$0xff] %v5405_v48  ;;  %v5409_v54 = vpop.f32.mrb[15].mxu1 }
 0x3d0   : > { %6313 = vst [vmem:[#allocation23_spill] sm:$0xff] %v5409_v54 }
 0x3d4   : > { %v4145_v56 = vpop.f32.mrb[16].mxu1 }
 0x3d5   : > { %1548 = vmax.xlane.f32.xlu0 %v4145_v56  ;;  %v1481_v57 = vpop.f32.mrb[17].mxu1 }
 0x3d6   : > { %v4146_v38 = vpop.f32.mrb[18].mxu1 }
 0x3d7   : > { %v1484_v58 = vpop.f32.mrb[19].mxu1 }
 0x3d8   : > { %1546 = vmax.xlane.f32.xlu1 %v1484_v58 }
 0x3d9   : > { %1544 = vmax.xlane.f32.xlu0 %v1481_v57 }
 0x3dc   : > { %v5413_v36 = vpop.f32.mrb[20].mxu1 }
 0x3dd   : > { %1550 = vmax.xlane.f32.xlu0 %v4146_v38  ;;  %v5415_v59 = vpop.f32.mrb[21].mxu1 }
 0x3de   : > { %v5417_v39 = vpop.f32.mrb[22].mxu1 }
 0x3df   : > { %1558 = vmax.xlane.f32.xlu1 %v5417_v39  ;;  %v5420_v60 = vpop.f32.mrb[23].mxu1 }
 0x3e1   : > { %1556 = vmax.xlane.f32.xlu0 %v5413_v36 }
 0x3e3   : > { %1554 = vmax.xlane.f32.xlu1 %v5420_v60 }
 0x3e4   : > { %v5424_v40 = vpop.f32.mrb[24].mxu1 }
 0x3e5   : > { %1552 = vmax.xlane.f32.xlu0 %v5415_v59  ;;  %v5427_v61 = vpop.f32.mrb[25].mxu1 }
 0x3e6   : > { %v5429_v34 = vpop.f32.mrb[26].mxu1 }
 0x3e7   : > { %1566 = vmax.xlane.f32.xlu1 %v5429_v34  ;;  %v5432_v62 = vpop.f32.mrb[27].mxu1 }
 0x3e9   : > { %1564 = vmax.xlane.f32.xlu0 %v5424_v40 }
 0x3eb   : > { %1562 = vmax.xlane.f32.xlu1 %v5432_v62 }
 0x3ec   : > { %v5436_v63 = vpop.f32.mrb[28].mxu1 }
 0x3ed   : > { %1560 = vmax.xlane.f32.xlu0 %v5427_v61  ;;  %v5439_v0 = vpop.f32.mrb[29].mxu1 }
 0x3ee   : > { %v5441_v41 = vpop.f32.mrb[30].mxu1 }
 0x3ef   : > { %v5443_v1 = vpop.f32.mrb[31].mxu1 }
 0x3f1   : > { %1572 = vmax.xlane.f32.xlu0 %v5436_v63 }
 0x3f5   : > { %1568 = vmax.xlane.f32.xlu0 %v5439_v0 }
 0x3fc   : > { %2032 = vrot.lane.b32.xlu1 %v4510_v2, %s4901_s14 }
 0x40b   : > { %2030 = vrot.lane.b32.xlu0 %v4511_v3, %s4901_s14 }
 0x420   : > { %1574 = vmax.xlane.f32.xlu1 %v5441_v41 }
 0x424   : > { %1570 = vmax.xlane.f32.xlu1 %v5443_v1 }
 0x462   : > { %v1549_v4 = vpop.xlane.xlu0 %1548 }
 0x463   : > { %v1578_v5 = vsub.f32 %v4145_v56, %v1549_v4 }
 0x465   : > { %v1596_v50 = vmul.f32 1.442695, %v1578_v5  ;;  %v1547_v6 = vpop.xlane.xlu1 %1546 }
 0x466   : > { %v1577_v7 = vsub.f32 %v1484_v58, %v1547_v6  ;;  %v1545_v51 = vpop.xlane.xlu0 %1544 }
 0x467   : > { %4628 = vpow2.f32 %v1596_v50  ;;  %v1576_v52 = vsub.f32 %v1481_v57, %v1545_v51 }
 0x468   : > { %v1594_v53 = vmul.f32 1.442695, %v1577_v7 }
 0x469   : > { %v1592_v18 = vmul.f32 1.442695, %v1576_v52 }
 0x46a   : > { %4630 = vpow2.f32 %v1594_v53  ;;  %v1551_v8 = vpop.xlane.xlu0 %1550 }
 0x46b   : > { %4632 = vpow2.f32 %v1592_v18  ;;  %v1579_v9 = vsub.f32 %v4146_v38, %v1551_v8 }
 0x46c   : > { %v1559_v56 = vpop.xlane.xlu1 %1558 }
 0x46d   : > { %v1598_v37 = vmul.f32 1.442695, %v1579_v9  ;;  %v1583_v7 = vsub.f32 %v5417_v39, %v1559_v56 }
 0x46e   : > { %v1557_v23 = vpop.xlane.xlu0 %1556 }
 0x46f   : > { %4634 = vpow2.f32 %v1598_v37  ;;  %v1582_v38 = vsub.f32 %v5413_v36, %v1557_v23  ;;  %v1606_v18 = vmul.f32 1.442695, %v1583_v7 }
 0x470   : > { %v1555_v58 = vpop.xlane.xlu1 %1554 }
 0x471   : > { %v5455_v12 = vpop.eup %4628  ;;  %v1604_v3 = vmul.f32 1.442695, %v1582_v38  ;;  %v1581_v5 = vsub.f32 %v5420_v60, %v1555_v58 }
 0x472   : > { %1628 = vadd.xlane.f32.xlu1 %v5455_v12  ;;  %v1553_v27 = vpop.xlane.xlu0 %1552 }
 0x473   : > { %v1580_v4 = vsub.f32 %v5415_v59, %v1553_v27  ;;  %4636 = vpow2.f32 %v1604_v3  ;;  %v1602_v52 = vmul.f32 1.442695, %v1581_v5 }
 0x474   : > { %v5458_v14 = vpop.eup %4630  ;;  %v1567_v50 = vpop.xlane.xlu1 %1566 }
 0x475   : > { %v5460_v20 = vpop.eup %4632  ;;  %1626 = vadd.xlane.f32.xlu0 %v5458_v14  ;;  %v1600_v51 = vmul.f32 1.442695, %v1580_v4  ;;  %v1587_v39 = vsub.f32 %v5429_v34, %v1567_v50 }
 0x476   : > { %1624 = vadd.xlane.f32.xlu1 %v5460_v20  ;;  %v1565_v57 = vpop.xlane.xlu0 %1564 }
 0x477   : > { %v1586_v53 = vsub.f32 %v5424_v40, %v1565_v57  ;;  %4638 = vpow2.f32 %v1600_v51  ;;  %v1614_v27 = vmul.f32 1.442695, %v1587_v39  ;;  %v4523_v39 = vld [vmem:[%s5096_s28 + $0x38] sm:$0xff]  }
 0x478   : > { %v1563_v8 = vpop.xlane.xlu1 %1562  ;;  %4640 = vpow2.f32 %v1602_v52 }
 0x479   : > { %v5464_v21 = vpop.eup %4634  ;;  %v1612_v9 = vmul.f32 1.442695, %v1586_v53  ;;  %4642 = vpow2.f32 %v1606_v18  ;;  %v4514_v53 = vld [vmem:[%s5086_s27 + $0x30] sm:$0xff]   ;;  %v4515_v18 = vld [vmem:[%s5086_s27 + $0x38] sm:$0xff]  }
 0x47a   : > { %1630 = vadd.xlane.f32.xlu1 %v5464_v21  ;;  %v1561_v2 = vpop.xlane.xlu0 %1560 }
 0x47b   : > { %v1584_v59 = vsub.f32 %v5427_v61, %v1561_v2  ;;  %4644 = vpow2.f32 %v1612_v9  ;;  %v1585_v61 = vsub.f32 %v5432_v62, %v1563_v8  ;;  %v4516_v8 = vld [vmem:[%s5096_s28] sm:$0xff]   ;;  %v4518_v9 = vld [vmem:[%s5096_s28 + $0x10] sm:$0xff]  }
 0x47c   : > { %v5482_v40 = vpop.permute.xlu1 %2032 }
 0x47d   : > { %v1610_v38 = vmul.f32 1.442695, %v1585_v61 }
 0x47e   : > { %v1573_v6 = vpop.xlane.xlu0 %1572 }
 0x47f   : > { %v1590_v36 = vsub.f32 %v5436_v63, %v1573_v6 }
 0x481   : > { %v1620_v60 = vmul.f32 1.442695, %v1590_v36  ;;  %v4517_v36 = vld [vmem:[%s5096_s28 + $0x8] sm:$0xff]  }
 0x482   : > { %v1569_v37 = vpop.xlane.xlu0 %1568 }
 0x483   : > { %v1588_v23 = vsub.f32 %v5439_v0, %v1569_v37  ;;  %4646 = vpow2.f32 %v1620_v60  ;;  %v4520_v37 = vld [vmem:[%s5096_s28 + $0x20] sm:$0xff]   ;;  %v4521_v60 = vld [vmem:[%s5096_s28 + $0x28] sm:$0xff]  }
 0x485   : > { %v1616_v63 = vmul.f32 1.442695, %v1588_v23  ;;  %v4522_v23 = vld [vmem:[%s5096_s28 + $0x30] sm:$0xff]  }
 0x48b   : > { %2036 = vrot.lane.b32.xlu1 %v4512_v25, %s4901_s14  ;;  %2034 = vrot.lane.b32.xlu0 %v4513_v26, %s4901_s14  ;;  %v1608_v25 = vmul.f32 1.442695, %v1584_v59  ;;  %v5480_v26 = vpop.eup %4636  ;;  %v4519_v59 = vld [vmem:[%s5096_s28 + $0x18] sm:$0xff]  }
 0x48c   : > { %v5486_v56 = vpop.eup %4638 }
 0x48d   : > { %4648 = vpow2.f32 %v1608_v25  ;;  %v5488_v0 = vpop.eup %4640  ;;  %v2031_v25 = vpop.permute.xlu0 %2030 }
 0x48e   : > { %4650 = vpow2.f32 %v1616_v63  ;;  %v5493_v2 = vpop.eup %4642 }
 0x48f   : > { %4652 = vpow2.f32 %v1614_v27  ;;  %v5495_v62 = vpop.eup %4644 }
 0x490   : > { %v5500_v5 = vpop.eup %4646 }
 0x497   : > { %v5502_v50 = vpop.eup %4648 }
 0x4aa   : > { %1636 = vadd.xlane.f32.xlu0 %v5480_v26 }
 0x4ad   : > { %v1575_v57 = vpop.xlane.xlu1 %1574 }
 0x4ae   : > { %v1591_v34 = vsub.f32 %v5441_v41, %v1575_v57  ;;  %1632 = vadd.xlane.f32.xlu0 %v5486_v56 }
 0x4af   : > { %1634 = vadd.xlane.f32.xlu1 %v5488_v0 }
 0x4b0   : > { %v1622_v58 = vmul.f32 1.442695, %v1591_v34 }
 0x4b1   : > { %v1571_v3 = vpop.xlane.xlu1 %1570 }
 0x4b2   : > { %4654 = vpow2.f32 %v1622_v58  ;;  %v1589_v4 = vsub.f32 %v5443_v1, %v1571_v3  ;;  %1638 = vadd.xlane.f32.xlu0 %v5493_v2  ;;  %v5506_v1 = vpop.eup %4650 }
 0x4b3   : > { %1644 = vadd.xlane.f32.xlu1 %v5495_v62  ;;  %4656 = vpow2.f32 %v1610_v38  ;;  %v5508_v6 = vpop.eup %4652 }
 0x4b4   : > { %v1618_v41 = vmul.f32 1.442695, %v1589_v4 }
 0x4b6   : > { %1652 = vadd.xlane.f32.xlu0 %v5500_v5  ;;  %4658 = vpow2.f32 %v1618_v41 }
 0x4b7   : > { %1640 = vadd.xlane.f32.xlu1 %v5502_v50 }
 0x4ba   : > { %1648 = vadd.xlane.f32.xlu0 %v5506_v1 }
 0x4bb   : > { %1646 = vadd.xlane.f32.xlu1 %v5508_v6 }
 0x4bc   : > { %v5512_v7 = vpop.eup %4654 }
 0x4bd   : > { %v5514_v51 = vpop.eup %4656 }
 0x4be   : > { %1654 = vadd.xlane.f32.xlu0 %v5512_v7 }
 0x4bf   : > { %1642 = vadd.xlane.f32.xlu1 %v5514_v51 }
 0x4c0   : > { %v5518_v52 = vpop.eup %4658 }
 0x4c3   : > { %1650 = vadd.xlane.f32.xlu1 %v5518_v52 }
 0x4d4   : > { %2038 = vrot.lane.b32.xlu0 %v4514_v53, %s4901_s14  ;;  %2040 = vrot.lane.b32.xlu1 %v4515_v18, %s4901_s14 }
 0x4d8   : > { %1970 = vrot.lane.b32.xlu0 %v4516_v8, %s4901_s14  ;;  %1972 = vrot.lane.b32.xlu1 %v4517_v36, %s4901_s14 }
 0x4dc   : > { %1974 = vrot.lane.b32.xlu0 %v4518_v9, %s4901_s14  ;;  %1976 = vrot.lane.b32.xlu1 %v4519_v59, %s4901_s14 }
 0x4e0   : > { %1978 = vrot.lane.b32.xlu0 %v4520_v37, %s4901_s14  ;;  %1980 = vrot.lane.b32.xlu1 %v4521_v60, %s4901_s14 }
 0x4e4   : > { %1982 = vrot.lane.b32.xlu0 %v4522_v23, %s4901_s14  ;;  %1984 = vrot.lane.b32.xlu1 %v4523_v39, %s4901_s14 }
 0x4ff   : > { %v1629_v63 = vpop.xlane.xlu1 %1628 }
 0x500   : > { %4660 = vrcp.f32 %v1629_v63 }
 0x502   : > { %v1627_v27 = vpop.xlane.xlu0 %1626 }
 0x503   : > { %4662 = vrcp.f32 %v1627_v27  ;;  %v1625_v61 = vpop.xlane.xlu1 %1624 }
 0x504   : > { %4664 = vrcp.f32 %v1625_v61 }
 0x507   : > { %v1631_v57 = vpop.xlane.xlu1 %1630 }
 0x508   : > { %4666 = vrcp.f32 %v1631_v57 }
 0x50a   : > { %v4661_v34 = vpop.eup %4660 }
 0x50b   : > { %v1674_v38 = vmul.f32 %v4661_v34, %v5455_v12  ;;  %v2067_v12 = vsel %vm772_vm0, %v5373_v28, 0  ;;  %v2035_v28 = vpop.permute.xlu0 %2034 }
 0x50c   : > { %v2079_v59 = vsel %vm772_vm0, %v2035_v28, 0 }
 0x50d   : > { %v4663_v58 = vpop.eup %4662  ;;  %3785 = vst [vmem:[%s5280_s13 + $0x90] sm:$0xff] %v1674_v38 }
 0x50e   : > { %v4665_v3 = vpop.eup %4664  ;;  %v1673_v4 = vmul.f32 %v4663_v58, %v5458_v14  ;;  %v2070_v14 = vsel %vm772_vm0, %v5453_v42, 0 }
 0x50f   : > { %v1672_v41 = vmul.f32 %v4665_v3, %v5460_v20  ;;  %v2073_v20 = vsel %vm772_vm0, %v2031_v25, 0 }
 0x510   : > { %3784 = vst [vmem:[%s5280_s13 + $0x88] sm:$0xff] %v1673_v4 }
 0x511   : > { %3783 = vst [vmem:[%s5280_s13 + $0x80] sm:$0xff] %v1672_v41  ;;  %v1705_v53 = vpack.c.bf16 %v1673_v4, %v1672_v41 }
 0x512   : > { %v4667_v18 = vpop.eup %4666 }
 0x513   : > { %v1675_v8 = vmul.f32 %v4667_v18, %v5464_v21  ;;  %4175 = vmatprep.mubr.bf16.mxu0 %v1705_v53  ;;  %v2076_v21 = vsel %vm772_vm0, %v5482_v40, 0 }
 0x515   : > { %3786 = vst [vmem:[%s5280_s13 + $0x98] sm:$0xff] %v1675_v8  ;;  %v1706_v36 = vpack.c.bf16 %v1675_v8, %v1674_v38 }
 0x517   : > { %4176 = vmatmul.mubr.bf16.vlgmr.msra.gmra.mrb[16].mxu0 %v1706_v36 }
 0x518   : > { %4192 = vmatpush3.bf16.xpose.msra.mxu0 %v2067_v12 }
 0x519   : > { %4384 = vmatprep.subr.msk.bf16.mxu0 %vm772_vm0, %v5453_v42  ;;  %v2037_v42 = vpop.permute.xlu1 %2036 }
 0x520   : > { %4194 = vmatpush3.bf16.xpose.msra.mxu0 %v2070_v14 }
 0x521   : > { %4385 = vmatprep.subr.msk.bf16.mxu0 %vm772_vm0, %v2031_v25 }
 0x528   : > { %4196 = vmatpush3.bf16.xpose.msra.mxu0 %v2073_v20 }
 0x529   : > { %4386 = vmatprep.subr.msk.bf16.mxu0 %vm772_vm0, %v5482_v40  ;;  %v2082_v40 = vsel %vm772_vm0, %v2037_v42, 0 }
 0x530   : > { %4198 = vmatpush3.bf16.xpose.msra.mxu0 %v2076_v21 }
 0x531   : > { %4387 = vmatprep.subr.msk.bf16.mxu0 %vm772_vm0, %v2035_v28 }
 0x537   : > { %v1637_v9 = vpop.xlane.xlu0 %1636 }
 0x538   : > { %4668 = vrcp.f32 %v1637_v9  ;;  %4200 = vmatpush3.bf16.xpose.msra.mxu0 %v2079_v59 }
 0x539   : > { %4388 = vmatprep.subr.msk.bf16.mxu0 %vm772_vm0, %v2037_v42 }
 0x53b   : > { %v1633_v37 = vpop.xlane.xlu0 %1632 }
 0x53c   : > { %4670 = vrcp.f32 %v1633_v37  ;;  %v1635_v60 = vpop.xlane.xlu1 %1634 }
 0x53d   : > { %4672 = vrcp.f32 %v1635_v60 }
 0x53f   : > { %v1639_v23 = vpop.xlane.xlu0 %1638 }
 0x540   : > { %4674 = vrcp.f32 %v1639_v23  ;;  %4202 = vmatpush3.bf16.xpose.msra.mxu0 %v2082_v40  ;;  %v1645_v39 = vpop.xlane.xlu1 %1644 }
 0x541   : > { %4676 = vrcp.f32 %v1645_v39 }
 0x542   : > { %v4669_v25 = vpop.eup %4668 }
 0x543   : > { %v1653_v63 = vpop.xlane.xlu0 %1652  ;;  %v1678_v27 = vmul.f32 %v4669_v25, %v5480_v26 }
 0x544   : > { %4678 = vrcp.f32 %v1653_v63  ;;  %v1641_v61 = vpop.xlane.xlu1 %1640 }
 0x545   : > { %4680 = vrcp.f32 %v1641_v61  ;;  %3789 = vst [vmem:[%s5280_s13 + $0xb0] sm:$0xff] %v1678_v27 }
 0x546   : > { %v4671_v57 = vpop.eup %4670 }
 0x547   : > { %v4673_v34 = vpop.eup %4672  ;;  %v1649_v38 = vpop.xlane.xlu0 %1648  ;;  %v1676_v58 = vmul.f32 %v4671_v57, %v5486_v56 }
 0x548   : > { %4682 = vrcp.f32 %v1649_v38  ;;  %v1647_v3 = vpop.xlane.xlu1 %1646  ;;  %v1677_v4 = vmul.f32 %v4673_v34, %v5488_v0  ;;  %v4525_v34 = vld [vmem:[%s5136_s9 + $0x8] sm:$0xff]   ;;  %v4526_v38 = vld [vmem:[%s5136_s9 + $0x10] sm:$0xff]  }
 0x549   : > { %4684 = vrcp.f32 %v1647_v3  ;;  %3787 = vst [vmem:[%s5280_s13 + $0xa0] sm:$0xff] %v1676_v58  ;;  %2398 = vrot.lane.b32.xlu1 %v4525_v34, %s4901_s14 }
 0x54a   : > { %v4675_v41 = vpop.eup %4674  ;;  %3788 = vst [vmem:[%s5280_s13 + $0xa8] sm:$0xff] %v1677_v4  ;;  %v1707_v26 = vpack.c.bf16 %v1677_v4, %v1676_v58  ;;  %v4527_v58 = vld [vmem:[%s5136_s9 + $0x18] sm:$0xff]  }
 0x54b   : > { %v4677_v53 = vpop.eup %4676  ;;  %v1655_v18 = vpop.xlane.xlu0 %1654  ;;  %v1679_v8 = vmul.f32 %v4675_v41, %v5493_v2  ;;  %v4528_v41 = vld [vmem:[%s5136_s9 + $0x20] sm:$0xff]  }
 0x54c   : > { %4686 = vrcp.f32 %v1655_v18  ;;  %4179 = vmatprep.mubr.bf16.mxu0 %v1707_v26  ;;  %v1643_v36 = vpop.xlane.xlu1 %1642  ;;  %v1682_v56 = vmul.f32 %v4677_v53, %v5495_v62  ;;  %v4529_v26 = vld [vmem:[%s5136_s9 + $0x28] sm:$0xff]   ;;  %v4530_v53 = vld [vmem:[%s5136_s9 + $0x30] sm:$0xff]   ;;  %v4531_v18 = vld [vmem:[%s5136_s9 + $0x38] sm:$0xff]  }
 0x54d   : > { %4688 = vrcp.f32 %v1643_v36  ;;  %3790 = vst [vmem:[%s5280_s13 + $0xb8] sm:$0xff] %v1679_v8  ;;  %v1708_v0 = vpack.c.bf16 %v1679_v8, %v1678_v27  ;;  %2402 = vrot.lane.b32.xlu1 %v4527_v58, %s4901_s14 }
 0x54e   : > { %v4679_v12 = vpop.eup %4678  ;;  %3793 = vst [vmem:[%s5280_s13 + $0xd0] sm:$0xff] %v1682_v56 }
 0x54f   : > { %v4681_v14 = vpop.eup %4680  ;;  %4180 = vmatmul.mubr.bf16.gmra.mrb[20].mxu0 %v1708_v0  ;;  %v2039_v20 = vpop.permute.xlu0 %2038  ;;  %v1686_v21 = vmul.f32 %v4679_v12, %v5500_v5  ;;  %v4533_v0 = vld [vmem:[%s5086_s27] sm:$0xff]  }
 0x550   : > { %v1651_v28 = vpop.xlane.xlu1 %1650  ;;  %v1680_v2 = vmul.f32 %v4681_v14, %v5502_v50  ;;  %4389 = vmatprep.subr.msk.bf16.mxu0 %vm772_vm0, %v2039_v20  ;;  %v2085_v62 = vsel %vm772_vm0, %v2039_v20, 0 }
 0x551   : > { %4690 = vrcp.f32 %v1651_v28  ;;  %4204 = vmatpush3.bf16.xpose.msra.mxu0 %v2085_v62  ;;  %3797 = vst [vmem:[%s5280_s13 + $0xf0] sm:$0xff] %v1686_v21  ;;  %2406 = vrot.lane.b32.xlu1 %v4529_v26, %s4901_s14 }
 0x552   : > { %v4683_v9 = vpop.eup %4682  ;;  %3791 = vst [vmem:[%s5280_s13 + $0xc0] sm:$0xff] %v1680_v2 }
 0x553   : > { %v4685_v59 = vpop.eup %4684  ;;  %v1684_v42 = vmul.f32 %v4683_v9, %v5506_v1  ;;  %v1971_v61 = vpop.permute.xlu0 %1970 }
 0x554   : > { %v1683_v5 = vmul.f32 %v4685_v59, %v5508_v6  ;;  %v2041_v37 = vpop.permute.xlu1 %2040 }
 0x555   : > { %3795 = vst [vmem:[%s5280_s13 + $0xe0] sm:$0xff] %v1684_v42  ;;  %4390 = vmatprep.subr.msk.bf16.mxu0 %vm772_vm0, %v2041_v37  ;;  %v2088_v60 = vsel %vm772_vm0, %v2041_v37, 0  ;;  %2410 = vrot.lane.b32.xlu1 %v4531_v18, %s4901_s14 }
 0x556   : > { %v4687_v50 = vpop.eup %4686  ;;  %3794 = vst [vmem:[%s5280_s13 + $0xd8] sm:$0xff] %v1683_v5  ;;  %v1710_v6 = vpack.c.bf16 %v1683_v5, %v1682_v56  ;;  %v4532_v56 = vld [vmem:[%s5086_s27 + $0x8] sm:$0xff]  }
 0x557   : > { %v4689_v23 = vpop.eup %4688  ;;  %v1687_v40 = vmul.f32 %v4687_v50, %v5512_v7  ;;  %v1975_v57 = vpop.permute.xlu0 %1974 }
 0x558   : > { %v1681_v39 = vmul.f32 %v4689_v23, %v5514_v51  ;;  %v1973_v51 = vpop.permute.xlu1 %1972 }
 0x559   : > { %3798 = vst [vmem:[%s5280_s13 + $0xf8] sm:$0xff] %v1687_v40  ;;  %4206 = vmatpush3.bf16.xpose.msra.mxu0 %v2088_v60  ;;  %v1712_v7 = vpack.c.bf16 %v1687_v40, %v1686_v21  ;;  %2671 = vrot.lane.b32.xlu1 %v4532_v56, %s4902_s15 }
 0x55a   : > { %3792 = vst [vmem:[%s5280_s13 + $0xc8] sm:$0xff] %v1681_v39  ;;  %v1709_v1 = vpack.c.bf16 %v1681_v39, %v1680_v2 }
 0x55b   : > { %v4691_v25 = vpop.eup %4690  ;;  %v1979_v4 = vpop.permute.xlu0 %1978 }
 0x55c   : > { %4183 = vmatprep.mubr.bf16.mxu0 %v1709_v1  ;;  %v1685_v63 = vmul.f32 %v4691_v25, %v5518_v52  ;;  %v4524_v52 = vld [vmem:[%s5136_s9] sm:$0xff]   ;;  %v1977_v3 = vpop.permute.xlu1 %1976 }
 0x55d   : > { %4184 = vmatmul.mubr.bf16.gmra.mrb[24].mxu0 %v1710_v6  ;;  %2396 = vrot.lane.b32.xlu0 %v4524_v52, %s4901_s14 }
 0x55e   : > { %3796 = vst [vmem:[%s5280_s13 + $0xe8] sm:$0xff] %v1685_v63  ;;  %v1711_v27 = vpack.c.bf16 %v1685_v63, %v1684_v42 }
 0x55f   : > { %v1983_v36 = vpop.permute.xlu0 %1982 }
 0x560   : > { %4187 = vmatprep.mubr.bf16.mxu0 %v1711_v27  ;;  %v1981_v8 = vpop.permute.xlu1 %1980 }
 0x561   : > { %2400 = vrot.lane.b32.xlu0 %v4526_v38, %s4901_s14 }
 0x564   : > { %v1985_v12 = vpop.permute.xlu1 %1984 }
 0x565   : > { %4188 = vmatmul.mubr.bf16.gmra.mrb[28].mxu0 %v1712_v7  ;;  %2404 = vrot.lane.b32.xlu0 %v4528_v41, %s4901_s14 }
 0x566   : > { %4207 = vmatprep.mubr.msk.bf16.mxu0 %vm772_vm0, %v1971_v61 }
 0x569   : > { %2408 = vrot.lane.b32.xlu0 %v4530_v53, %s4901_s14 }
 0x56d   : > { %4208 = vmatmul.mubr.msk.bf16.vlgmr.msra.gmra.mrb[32].mxu0 %vm772_vm0, %v1973_v51  ;;  %2669 = vrot.lane.b32.xlu0 %v4533_v0, %s4902_s15 }
 0x56e   : > { %4211 = vmatprep.mubr.msk.bf16.mxu0 %vm772_vm0, %v1975_v57 }
 0x575   : > { %4212 = vmatmul.mubr.msk.bf16.gmra.mrb[36].mxu0 %vm772_vm0, %v1977_v3 }
 0x576   : > { %4215 = vmatprep.mubr.msk.bf16.mxu0 %vm772_vm0, %v1979_v4 }
 0x57d   : > { %4216 = vmatmul.mubr.msk.bf16.gmra.mrb[40].mxu0 %vm772_vm0, %v1981_v8 }
 0x57e   : > { %4219 = vmatprep.mubr.msk.bf16.mxu0 %vm772_vm0, %v1983_v36 }
 0x585   : > { %4220 = vmatmul.mubr.msk.bf16.gmra.mrb[44].mxu0 %vm772_vm0, %v1985_v12 }
 0x5bb   : > { %v2399_v20 = vpop.permute.xlu1 %2398 }
 0x5bf   : > { %v2403_v5 = vpop.permute.xlu1 %2402 }
 0x5c3   : > { %v2407_v50 = vpop.permute.xlu1 %2406 }
 0x5c7   : > { %v2411_v23 = vpop.permute.xlu1 %2410 }
 0x5cb   : > { %v5713_v47 = vpop.permute.xlu1 %2671 }
 0x5cf   : > { %v2397_v14 = vpop.permute.xlu0 %2396 }
 0x5d0   : > { %4223 = vmatprep.subr.bf16.mxu1 %v2397_v14 }
 0x5d1   : > { %4224 = vmatpush3.bf16.msra.mxu1 %v2397_v14 }
 0x5d2   : > { %4225 = vmatprep.subr.bf16.mxu1 %v2399_v20 }
 0x5d3   : > { %v2401_v62 = vpop.permute.xlu0 %2400 }
 0x5d5   : > { %4226 = vmatpush3.bf16.msra.mxu1 %v2399_v20 }
 0x5d6   : > { %4227 = vmatprep.subr.bf16.mxu1 %v2401_v62 }
 0x5d7   : > { %v2405_v37 = vpop.permute.xlu0 %2404 }
 0x5d9   : > { %4228 = vmatpush3.bf16.msra.mxu1 %v2401_v62 }
 0x5da   : > { %4229 = vmatprep.subr.bf16.mxu1 %v2403_v5 }
 0x5db   : > { %v2409_v60 = vpop.permute.xlu0 %2408 }
 0x5dd   : > { %4230 = vmatpush3.bf16.msra.mxu1 %v2403_v5 }
 0x5de   : > { %4231 = vmatprep.subr.bf16.mxu1 %v2405_v37 }
 0x5df   : > { %v5633_v40 = vpop.permute.xlu0 %2669 }
 0x5e1   : > { %4232 = vmatpush3.bf16.msra.mxu1 %v2405_v37 }
 0x5e2   : > { %4233 = vmatprep.subr.bf16.mxu1 %v2407_v50 }
 0x5e5   : > { %4234 = vmatpush3.bf16.msra.mxu1 %v2407_v50 }
 0x5e6   : > { %4235 = vmatprep.subr.bf16.mxu1 %v2409_v60 }
 0x5e9   : > { %4236 = vmatpush3.bf16.msra.mxu1 %v2409_v60 }
 0x5ea   : > { %v5621_v21 = vpop.f32.mrb[16].mxu0  ;;  %4237 = vmatprep.subr.bf16.mxu1 %v2411_v23 }
 0x5eb   : > { %v5623_v28 = vpop.f32.mrb[17].mxu0 }
 0x5ec   : > { %v5625_v2 = vpop.f32.mrb[18].mxu0 }
 0x5ed   : > { %v5629_v59 = vpop.f32.mrb[19].mxu0  ;;  %4238 = vmatpush3.bf16.msra.mxu1 %v2411_v23 }
 0x5ee   : > { %4391 = vmatprep.subr.msk.bf16.mxu1 %vm772_vm0, %v5633_v40 }
 0x622   : > { %v5637_v39 = vpop.f32.mrb[20].mxu0 }
 0x623   : > { %v5639_v1 = vpop.f32.mrb[21].mxu0 }
 0x624   : > { %v5641_v25 = vpop.f32.mrb[22].mxu0 }
 0x625   : > { %v5645_v63 = vpop.f32.mrb[23].mxu0 }
 0x630   : > { %v5649_v7 = vpop.f32.mrb[24].mxu0 }
 0x631   : > { %v5651_v61 = vpop.f32.mrb[25].mxu0 }
 0x632   : > { %v5653_v51 = vpop.f32.mrb[26].mxu0 }
 0x633   : > { %v5657_v52 = vpop.f32.mrb[27].mxu0 }
 0x638   : > { %v5661_v38 = vpop.f32.mrb[28].mxu0 }
 0x639   : > { %v5663_v58 = vpop.f32.mrb[29].mxu0 }
 0x63a   : > { %v5665_v3 = vpop.f32.mrb[30].mxu0 }
 0x63b   : > { %v5669_v41 = vpop.f32.mrb[31].mxu0 }
 0x640   : > { %v4209_v53 = vpop.f32.mrb[32].mxu0 }
 0x641   : > { %2191 = vmax.xlane.f32.xlu0 %v4209_v53  ;;  %v2124_v18 = vpop.f32.mrb[33].mxu0 }
 0x642   : > { %v4210_v8 = vpop.f32.mrb[34].mxu0 }
 0x643   : > { %v2127_v36 = vpop.f32.mrb[35].mxu0 }
 0x644   : > { %2189 = vmax.xlane.f32.xlu1 %v2127_v36 }
 0x645   : > { %2187 = vmax.xlane.f32.xlu0 %v2124_v18 }
 0x648   : > { %v5673_v56 = vpop.f32.mrb[36].mxu0 }
 0x649   : > { %2193 = vmax.xlane.f32.xlu0 %v4210_v8  ;;  %v5675_v0 = vpop.f32.mrb[37].mxu0 }
 0x64a   : > { %v5677_v12 = vpop.f32.mrb[38].mxu0 }
 0x64b   : > { %2201 = vmax.xlane.f32.xlu1 %v5677_v12  ;;  %v5680_v14 = vpop.f32.mrb[39].mxu0 }
 0x64d   : > { %2199 = vmax.xlane.f32.xlu0 %v5673_v56 }
 0x64f   : > { %2197 = vmax.xlane.f32.xlu1 %v5680_v14 }
 0x650   : > { %v5684_v20 = vpop.f32.mrb[40].mxu0 }
 0x651   : > { %2195 = vmax.xlane.f32.xlu0 %v5675_v0  ;;  %v5687_v62 = vpop.f32.mrb[41].mxu0 }
 0x652   : > { %v5689_v5 = vpop.f32.mrb[42].mxu0 }
 0x653   : > { %2209 = vmax.xlane.f32.xlu1 %v5689_v5  ;;  %v5692_v37 = vpop.f32.mrb[43].mxu0 }
 0x655   : > { %2207 = vmax.xlane.f32.xlu0 %v5684_v20 }
 0x657   : > { %2205 = vmax.xlane.f32.xlu1 %v5692_v37 }
 0x658   : > { %v5696_v50 = vpop.f32.mrb[44].mxu0 }
 0x659   : > { %2203 = vmax.xlane.f32.xlu0 %v5687_v62  ;;  %v5699_v60 = vpop.f32.mrb[45].mxu0 }
 0x65a   : > { %v5701_v23 = vpop.f32.mrb[46].mxu0 }
 0x65b   : > { %v5703_v49 = vpop.f32.mrb[47].mxu0 }
 0x65d   : > { %2215 = vmax.xlane.f32.xlu0 %v5696_v50 }
 0x661   : > { %2211 = vmax.xlane.f32.xlu0 %v5699_v60 }
 0x668   : > { %2675 = vrot.lane.b32.xlu1 %v4534_v55, %s4902_s15 }
 0x677   : > { %2673 = vrot.lane.b32.xlu0 %v4535_v45, %s4902_s15 }
 0x68c   : > { %2217 = vmax.xlane.f32.xlu1 %v5701_v23 }
 0x690   : > { %2213 = vmax.xlane.f32.xlu1 %v5703_v49 }
 0x6ce   : > { %v2192_v35 = vpop.xlane.xlu0 %2191 }
 0x6cf   : > { %v2221_v24 = vsub.f32 %v4209_v53, %v2192_v35 }
 0x6d1   : > { %v2239_v15 = vmul.f32 1.442695, %v2221_v24  ;;  %v2190_v17 = vpop.xlane.xlu1 %2189 }
 0x6d2   : > { %v2220_v6 = vsub.f32 %v2127_v36, %v2190_v17  ;;  %v2188_v27 = vpop.xlane.xlu0 %2187 }
 0x6d3   : > { %4692 = vpow2.f32 %v2239_v15  ;;  %v2219_v42 = vsub.f32 %v2124_v18, %v2188_v27 }
 0x6d4   : > { %v2237_v4 = vmul.f32 1.442695, %v2220_v6  ;;  %v4537_v6 = vld [vmem:[%s5086_s27 + $0x20] sm:$0xff]  }
 0x6d5   : > { %v2235_v26 = vmul.f32 1.442695, %v2219_v42  ;;  %v4536_v42 = vld [vmem:[%s5086_s27 + $0x28] sm:$0xff]  }
 0x6d6   : > { %4694 = vpow2.f32 %v2237_v4  ;;  %v2194_v45 = vpop.xlane.xlu0 %2193 }
 0x6d7   : > { %4696 = vpow2.f32 %v2235_v26  ;;  %v2222_v55 = vsub.f32 %v4210_v8, %v2194_v45 }
 0x6d9   : > { %v2241_v57 = vmul.f32 1.442695, %v2222_v55 }
 0x6da   : > { %v2200_v24 = vpop.xlane.xlu0 %2199 }
 0x6db   : > { %4698 = vpow2.f32 %v2241_v57  ;;  %v2202_v57 = vpop.xlane.xlu1 %2201  ;;  %v2225_v26 = vsub.f32 %v5673_v56, %v2200_v24 }
 0x6dc   : > { %v2226_v32 = vsub.f32 %v5677_v12, %v2202_v57 }
 0x6dd   : > { %v5715_v9 = vpop.eup %4692  ;;  %v2247_v8 = vmul.f32 1.442695, %v2225_v26 }
 0x6de   : > { %2271 = vadd.xlane.f32.xlu1 %v5715_v9  ;;  %v2196_v27 = vpop.xlane.xlu0 %2195  ;;  %v2249_v31 = vmul.f32 1.442695, %v2226_v32 }
 0x6df   : > { %v2198_v53 = vpop.xlane.xlu1 %2197  ;;  %v2223_v36 = vsub.f32 %v5675_v0, %v2196_v27  ;;  %4700 = vpow2.f32 %v2247_v8 }
 0x6e0   : > { %v5718_v35 = vpop.eup %4694  ;;  %v2224_v45 = vsub.f32 %v5680_v14, %v2198_v53 }
 0x6e1   : > { %v5720_v17 = vpop.eup %4696  ;;  %2269 = vadd.xlane.f32.xlu0 %v5718_v35 }
 0x6e2   : > { %2267 = vadd.xlane.f32.xlu1 %v5720_v17  ;;  %v2208_v4 = vpop.xlane.xlu0 %2207  ;;  %v2245_v48 = vmul.f32 1.442695, %v2224_v45 }
 0x6e3   : > { %v2210_v55 = vpop.xlane.xlu1 %2209 }
 0x6e4   : > { %v2230_v12 = vsub.f32 %v5689_v5, %v2210_v55 }
 0x6e5   : > { %v5724_v15 = vpop.eup %4698 }
 0x6e6   : > { %2273 = vadd.xlane.f32.xlu1 %v5724_v15  ;;  %v2204_v18 = vpop.xlane.xlu0 %2203 }
 0x6e7   : > { %v2206_v54 = vpop.xlane.xlu1 %2205  ;;  %v2227_v0 = vsub.f32 %v5687_v62, %v2204_v18 }
 0x6e9   : > { %v2251_v57 = vmul.f32 1.442695, %v2227_v0  ;;  %v5740_v53 = vpop.eup %4700  ;;  %v4539_v0 = vld [vmem:[%s5086_s27 + $0x38] sm:$0xff]  }
 0x6ea   : > { %v2216_v34 = vpop.xlane.xlu0 %2215 }
 0x6eb   : > { %v2233_v56 = vsub.f32 %v5696_v50, %v2216_v34  ;;  %v5742_v32 = vpop.permute.xlu1 %2675  ;;  %v2257_v34 = vmul.f32 1.442695, %v2230_v12  ;;  %v4543_v12 = vld [vmem:[%s5096_s28 + $0x18] sm:$0xff]  }
 0x6ed   : > { %v2263_v14 = vmul.f32 1.442695, %v2233_v56 }
 0x6ee   : > { %v2212_v27 = vpop.xlane.xlu0 %2211 }
 0x6ef   : > { %v2231_v26 = vsub.f32 %v5699_v60, %v2212_v27  ;;  %v4540_v27 = vld [vmem:[%s5096_s28] sm:$0xff]  }
 0x6f7   : > { %2679 = vrot.lane.b32.xlu1 %v4536_v42, %s4902_s15  ;;  %2677 = vrot.lane.b32.xlu0 %v4537_v6, %s4902_s15  ;;  %v2243_v42 = vmul.f32 1.442695, %v2223_v36  ;;  %v2229_v6 = vsub.f32 %v5684_v20, %v2208_v4  ;;  %v2228_v20 = vsub.f32 %v5692_v37, %v2206_v54 }
 0x6f9   : > { %4702 = vpow2.f32 %v2243_v42  ;;  %v2255_v24 = vmul.f32 1.442695, %v2229_v6  ;;  %v2253_v60 = vmul.f32 1.442695, %v2228_v20  ;;  %v4547_v20 = vld [vmem:[%s5096_s28 + $0x38] sm:$0xff]  }
 0x6fa   : > { %4704 = vpow2.f32 %v2245_v48  ;;  %v2259_v48 = vmul.f32 1.442695, %v2231_v26  ;;  %v4542_v26 = vld [vmem:[%s5096_s28 + $0x10] sm:$0xff]  }
 0x6fb   : > { %4706 = vpow2.f32 %v2249_v31 }
 0x6fc   : > { %4708 = vpow2.f32 %v2255_v24  ;;  %v4538_v24 = vld [vmem:[%s5086_s27 + $0x30] sm:$0xff]  }
 0x6fd   : > { %4710 = vpow2.f32 %v2263_v14  ;;  %v4541_v14 = vld [vmem:[%s5096_s28 + $0x8] sm:$0xff]  }
 0x6fe   : > { %4712 = vpow2.f32 %v2251_v57  ;;  %v4544_v57 = vld [vmem:[%s5096_s28 + $0x20] sm:$0xff]  }
 0x6ff   : > { %4714 = vpow2.f32 %v2259_v48  ;;  %v4545_v48 = vld [vmem:[%s5096_s28 + $0x28] sm:$0xff]  }
 0x700   : > { %4716 = vpow2.f32 %v2257_v34  ;;  %v4546_v34 = vld [vmem:[%s5096_s28 + $0x30] sm:$0xff]  }
 0x703   : > { %v5746_v31 = vpop.eup %4702 }
 0x704   : > { %v5748_v50 = vpop.eup %4704 }
 0x705   : > { %v5753_v18 = vpop.eup %4706 }
 0x706   : > { %v5755_v54 = vpop.eup %4708 }
 0x707   : > { %v5760_v36 = vpop.eup %4710 }
 0x708   : > { %v5762_v45 = vpop.eup %4712 }
 0x716   : > { %2279 = vadd.xlane.f32.xlu0 %v5740_v53 }
 0x719   : > { %v2218_v62 = vpop.xlane.xlu1 %2217 }
 0x71a   : > { %v2234_v5 = vsub.f32 %v5701_v23, %v2218_v62  ;;  %2275 = vadd.xlane.f32.xlu0 %v5746_v31  ;;  %v2674_v62 = vpop.permute.xlu0 %2673 }
 0x71b   : > { %2277 = vadd.xlane.f32.xlu1 %v5748_v50 }
 0x71c   : > { %v2265_v4 = vmul.f32 1.442695, %v2234_v5 }
 0x71d   : > { %v2214_v8 = vpop.xlane.xlu1 %2213 }
 0x71e   : > { %4718 = vpow2.f32 %v2265_v4  ;;  %v2232_v37 = vsub.f32 %v5703_v49, %v2214_v8  ;;  %2281 = vadd.xlane.f32.xlu0 %v5753_v18  ;;  %v5766_v49 = vpop.eup %4714 }
 0x71f   : > { %2287 = vadd.xlane.f32.xlu1 %v5755_v54  ;;  %4720 = vpow2.f32 %v2253_v60  ;;  %v5768_v55 = vpop.eup %4716 }
 0x720   : > { %v2261_v23 = vmul.f32 1.442695, %v2232_v37 }
 0x722   : > { %2295 = vadd.xlane.f32.xlu0 %v5760_v36  ;;  %4722 = vpow2.f32 %v2261_v23 }
 0x723   : > { %2283 = vadd.xlane.f32.xlu1 %v5762_v45 }
 0x726   : > { %2291 = vadd.xlane.f32.xlu0 %v5766_v49 }
 0x727   : > { %2289 = vadd.xlane.f32.xlu1 %v5768_v55 }
 0x728   : > { %v5772_v42 = vpop.eup %4718 }
 0x729   : > { %v5774_v6 = vpop.eup %4720 }
 0x72a   : > { %2297 = vadd.xlane.f32.xlu0 %v5772_v42 }
 0x72b   : > { %2285 = vadd.xlane.f32.xlu1 %v5774_v6 }
 0x72c   : > { %v5778_v56 = vpop.eup %4722 }
 0x72f   : > { %2293 = vadd.xlane.f32.xlu1 %v5778_v56 }
 0x740   : > { %2681 = vrot.lane.b32.xlu0 %v4538_v24, %s4902_s15  ;;  %2683 = vrot.lane.b32.xlu1 %v4539_v0, %s4902_s15 }
 0x744   : > { %2613 = vrot.lane.b32.xlu0 %v4540_v27, %s4902_s15  ;;  %2615 = vrot.lane.b32.xlu1 %v4541_v14, %s4902_s15 }
 0x748   : > { %2617 = vrot.lane.b32.xlu0 %v4542_v26, %s4902_s15  ;;  %2619 = vrot.lane.b32.xlu1 %v4543_v12, %s4902_s15 }
 0x74c   : > { %2621 = vrot.lane.b32.xlu0 %v4544_v57, %s4902_s15  ;;  %2623 = vrot.lane.b32.xlu1 %v4545_v48, %s4902_s15 }
 0x750   : > { %2625 = vrot.lane.b32.xlu0 %v4546_v34, %s4902_s15  ;;  %2627 = vrot.lane.b32.xlu1 %v4547_v20, %s4902_s15 }
 0x76b   : > { %v2272_v5 = vpop.xlane.xlu1 %2271 }
 0x76c   : > { %4724 = vrcp.f32 %v2272_v5 }
 0x76e   : > { %v2270_v60 = vpop.xlane.xlu0 %2269 }
 0x76f   : > { %4726 = vrcp.f32 %v2270_v60  ;;  %v2268_v4 = vpop.xlane.xlu1 %2267 }
 0x770   : > { %4728 = vrcp.f32 %v2268_v4 }
 0x773   : > { %v2274_v8 = vpop.xlane.xlu1 %2273 }
 0x774   : > { %4730 = vrcp.f32 %v2274_v8 }
 0x776   : > { %v4725_v37 = vpop.eup %4724 }
 0x777   : > { %v2317_v23 = vmul.f32 %v4725_v37, %v5715_v9  ;;  %v2710_v9 = vsel %vm772_vm0, %v5633_v40, 0  ;;  %v2678_v40 = vpop.permute.xlu0 %2677 }
 0x778   : > { %v2722_v34 = vsel %vm772_vm0, %v2678_v40, 0 }
 0x779   : > { %v4727_v24 = vpop.eup %4726  ;;  %3833 = vst [vmem:[%s5280_s13 + $0x110] sm:$0xff] %v2317_v23 }
 0x77a   : > { %v4729_v0 = vpop.eup %4728  ;;  %v2316_v27 = vmul.f32 %v4727_v24, %v5718_v35  ;;  %v2713_v35 = vsel %vm772_vm0, %v5713_v47, 0 }
 0x77b   : > { %v2315_v14 = vmul.f32 %v4729_v0, %v5720_v17  ;;  %v2716_v17 = vsel %vm772_vm0, %v2674_v62, 0 }
 0x77c   : > { %3832 = vst [vmem:[%s5280_s13 + $0x108] sm:$0xff] %v2316_v27 }
 0x77d   : > { %3831 = vst [vmem:[%s5280_s13 + $0x100] sm:$0xff] %v2315_v14  ;;  %v2348_v26 = vpack.c.bf16 %v2316_v27, %v2315_v14 }
 0x77e   : > { %v4731_v12 = vpop.eup %4730 }
 0x77f   : > { %v2318_v57 = vmul.f32 %v4731_v12, %v5724_v15  ;;  %4239 = vmatprep.mubr.bf16.mxu1 %v2348_v26  ;;  %v2719_v15 = vsel %vm772_vm0, %v5742_v32, 0 }
 0x781   : > { %3834 = vst [vmem:[%s5280_s13 + $0x118] sm:$0xff] %v2318_v57  ;;  %v2349_v48 = vpack.c.bf16 %v2318_v57, %v2317_v23 }
 0x783   : > { %4240 = vmatmul.mubr.bf16.vlgmr.msra.gmra.mrb[32].mxu1 %v2349_v48 }
 0x784   : > { %4256 = vmatpush3.bf16.xpose.msra.mxu1 %v2710_v9 }
 0x785   : > { %4392 = vmatprep.subr.msk.bf16.mxu1 %vm772_vm0, %v5713_v47  ;;  %v2680_v47 = vpop.permute.xlu1 %2679 }
 0x786   : > { %v2725_v60 = vsel %vm772_vm0, %v2680_v47, 0 }
 0x78c   : > { %4258 = vmatpush3.bf16.xpose.msra.mxu1 %v2713_v35 }
 0x78d   : > { %4393 = vmatprep.subr.msk.bf16.mxu1 %vm772_vm0, %v2674_v62 }
 0x794   : > { %4260 = vmatpush3.bf16.xpose.msra.mxu1 %v2716_v17 }
 0x795   : > { %4394 = vmatprep.subr.msk.bf16.mxu1 %vm772_vm0, %v5742_v32 }
 0x79c   : > { %4262 = vmatpush3.bf16.xpose.msra.mxu1 %v2719_v15 }
 0x79d   : > { %4395 = vmatprep.subr.msk.bf16.mxu1 %vm772_vm0, %v2678_v40 }
 0x7a3   : > { %v2280_v20 = vpop.xlane.xlu0 %2279 }
 0x7a4   : > { %4732 = vrcp.f32 %v2280_v20  ;;  %4264 = vmatpush3.bf16.xpose.msra.mxu1 %v2722_v34 }
 0x7a5   : > { %4396 = vmatprep.subr.msk.bf16.mxu1 %vm772_vm0, %v2680_v47 }
 0x7a7   : > { %v2276_v62 = vpop.xlane.xlu0 %2275 }
 0x7a8   : > { %4734 = vrcp.f32 %v2276_v62  ;;  %v2278_v5 = vpop.xlane.xlu1 %2277 }
 0x7a9   : > { %4736 = vrcp.f32 %v2278_v5 }
 0x7ab   : > { %v2282_v32 = vpop.xlane.xlu0 %2281 }
 0x7ac   : > { %4738 = vrcp.f32 %v2282_v32  ;;  %4266 = vmatpush3.bf16.xpose.msra.mxu1 %v2725_v60  ;;  %v2288_v4 = vpop.xlane.xlu1 %2287 }
 0x7ad   : > { %4740 = vrcp.f32 %v2288_v4 }
 0x7ae   : > { %v4733_v8 = vpop.eup %4732 }
 0x7af   : > { %v2296_v37 = vpop.xlane.xlu0 %2295  ;;  %v2321_v23 = vmul.f32 %v4733_v8, %v5740_v53 }
 0x7b0   : > { %4742 = vrcp.f32 %v2296_v37  ;;  %v2284_v24 = vpop.xlane.xlu1 %2283 }
 0x7b1   : > { %4744 = vrcp.f32 %v2284_v24  ;;  %3837 = vst [vmem:[%s5280_s13 + $0x130] sm:$0xff] %v2321_v23 }
 0x7b2   : > { %v4735_v0 = vpop.eup %4734 }
 0x7b3   : > { %v4737_v27 = vpop.eup %4736  ;;  %v2292_v14 = vpop.xlane.xlu0 %2291  ;;  %v2319_v26 = vmul.f32 %v4735_v0, %v5746_v31 }
 0x7b4   : > { %4746 = vrcp.f32 %v2292_v14  ;;  %v2290_v12 = vpop.xlane.xlu1 %2289  ;;  %v2320_v57 = vmul.f32 %v4737_v27, %v5748_v50 }
 0x7b5   : > { %4748 = vrcp.f32 %v2290_v12  ;;  %3835 = vst [vmem:[%s5280_s13 + $0x120] sm:$0xff] %v2319_v26 }
 0x7b6   : > { %v4739_v48 = vpop.eup %4738  ;;  %3836 = vst [vmem:[%s5280_s13 + $0x128] sm:$0xff] %v2320_v57  ;;  %v2350_v53 = vpack.c.bf16 %v2320_v57, %v2319_v26  ;;  %v4548_v57 = vld [vmem:[%s5136_s9] sm:$0xff]  }
 0x7b7   : > { %v4741_v9 = vpop.eup %4740  ;;  %v2298_v35 = vpop.xlane.xlu0 %2297  ;;  %v2322_v17 = vmul.f32 %v4739_v48, %v5753_v18  ;;  %v4549_v48 = vld [vmem:[%s5136_s9 + $0x8] sm:$0xff]   ;;  %3039 = vrot.lane.b32.xlu0 %v4548_v57, %s4902_s15 }
 0x7b8   : > { %4750 = vrcp.f32 %v2298_v35  ;;  %4243 = vmatprep.mubr.bf16.mxu1 %v2350_v53  ;;  %v2286_v15 = vpop.xlane.xlu1 %2285  ;;  %v2325_v31 = vmul.f32 %v4741_v9, %v5755_v54  ;;  %3041 = vrot.lane.b32.xlu1 %v4549_v48, %s4902_s15 }
 0x7b9   : > { %4752 = vrcp.f32 %v2286_v15  ;;  %3838 = vst [vmem:[%s5280_s13 + $0x138] sm:$0xff] %v2322_v17  ;;  %v2351_v50 = vpack.c.bf16 %v2322_v17, %v2321_v23 }
 0x7ba   : > { %v4743_v40 = vpop.eup %4742  ;;  %3841 = vst [vmem:[%s5280_s13 + $0x150] sm:$0xff] %v2325_v31 }
 0x7bb   : > { %v4745_v34 = vpop.eup %4744  ;;  %4244 = vmatmul.mubr.bf16.gmra.mrb[36].mxu1 %v2351_v50  ;;  %v2682_v20 = vpop.permute.xlu0 %2681  ;;  %v2329_v47 = vmul.f32 %v4743_v40, %v5760_v36 }
 0x7bc   : > { %v2294_v62 = vpop.xlane.xlu1 %2293  ;;  %v2728_v18 = vsel %vm772_vm0, %v2682_v20, 0  ;;  %v2323_v5 = vmul.f32 %v4745_v34, %v5762_v45  ;;  %4397 = vmatprep.subr.msk.bf16.mxu1 %vm772_vm0, %v2682_v20 }
 0x7bd   : > { %4754 = vrcp.f32 %v2294_v62  ;;  %4268 = vmatpush3.bf16.xpose.msra.mxu1 %v2728_v18  ;;  %3845 = vst [vmem:[%s5280_s13 + $0x170] sm:$0xff] %v2329_v47 }
 0x7be   : > { %v4747_v54 = vpop.eup %4746  ;;  %3839 = vst [vmem:[%s5280_s13 + $0x140] sm:$0xff] %v2323_v5 }
 0x7bf   : > { %v4749_v60 = vpop.eup %4748  ;;  %v2327_v32 = vmul.f32 %v4747_v54, %v5766_v49 }
 0x7c0   : > { %v2326_v36 = vmul.f32 %v4749_v60, %v5768_v55  ;;  %v2684_v4 = vpop.permute.xlu1 %2683 }
 0x7c1   : > { %3843 = vst [vmem:[%s5280_s13 + $0x160] sm:$0xff] %v2327_v32  ;;  %4398 = vmatprep.subr.msk.bf16.mxu1 %vm772_vm0, %v2684_v4  ;;  %v2731_v8 = vsel %vm772_vm0, %v2684_v4, 0 }
 0x7c2   : > { %v4751_v45 = vpop.eup %4750  ;;  %3842 = vst [vmem:[%s5280_s13 + $0x158] sm:$0xff] %v2326_v36  ;;  %v2353_v55 = vpack.c.bf16 %v2326_v36, %v2325_v31 }
 0x7c3   : > { %v4753_v37 = vpop.eup %4752  ;;  %v2330_v23 = vmul.f32 %v4751_v45, %v5772_v42  ;;  %v2614_v42 = vpop.permute.xlu0 %2613 }
 0x7c4   : > { %v2324_v24 = vmul.f32 %v4753_v37, %v5774_v6  ;;  %v2616_v6 = vpop.permute.xlu1 %2615 }
 0x7c5   : > { %3846 = vst [vmem:[%s5280_s13 + $0x178] sm:$0xff] %v2330_v23  ;;  %4270 = vmatpush3.bf16.xpose.msra.mxu1 %v2731_v8  ;;  %v2355_v26 = vpack.c.bf16 %v2330_v23, %v2329_v47  ;;  %v4551_v47 = vld [vmem:[%s5136_s9 + $0x20] sm:$0xff]  }
 0x7c6   : > { %3840 = vst [vmem:[%s5280_s13 + $0x148] sm:$0xff] %v2324_v24  ;;  %v2352_v49 = vpack.c.bf16 %v2324_v24, %v2323_v5  ;;  %v4553_v24 = vld [vmem:[%s5136_s9 + $0x28] sm:$0xff]  }
 0x7c7   : > { %v4755_v0 = vpop.eup %4754  ;;  %v2618_v12 = vpop.permute.xlu0 %2617 }
 0x7c8   : > { %4247 = vmatprep.mubr.bf16.mxu1 %v2352_v49  ;;  %v2328_v27 = vmul.f32 %v4755_v0, %v5778_v56  ;;  %v4550_v56 = vld [vmem:[%s5136_s9 + $0x10] sm:$0xff]   ;;  %v2620_v53 = vpop.permute.xlu1 %2619 }
 0x7c9   : > { %4248 = vmatmul.mubr.bf16.gmra.mrb[40].mxu1 %v2353_v55  ;;  %3043 = vrot.lane.b32.xlu0 %v4550_v56, %s4902_s15 }
 0x7ca   : > { %3844 = vst [vmem:[%s5280_s13 + $0x168] sm:$0xff] %v2328_v27  ;;  %v2354_v14 = vpack.c.bf16 %v2328_v27, %v2327_v32 }
 0x7cb   : > { %v2622_v9 = vpop.permute.xlu0 %2621 }
 0x7cc   : > { %4251 = vmatprep.mubr.bf16.mxu1 %v2354_v14  ;;  %v2624_v35 = vpop.permute.xlu1 %2623 }
 0x7cf   : > { %v2626_v17 = vpop.permute.xlu0 %2625 }
 0x7d0   : > { %v2628_v15 = vpop.permute.xlu1 %2627 }
 0x7d1   : > { %4252 = vmatmul.mubr.bf16.gmra.mrb[44].mxu1 %v2355_v26 }
 0x7d2   : > { %4271 = vmatprep.mubr.msk.bf16.mxu1 %vm772_vm0, %v2614_v42 }
 0x7d9   : > { %4272 = vmatmul.mubr.msk.bf16.vlgmr.msra.gmra.mrb[48].mxu1 %vm772_vm0, %v2616_v6  ;;  %v4552_v6 = vld [vmem:[%s5136_s9 + $0x18] sm:$0xff]  }
 0x7da   : > { %4275 = vmatprep.mubr.msk.bf16.mxu1 %vm772_vm0, %v2618_v12 }
 0x7e1   : > { %4276 = vmatmul.mubr.msk.bf16.gmra.mrb[52].mxu1 %vm772_vm0, %v2620_v53 }
 0x7e2   : > { %4279 = vmatprep.mubr.msk.bf16.mxu1 %vm772_vm0, %v2622_v9 }
 0x7e9   : > { %4280 = vmatmul.mubr.msk.bf16.gmra.mrb[56].mxu1 %vm772_vm0, %v2624_v35 }
 0x7ea   : > { %4283 = vmatprep.mubr.msk.bf16.mxu1 %vm772_vm0, %v2626_v17 }
 0x7f1   : > { %4284 = vmatmul.mubr.msk.bf16.gmra.mrb[60].mxu1 %vm772_vm0, %v2628_v15 }
 0x829   : > { %v3040_v62 = vpop.permute.xlu0 %3039 }
 0x82a   : > { %4287 = vmatprep.subr.bf16.mxu0 %v3040_v62  ;;  %v3042_v18 = vpop.permute.xlu1 %3041 }
 0x82b   : > { %4288 = vmatpush3.bf16.msra.mxu0 %v3040_v62 }
 0x82c   : > { %4289 = vmatprep.subr.bf16.mxu0 %v3042_v18 }
 0x82f   : > { %4290 = vmatpush3.bf16.msra.mxu0 %v3042_v18 }
 0x83b   : > { %v3044_v5 = vpop.permute.xlu0 %3043 }
 0x83c   : > { %4291 = vmatprep.subr.bf16.mxu0 %v3044_v5 }
 0x83d   : > { %4292 = vmatpush3.bf16.msra.mxu0 %v3044_v5 }
 0x856   : > { %v5867_v31 = vpop.f32.mrb[32].mxu1 }
 0x857   : > { %v5869_v50 = vpop.f32.mrb[33].mxu1 }
 0x858   : > { %v5871_v40 = vpop.f32.mrb[34].mxu1 }
 0x859   : > { %v5875_v20 = vpop.f32.mrb[35].mxu1 }
 0x88e   : > { %v5879_v54 = vpop.f32.mrb[36].mxu1 }
 0x88f   : > { %v5881_v60 = vpop.f32.mrb[37].mxu1 }
 0x890   : > { %v5883_v32 = vpop.f32.mrb[38].mxu1 }
 0x891   : > { %v5887_v4 = vpop.f32.mrb[39].mxu1 }
 0x89c   : > { %v5891_v8 = vpop.f32.mrb[40].mxu1 }
 0x89d   : > { %v5893_v37 = vpop.f32.mrb[41].mxu1 }
 0x89e   : > { %v5895_v23 = vpop.f32.mrb[42].mxu1 }
 0x89f   : > { %v5899_v49 = vpop.f32.mrb[43].mxu1 }
 0x8a4   : > { %v5903_v55 = vpop.f32.mrb[44].mxu1 }
 0x8a5   : > { %6314 = vst [vmem:[#allocation24_spill] sm:$0xff] %v5903_v55  ;;  %v5905_v27 = vpop.f32.mrb[45].mxu1 }
 0x8a6   : > { %v5907_v14 = vpop.f32.mrb[46].mxu1 }
 0x8a7   : > { %v5911_v42 = vpop.f32.mrb[47].mxu1 }
 0x8ac   : > { %v4273_v12 = vpop.f32.mrb[48].mxu1 }
 0x8ad   : > { %2834 = vmax.xlane.f32.xlu0 %v4273_v12  ;;  %v2767_v57 = vpop.f32.mrb[49].mxu1 }
 0x8ae   : > { %v4274_v48 = vpop.f32.mrb[50].mxu1 }
 0x8af   : > { %v2770_v56 = vpop.f32.mrb[51].mxu1 }
 0x8b0   : > { %2832 = vmax.xlane.f32.xlu1 %v2770_v56 }
 0x8b1   : > { %2830 = vmax.xlane.f32.xlu0 %v2767_v57 }
 0x8b4   : > { %v4277_v53 = vpop.f32.mrb[52].mxu1 }
 0x8b5   : > { %2836 = vmax.xlane.f32.xlu0 %v4274_v48  ;;  %v2783_v9 = vpop.f32.mrb[53].mxu1 }
 0x8b6   : > { %v5915_v35 = vpop.f32.mrb[54].mxu1 }
 0x8b7   : > { %2844 = vmax.xlane.f32.xlu1 %v5915_v35  ;;  %v2786_v17 = vpop.f32.mrb[55].mxu1 }
 0x8b9   : > { %2842 = vmax.xlane.f32.xlu0 %v4277_v53 }
 0x8bb   : > { %2840 = vmax.xlane.f32.xlu1 %v2786_v17 }
 0x8bc   : > { %v5918_v15 = vpop.f32.mrb[56].mxu1 }
 0x8bd   : > { %2838 = vmax.xlane.f32.xlu0 %v2783_v9  ;;  %v5920_v62 = vpop.f32.mrb[57].mxu1 }
 0x8be   : > { %v5922_v18 = vpop.f32.mrb[58].mxu1 }
 0x8bf   : > { %2852 = vmax.xlane.f32.xlu1 %v5922_v18  ;;  %v5925_v5 = vpop.f32.mrb[59].mxu1 }
 0x8c1   : > { %2850 = vmax.xlane.f32.xlu0 %v5918_v15 }
 0x8c3   : > { %2848 = vmax.xlane.f32.xlu1 %v5925_v5 }
 0x8c4   : > { %v5929_v26 = vpop.f32.mrb[60].mxu1 }
 0x8c5   : > { %2846 = vmax.xlane.f32.xlu0 %v5920_v62  ;;  %v5932_v36 = vpop.f32.mrb[61].mxu1 }
 0x8c6   : > { %v5934_v45 = vpop.f32.mrb[62].mxu1 }
 0x8c7   : > { %v5936_v34 = vpop.f32.mrb[63].mxu1 }
 0x8c9   : > { %2858 = vmax.xlane.f32.xlu0 %v5929_v26 }
 0x8cd   : > { %2854 = vmax.xlane.f32.xlu0 %v5932_v36 }
 0x8d4   : > { %3047 = vrot.lane.b32.xlu1 %v4551_v47, %s4902_s15 }
 0x8e3   : > { %3045 = vrot.lane.b32.xlu0 %v4552_v6, %s4902_s15 }
 0x8f8   : > { %2860 = vmax.xlane.f32.xlu1 %v5934_v45 }
 0x8fc   : > { %2856 = vmax.xlane.f32.xlu1 %v5936_v34 }
 0x90d   : > { %3049 = vrot.lane.b32.xlu1 %v4553_v24, %s4902_s15 }
 0x93a   : > { %v2835_v0 = vpop.xlane.xlu0 %2834 }
 0x93b   : > { %v2864_v43 = vsub.f32 %v4273_v12, %v2835_v0 }
 0x93d   : > { %v2882_v44 = vmul.f32 1.442695, %v2864_v43  ;;  %v2833_v46 = vpop.xlane.xlu1 %2832 }
 0x93e   : > { %v2831_v22 = vpop.xlane.xlu0 %2830  ;;  %v2863_v33 = vsub.f32 %v2770_v56, %v2833_v46 }
 0x93f   : > { %4756 = vpow2.f32 %v2882_v44  ;;  %v2862_v29 = vsub.f32 %v2767_v57, %v2831_v22 }
 0x940   : > { %v2880_v13 = vmul.f32 1.442695, %v2863_v33 }
 0x941   : > { %v2878_v19 = vmul.f32 1.442695, %v2862_v29 }
 0x942   : > { %v2837_v47 = vpop.xlane.xlu0 %2836 }
 0x943   : > { %4758 = vpow2.f32 %v2878_v19  ;;  %v2865_v30 = vsub.f32 %v4274_v48, %v2837_v47 }
 0x944   : > { %v2845_v6 = vpop.xlane.xlu1 %2844 }
 0x945   : > { %v2884_v10 = vmul.f32 1.442695, %v2865_v30  ;;  %v2869_v29 = vsub.f32 %v5915_v35, %v2845_v6 }
 0x946   : > { %v2843_v11 = vpop.xlane.xlu0 %2842 }
 0x947   : > { %4760 = vpow2.f32 %v2884_v10  ;;  %v2868_v16 = vsub.f32 %v4277_v53, %v2843_v11  ;;  %v2892_v11 = vmul.f32 1.442695, %v2869_v29 }
 0x948   : > { %v2841_v55 = vpop.xlane.xlu1 %2840  ;;  %4762 = vpow2.f32 %v2880_v13 }
 0x949   : > { %v5948_v24 = vpop.eup %4756  ;;  %v2890_v0 = vmul.f32 1.442695, %v2868_v16  ;;  %v2867_v43 = vsub.f32 %v2786_v17, %v2841_v55 }
 0x94a   : > { %v2839_v44 = vpop.xlane.xlu0 %2838  ;;  %2914 = vadd.xlane.f32.xlu1 %v5948_v24 }
 0x94b   : > { %4764 = vpow2.f32 %v2890_v0  ;;  %v2888_v19 = vmul.f32 1.442695, %v2867_v43  ;;  %v2866_v22 = vsub.f32 %v2783_v9, %v2839_v44 }
 0x94c   : > { %v2853_v30 = vpop.xlane.xlu1 %2852 }
 0x94d   : > { %v5952_v46 = vpop.eup %4758  ;;  %v2886_v33 = vmul.f32 1.442695, %v2866_v22  ;;  %4766 = vpow2.f32 %v2888_v19  ;;  %v2873_v55 = vsub.f32 %v5922_v18, %v2853_v30 }
 0x94e   : > { %v2851_v10 = vpop.xlane.xlu0 %2850  ;;  %2910 = vadd.xlane.f32.xlu1 %v5952_v46 }
 0x94f   : > { %4768 = vpow2.f32 %v2886_v33  ;;  %v2872_v13 = vsub.f32 %v5918_v15, %v2851_v10  ;;  %v2900_v17 = vmul.f32 1.442695, %v2873_v55  ;;  %v4554_v55 = vld [vmem:[%s5136_s9 + $0x38] sm:$0xff]  }
 0x950   : > { %4770 = vpow2.f32 %v2892_v11  ;;  %v2849_v48 = vpop.xlane.xlu1 %2848 }
 0x951   : > { %v5956_v16 = vpop.eup %4760  ;;  %v2898_v12 = vmul.f32 1.442695, %v2872_v13  ;;  %v2871_v15 = vsub.f32 %v5925_v5, %v2849_v48  ;;  %v6316_v48 = vpack.c.bf16 %v5625_v2, %v5621_v21  ;;  %v6319_v21 = vpack.c.bf16 %v5895_v23, %v5891_v8 }
 0x952   : > { %v2847_v57 = vpop.xlane.xlu0 %2846  ;;  %2916 = vadd.xlane.f32.xlu1 %v5956_v16  ;;  %v5961_v53 = vpop.eup %4762  ;;  %v6322_v8 = vpack.c.bf16 %v5911_v42, %v5905_v27 }
 0x953   : > { %v2870_v56 = vsub.f32 %v5920_v62, %v2847_v57  ;;  %4772 = vpow2.f32 %v2898_v12  ;;  %v2896_v43 = vmul.f32 1.442695, %v2871_v15  ;;  %v4555_v12 = vld [vmem:[%s5136_s9 + $0x30] sm:$0xff]   ;;  %v6315_v57 = vpack.c.bf16 %v5657_v52, %v5651_v61 }
 0x954   : > { %v3048_v33 = vpop.permute.xlu1 %3047  ;;  %v6318_v15 = vpack.c.bf16 %v5899_v49, %v5893_v37 }
 0x955   : > { %v5963_v9 = vpop.eup %4764  ;;  %v2894_v35 = vmul.f32 1.442695, %v2870_v56 }
 0x956   : > { %v2859_v47 = vpop.xlane.xlu0 %2858  ;;  %2922 = vadd.xlane.f32.xlu0 %v5963_v9  ;;  %2912 = vadd.xlane.f32.xlu1 %v5961_v53 }
 0x957   : > { %4774 = vpow2.f32 %v2894_v35  ;;  %v2876_v18 = vsub.f32 %v5929_v26, %v2859_v47  ;;  %v5969_v6 = vpop.eup %4766  ;;  %v6317_v35 = vpack.c.bf16 %v5653_v51, %v5649_v7  ;;  %v6320_v51 = vpack.c.bf16 %v5669_v41, %v5663_v58 }
 0x958   : > { %4776 = vpow2.f32 %v2900_v17  ;;  %v6323_v58 = vpack.c.bf16 %v5629_v59, %v5623_v28  ;;  %v6326_v41 = vpack.c.bf16 %v5645_v63, %v5639_v1  ;;  %v6327_v28 = vpack.c.bf16 %v5641_v25, %v5637_v39 }
 0x959   : > { %v5971_v62 = vpop.eup %4768  ;;  %v2906_v0 = vmul.f32 1.442695, %v2876_v18  ;;  %v6328_v59 = vpack.c.bf16 %v5887_v4, %v5881_v60 }
 0x95a   : > { %2918 = vadd.xlane.f32.xlu0 %v5971_v62  ;;  %v2855_v44 = vpop.xlane.xlu0 %2854  ;;  %2920 = vadd.xlane.f32.xlu1 %v5969_v6  ;;  %v5976_v29 = vpop.eup %4770 }
 0x95b   : > { %4778 = vpow2.f32 %v2906_v0  ;;  %v2874_v5 = vsub.f32 %v5932_v36, %v2855_v44 }
 0x95c   : > { %4780 = vpow2.f32 %v2896_v43 }
 0x95d   : > { %v2902_v19 = vmul.f32 1.442695, %v2874_v5  ;;  %v5979_v22 = vpop.eup %4772 }
 0x95e   : > { %v3046_v26 = vpop.permute.xlu0 %3045  ;;  %2924 = vadd.xlane.f32.xlu0 %v5976_v29 }
 0x95f   : > { %4782 = vpow2.f32 %v2902_v19  ;;  %4293 = vmatprep.subr.bf16.mxu0 %v3046_v26 }
 0x960   : > { %4294 = vmatpush3.bf16.msra.mxu0 %v3046_v26 }
 0x961   : > { %v5981_v30 = vpop.eup %4774  ;;  %4295 = vmatprep.subr.bf16.mxu0 %v3048_v33 }
 0x962   : > { %2930 = vadd.xlane.f32.xlu0 %v5979_v22  ;;  %2926 = vadd.xlane.f32.xlu1 %v5981_v30  ;;  %v5985_v36 = vpop.eup %4776 }
 0x964   : > { %4296 = vmatpush3.bf16.msra.mxu0 %v3048_v33 }
 0x965   : > { %v5987_v10 = vpop.eup %4778 }
 0x966   : > { %2938 = vadd.xlane.f32.xlu1 %v5987_v10  ;;  %2932 = vadd.xlane.f32.xlu0 %v5985_v36  ;;  %v5991_v11 = vpop.eup %4780 }
 0x969   : > { %v5993_v13 = vpop.eup %4782 }
 0x96a   : > { %2934 = vadd.xlane.f32.xlu1 %v5993_v13  ;;  %2928 = vadd.xlane.f32.xlu0 %v5991_v11 }
 0x97b   : > { %3053 = vrot.lane.b32.xlu1 %v4554_v55, %s4902_s15 }
 0x97f   : > { %3184 = vrot.lane.b32.xlu1 %v6315_v57, %s4902_s15 }
 0x980   : > { %3051 = vrot.lane.b32.xlu0 %v4555_v12, %s4902_s15 }
 0x983   : > { %3178 = vrot.lane.b32.xlu1 %v6316_v48, %s4902_s15 }
 0x985   : > { %v2861_v56 = vpop.xlane.xlu1 %2860 }
 0x986   : > { %v2877_v2 = vsub.f32 %v5934_v45, %v2861_v56 }
 0x987   : > { %3186 = vrot.lane.b32.xlu1 %v6317_v35, %s4902_s15 }
 0x988   : > { %v2908_v37 = vmul.f32 1.442695, %v2877_v2 }
 0x989   : > { %v2857_v17 = vpop.xlane.xlu1 %2856 }
 0x98a   : > { %v2875_v61 = vsub.f32 %v5936_v34, %v2857_v17  ;;  %v6321_v34 = vpack.c.bf16 %v5665_v3, %v5661_v38  ;;  %v6324_v38 = vpack.c.bf16 %v5875_v20, %v5869_v50  ;;  %v6325_v3 = vpack.c.bf16 %v5871_v40, %v5867_v31 }
 0x98b   : > { %3208 = vrot.lane.b32.xlu1 %v6318_v15, %s4901_s14 }
 0x98c   : > { %v2904_v7 = vmul.f32 1.442695, %v2875_v61 }
 0x98d   : > { %v3050_v52 = vpop.permute.xlu1 %3049 }
 0x98e   : > { %4297 = vmatprep.subr.bf16.mxu0 %v3050_v52  ;;  %4784 = vpow2.f32 %v2904_v7 }
 0x98f   : > { %3210 = vrot.lane.b32.xlu1 %v6319_v21, %s4901_s14  ;;  %4298 = vmatpush3.bf16.msra.mxu0 %v3050_v52  ;;  %4786 = vpow2.f32 %v2908_v37 }
 0x993   : > { %3188 = vrot.lane.b32.xlu1 %v6320_v51, %s4902_s15 }
 0x997   : > { %3190 = vrot.lane.b32.xlu1 %v6321_v34, %s4902_s15 }
 0x998   : > { %v6035_v45 = vpop.eup %4784 }
 0x999   : > { %v6038_v23 = vpop.eup %4786 }
 0x99b   : > { %3212 = vrot.lane.b32.xlu1 %v6322_v8, %s4901_s14 }
 0x99f   : > { %2936 = vadd.xlane.f32.xlu0 %v6035_v45 }
 0x9a3   : > { %2940 = vadd.xlane.f32.xlu0 %v6038_v23 }
 0x9b9   : > { %3176 = vrot.lane.b32.xlu0 %v6323_v58, %s4902_s15 }
 0x9bd   : > { %3200 = vrot.lane.b32.xlu0 %v6324_v38, %s4901_s14 }
 0x9c1   : > { %3202 = vrot.lane.b32.xlu0 %v6325_v3, %s4901_s14 }
 0x9c5   : > { %3180 = vrot.lane.b32.xlu0 %v6326_v41, %s4902_s15 }
 0x9c9   : > { %3182 = vrot.lane.b32.xlu0 %v6327_v28, %s4902_s15  ;;  %s3500_s15 = scalar_lea.sflag [#allocation6], %s5080_s19 }
 0x9cd   : > { %3204 = vrot.lane.b32.xlu0 %v6328_v59, %s4901_s14  ;;  %v4556_v59 = vld [vmem:[%s6274_s3] sm:$0xff]  }
 0x9ce   : > { %4351 = vmatprep.subr.bf16.mxu1 %v4556_v59 }
 0x9cf   : > { %4359 = vmatpush3.bf16.msra.mxu1 %v4556_v59 }
 0x9d7   : > { %v2915_v50 = vpop.xlane.xlu1 %2914 }
 0x9d8   : > { %4788 = vrcp.f32 %v2915_v50  ;;  %v4557_v50 = vld [vmem:[%s6274_s3 + $0x8] sm:$0xff]  }
 0x9d9   : > { %4352 = vmatprep.subr.bf16.mxu1 %v4557_v50 }
 0x9da   : > { %4360 = vmatpush3.bf16.msra.mxu1 %v4557_v50 }
 0x9db   : > { %v2911_v31 = vpop.xlane.xlu1 %2910 }
 0x9dc   : > { %4790 = vrcp.f32 %v2911_v31  ;;  %v4560_v31 = vld [vmem:[%s6274_s3 + $0x20] sm:$0xff]  }
 0x9df   : > { %v2917_v40 = vpop.xlane.xlu1 %2916 }
 0x9e0   : > { %4792 = vrcp.f32 %v2917_v40  ;;  %v4561_v40 = vld [vmem:[%s6274_s3 + $0x28] sm:$0xff]  }
 0x9e2   : > { %v4789_v20 = vpop.eup %4788 }
 0x9e3   : > { %v6066_v1 = vmul.f32 %v4789_v20, %v5948_v24  ;;  %v2923_v63 = vpop.xlane.xlu0 %2922  ;;  %v2913_v39 = vpop.xlane.xlu1 %2912  ;;  %v4562_v20 = vld [vmem:[%s6274_s3 + $0x30] sm:$0xff]  }
 0x9e4   : > { %4794 = vrcp.f32 %v2923_v63 }
 0x9e5   : > { %3881 = vst [vmem:[%s5280_s13 + $0x190] sm:$0xff] %v6066_v1  ;;  %4796 = vrcp.f32 %v2913_v39 }
 0x9e6   : > { %v4791_v25 = vpop.eup %4790 }
 0x9e7   : > { %v2919_v60 = vpop.xlane.xlu0 %2918  ;;  %v2921_v4 = vpop.xlane.xlu1 %2920  ;;  %v2958_v49 = vmul.f32 %v4791_v25, %v5952_v46 }
 0x9e8   : > { %4798 = vrcp.f32 %v2919_v60 }
 0x9e9   : > { %4800 = vrcp.f32 %v2921_v4  ;;  %3879 = vst [vmem:[%s5280_s13 + $0x180] sm:$0xff] %v2958_v49 }
 0x9ea   : > { %v4793_v27 = vpop.eup %4792 }
 0x9eb   : > { %v2961_v42 = vmul.f32 %v4793_v27, %v5956_v16  ;;  %v2925_v24 = vpop.xlane.xlu0 %2924 }
 0x9ec   : > { %4802 = vrcp.f32 %v2925_v24 }
 0x9ed   : > { %3882 = vst [vmem:[%s5280_s13 + $0x198] sm:$0xff] %v2961_v42  ;;  %v2992_v2 = vpack.c.bf16 %v2961_v42, %v6066_v1  ;;  %v4563_v1 = vld [vmem:[%s6274_s3 + $0x38] sm:$0xff]  }
 0x9ee   : > { %v4795_v47 = vpop.eup %4794 }
 0x9ef   : > { %v4797_v18 = vpop.eup %4796  ;;  %v2931_v0 = vpop.xlane.xlu0 %2930  ;;  %v2964_v44 = vmul.f32 %v4795_v47, %v5963_v9 }
 0x9f0   : > { %v2927_v43 = vpop.xlane.xlu1 %2926  ;;  %4804 = vrcp.f32 %v2931_v0  ;;  %v2959_v46 = vmul.f32 %v4797_v18, %v5961_v53 }
 0x9f1   : > { %4806 = vrcp.f32 %v2927_v43  ;;  %3885 = vst [vmem:[%s5280_s13 + $0x1b0] sm:$0xff] %v2964_v44  ;;  %v6329_v43 = vpack.c.bf16 %v5883_v32, %v5879_v54 }
 0x9f2   : > { %v4799_v5 = vpop.eup %4798  ;;  %3880 = vst [vmem:[%s5280_s13 + $0x188] sm:$0xff] %v2959_v46  ;;  %v2991_v19 = vpack.c.bf16 %v2959_v46, %v2958_v49 }
 0x9f3   : > { %v4801_v16 = vpop.eup %4800  ;;  %v2933_v26 = vpop.xlane.xlu0 %2932  ;;  %v2962_v55 = vmul.f32 %v4799_v5, %v5971_v62 }
 0x9f4   : > { %v2939_v33 = vpop.xlane.xlu1 %2938  ;;  %4808 = vrcp.f32 %v2933_v26  ;;  %4303 = vmatprep.mubr.bf16.mxu0 %v2991_v19  ;;  %v2963_v9 = vmul.f32 %v4801_v16, %v5969_v6 }
 0x9f5   : > { %4810 = vrcp.f32 %v2939_v33  ;;  %3883 = vst [vmem:[%s5280_s13 + $0x1a0] sm:$0xff] %v2962_v55  ;;  %v6330_v33 = vld [vmem:[#allocation24_spill] sm:$0xff] }
 0x9f6   : > { %v4803_v12 = vpop.eup %4802  ;;  %3884 = vst [vmem:[%s5280_s13 + $0x1a8] sm:$0xff] %v2963_v9  ;;  %v2993_v7 = vpack.c.bf16 %v2963_v9, %v2962_v55  ;;  %v6331_v55 = vpack.c.bf16 %v5907_v14, %v6330_v33 }
 0x9f7   : > { %v2929_v53 = vpop.xlane.xlu0 %2928  ;;  %v2965_v48 = vmul.f32 %v4803_v12, %v5976_v29 }
 0x9f8   : > { %v2935_v57 = vpop.xlane.xlu1 %2934  ;;  %4812 = vrcp.f32 %v2929_v53 }
 0x9f9   : > { %4814 = vrcp.f32 %v2935_v57  ;;  %3886 = vst [vmem:[%s5280_s13 + $0x1b8] sm:$0xff] %v2965_v48 }
 0x9fa   : > { %v4805_v56 = vpop.eup %4804 }
 0x9fb   : > { %v4807_v62 = vpop.eup %4806  ;;  %v3052_v35 = vpop.permute.xlu0 %3051  ;;  %v2968_v17 = vmul.f32 %v4805_v56, %v5979_v22 }
 0x9fc   : > { %4299 = vmatprep.subr.bf16.mxu0 %v3052_v35  ;;  %v2966_v6 = vmul.f32 %v4807_v62, %v5981_v30  ;;  %v3054_v15 = vpop.permute.xlu1 %3053 }
 0x9fd   : > { %4300 = vmatpush3.bf16.msra.mxu0 %v3052_v35  ;;  %3889 = vst [vmem:[%s5280_s13 + $0x1d0] sm:$0xff] %v2968_v17 }
 0x9fe   : > { %v4809_v61 = vpop.eup %4808  ;;  %4301 = vmatprep.subr.bf16.mxu0 %v3054_v15  ;;  %3887 = vst [vmem:[%s5280_s13 + $0x1c0] sm:$0xff] %v2966_v6 }
 0x9ff   : > { %v4811_v29 = vpop.eup %4810  ;;  %v2969_v52 = vmul.f32 %v4809_v61, %v5985_v36  ;;  %v2994_v36 = vpack.c.bf16 %v2965_v48, %v2964_v44 }
 0xa00   : > { %v2972_v21 = vmul.f32 %v4811_v29, %v5987_v10  ;;  %v3185_v56 = vpop.permute.xlu1 %3184 }
 0xa01   : > { %4302 = vmatpush3.bf16.msra.mxu0 %v3054_v15  ;;  %3890 = vst [vmem:[%s5280_s13 + $0x1d8] sm:$0xff] %v2969_v52  ;;  %v2996_v10 = vpack.c.bf16 %v2969_v52, %v2968_v17 }
 0xa02   : > { %v4813_v22 = vpop.eup %4812  ;;  %3893 = vst [vmem:[%s5280_s13 + $0x1f0] sm:$0xff] %v2972_v21  ;;  %4319 = vmatprep.subr.bf16.mxu0 %v4556_v59 }
 0xa03   : > { %v4815_v30 = vpop.eup %4814  ;;  %v2967_v51 = vmul.f32 %v4813_v22, %v5991_v11 }
 0xa04   : > { %4304 = vmatmul.mubr.bf16.vlgmr.msra.gmra.mrb[48].mxu0 %v2992_v2  ;;  %v2970_v37 = vmul.f32 %v4815_v30, %v5993_v13  ;;  %v3179_v35 = vpop.permute.xlu1 %3178  ;;  %v6332_v2 = vld [vmem:[#allocation11_spill] sm:$0xff]  ;;  %v6333_v30 = vld [vmem:[#allocation9_spill] sm:$0xff] }
 0xa05   : > { %4307 = vmatprep.mubr.bf16.mxu0 %v2993_v7  ;;  %3888 = vst [vmem:[%s5280_s13 + $0x1c8] sm:$0xff] %v2967_v51  ;;  %v2995_v34 = vpack.c.bf16 %v2967_v51, %v2966_v6  ;;  %4320 = vmatpush3.bf16.msra.mxu0 %v4556_v59  ;;  %v6334_v7 = vpack.c.bf16 %v6332_v2, %v6333_v30  ;;  %v6339_v59 = vld [vmem:[#allocation13_spill] sm:$0xff] }
 0xa06   : > { %3891 = vst [vmem:[%s5280_s13 + $0x1e0] sm:$0xff] %v2970_v37  ;;  %4321 = vmatprep.subr.bf16.mxu0 %v4557_v50 }
 0xa08   : > { %v3187_v6 = vpop.permute.xlu1 %3186 }
 0xa09   : > { %4322 = vmatpush3.bf16.msra.mxu0 %v4557_v50 }
 0xa0c   : > { %4308 = vmatmul.mubr.bf16.gmra.mrb[52].mxu0 %v2994_v36  ;;  %v3209_v61 = vpop.permute.xlu1 %3208  ;;  %v6336_v36 = vld [vmem:[#allocation8_spill] sm:$0xff] }
 0xa0d   : > { %4311 = vmatprep.mubr.bf16.mxu0 %v2995_v34 }
 0xa10   : > { %v3211_v29 = vpop.permute.xlu1 %3210 }
 0xa14   : > { %4312 = vmatmul.mubr.bf16.gmra.mrb[56].mxu0 %v2996_v10 }
 0xa2c   : > { %v2937_v8 = vpop.xlane.xlu0 %2936 }
 0xa2d   : > { %4816 = vrcp.f32 %v2937_v8 }
 0xa30   : > { %v2941_v58 = vpop.xlane.xlu0 %2940 }
 0xa31   : > { %4818 = vrcp.f32 %v2941_v58 }
 0xa34   : > { %v3177_v48 = vpop.permute.xlu0 %3176 }
 0xa35   : > { %v3242_v51 = vsel %vm772_vm0, %v6334_v7, %v3177_v48 }
 0xa37   : > { %v4817_v38 = vpop.eup %4816 }
 0xa38   : > { %v2971_v11 = vmul.f32 %v4817_v38, %v6035_v45  ;;  %v4558_v45 = vld [vmem:[%s6274_s3 + $0x10] sm:$0xff]   ;;  %v3201_v62 = vpop.permute.xlu0 %3200 }
 0xa39   : > { %4323 = vmatprep.subr.bf16.mxu0 %v4558_v45  ;;  %4353 = vmatprep.subr.bf16.mxu1 %v4558_v45  ;;  %v3266_v8 = vsel %vm3264_vm1, %v3242_v51, %v3201_v62  ;;  %v6354_v62 = vld [vmem:[#allocation20_spill] sm:$0xff] }
 0xa3a   : > { %3892 = vst [vmem:[%s5280_s13 + $0x1e8] sm:$0xff] %v2971_v11  ;;  %v2997_v13 = vpack.c.bf16 %v2971_v11, %v2970_v37  ;;  %4324 = vmatpush3.bf16.msra.mxu0 %v4558_v45  ;;  %4361 = vmatpush3.bf16.msra.mxu1 %v4558_v45  ;;  %v6335_v37 = vld [vmem:[#allocation10_spill] sm:$0xff] }
 0xa3b   : > { %v4819_v3 = vpop.eup %4818  ;;  %v6337_v34 = vpack.c.bf16 %v6335_v37, %v6336_v36 }
 0xa3c   : > { %4315 = vmatprep.mubr.bf16.mxu0 %v2997_v13  ;;  %v2973_v41 = vmul.f32 %v4819_v3, %v6038_v23  ;;  %v4559_v23 = vld [vmem:[%s6274_s3 + $0x18] sm:$0xff]   ;;  %v3203_v17 = vpop.permute.xlu0 %3202 }
 0xa3d   : > { %4325 = vmatprep.subr.bf16.mxu0 %v4559_v23  ;;  %4354 = vmatprep.subr.bf16.mxu1 %v4559_v23  ;;  %v3245_v10 = vsel %vm772_vm0, %v6337_v34, %v3179_v35 }
 0xa3e   : > { %3894 = vst [vmem:[%s5280_s13 + $0x1f8] sm:$0xff] %v2973_v41  ;;  %v2998_v28 = vpack.c.bf16 %v2973_v41, %v2972_v21  ;;  %4326 = vmatpush3.bf16.msra.mxu0 %v4559_v23  ;;  %4362 = vmatpush3.bf16.msra.mxu1 %v4559_v23  ;;  %v3189_v21 = vpop.permute.xlu1 %3188  ;;  %v3268_v38 = vsel %vm3264_vm1, %v3245_v10, %v3203_v17 }
 0xa3f   : > { %4327 = vmatprep.subr.bf16.mxu0 %v4560_v31  ;;  %4355 = vmatprep.subr.bf16.mxu1 %v4560_v31 }
 0xa40   : > { %4316 = vmatmul.mubr.bf16.gmra.mrb[60].mxu0 %v2998_v28  ;;  %v3181_v15 = vpop.permute.xlu0 %3180  ;;  %v6338_v28 = vld [vmem:[#allocation15_spill] sm:$0xff] }
 0xa41   : > { %v6340_v50 = vpack.c.bf16 %v6338_v28, %v6339_v59 }
 0xa42   : > { %4328 = vmatpush3.bf16.msra.mxu0 %v4560_v31  ;;  %4363 = vmatpush3.bf16.msra.mxu1 %v4560_v31  ;;  %v3191_v13 = vpop.permute.xlu1 %3190 }
 0xa43   : > { %4329 = vmatprep.subr.bf16.mxu0 %v4561_v40  ;;  %4356 = vmatprep.subr.bf16.mxu1 %v4561_v40  ;;  %v3248_v45 = vsel %vm772_vm0, %v6340_v50, %v3181_v15 }
 0xa44   : > { %v3183_v14 = vpop.permute.xlu0 %3182 }
 0xa46   : > { %4330 = vmatpush3.bf16.msra.mxu0 %v4561_v40  ;;  %4364 = vmatpush3.bf16.msra.mxu1 %v4561_v40  ;;  %v3213_v23 = vpop.permute.xlu1 %3212 }
 0xa47   : > { %4331 = vmatprep.subr.bf16.mxu0 %v4562_v20  ;;  %4357 = vmatprep.subr.bf16.mxu1 %v4562_v20 }
 0xa48   : > { %v3205_v52 = vpop.permute.xlu0 %3204 }
 0xa49   : > { %v3270_v31 = vsel %vm3264_vm1, %v3248_v45, %v3205_v52 }
 0xa4a   : > { %4332 = vmatpush3.bf16.msra.mxu0 %v4562_v20  ;;  %4365 = vmatpush3.bf16.msra.mxu1 %v4562_v20 }
 0xa4b   : > { %4333 = vmatprep.subr.bf16.mxu0 %v4563_v1  ;;  %4358 = vmatprep.subr.bf16.mxu1 %v4563_v1 }
 0xa4e   : > { %4334 = vmatpush3.bf16.msra.mxu0 %v4563_v1  ;;  %4366 = vmatpush3.bf16.msra.mxu1 %v4563_v1  ;;  %v6341_v1 = vld [vmem:[#allocation14_spill] sm:$0xff] }
 0xad7   : > { %v4305_v63 = vpop.f32.mrb[48].mxu0 }
 0xad8   : > { %v3097_v39 = vpop.f32.mrb[49].mxu0 }
 0xad9   : > { %v4306_v25 = vpop.f32.mrb[50].mxu0 }
 0xada   : > { %v3161_v60 = vpack.c.bf16 %v4306_v25, %v4305_v63  ;;  %v3100_v4 = vpop.f32.mrb[51].mxu0  ;;  %v6342_v63 = vld [vmem:[#allocation12_spill] sm:$0xff] }
 0xadb   : > { %v3160_v49 = vpack.c.bf16 %v3100_v4, %v3097_v39  ;;  %v6343_v39 = vpack.c.bf16 %v6341_v1, %v6342_v63 }
 0xadc   : > { %3226 = vrot.lane.b32.xlu0 %v3161_v60, %s4900_s30 }
 0xadd   : > { %v3251_v25 = vsel %vm772_vm0, %v6343_v39, %v3183_v14 }
 0xadf   : > { %v4309_v27 = vpop.f32.mrb[52].mxu0 }
 0xae0   : > { %3224 = vrot.lane.b32.xlu0 %v3160_v49, %s4900_s30  ;;  %v3113_v42 = vpop.f32.mrb[53].mxu0 }
 0xae1   : > { %v4310_v24 = vpop.f32.mrb[54].mxu0 }
 0xae2   : > { %v3163_v47 = vpack.c.bf16 %v4310_v24, %v4309_v27  ;;  %v3116_v18 = vpop.f32.mrb[55].mxu0  ;;  %v6345_v24 = vld [vmem:[#allocation17_spill] sm:$0xff] }
 0xae3   : > { %v3162_v0 = vpack.c.bf16 %v3116_v18, %v3113_v42  ;;  %v6344_v42 = vld [vmem:[#allocation19_spill] sm:$0xff] }
 0xae4   : > { %3206 = vrot.lane.b32.xlu0 %v6329_v43, %s4901_s14  ;;  %v6348_v43 = vld [vmem:[#allocation16_spill] sm:$0xff] }
 0xae7   : > { %v4313_v44 = vpop.f32.mrb[56].mxu0 }
 0xae8   : > { %3228 = vrot.lane.b32.xlu0 %v3162_v0, %s4900_s30  ;;  %v3129_v46 = vpop.f32.mrb[57].mxu0  ;;  %v6347_v0 = vld [vmem:[#allocation18_spill] sm:$0xff] }
 0xae9   : > { %v4314_v5 = vpop.f32.mrb[58].mxu0 }
 0xaea   : > { %v3165_v19 = vpack.c.bf16 %v4314_v5, %v4313_v44  ;;  %v3132_v16 = vpop.f32.mrb[59].mxu0  ;;  %v6349_v44 = vpack.c.bf16 %v6347_v0, %v6348_v43 }
 0xaeb   : > { %v3164_v26 = vpack.c.bf16 %v3132_v16, %v3129_v46 }
 0xaec   : > { %3230 = vrot.lane.b32.xlu0 %v3163_v47, %s4900_s30  ;;  %3234 = vrot.lane.b32.xlu1 %v3165_v19, %s4900_s30  ;;  %v6346_v47 = vpack.c.bf16 %v6344_v42, %v6345_v24  ;;  %v3257_v46 = vsel %vm772_vm0, %v6349_v44, %v3187_v6 }
 0xaed   : > { %v3276_v16 = vsel %vm3264_vm1, %v3257_v46, %v3211_v29 }
 0xaee   : > { %v3254_v18 = vsel %vm772_vm0, %v6346_v47, %v3185_v56  ;;  %v6353_v56 = vld [vmem:[#allocation22_spill] sm:$0xff] }
 0xaef   : > { %v3274_v5 = vsel %vm3264_vm1, %v3254_v18, %v3209_v61  ;;  %v6355_v35 = vpack.c.bf16 %v6353_v56, %v6354_v62 }
 0xaf0   : > { %3232 = vrot.lane.b32.xlu1 %v3164_v26, %s4900_s30 }
 0xaf1   : > { %v3263_v17 = vsel %vm772_vm0, %v6355_v35, %v3191_v13 }
 0xaf4   : > { %3214 = vrot.lane.b32.xlu1 %v6331_v55, %s4901_s14  ;;  %s3519_s14 = sshll.u32 %s5280_s13, 4  ;;  %s4826_s13 = scalar_lea.vmem %s4825_s18, 16384  ;;  %s6196_s14 = int_to_ptr.vmem [resolvable:$true] %s3519_s14 }
 0xaf5   : > { %s4820_s16 = scalar_lea.vmem %s6196_s14, 8192  ;;  %p4827_p3 = scmp.lt.s32.totalorder %s6196_s14, %s4825_s18 }
 0xaf6   : > { %p4821_p0 = scmp.ne.s32.totalorder %s6196_s14, %s4820_s16  ;;  %p4828_p4 = scmp.lt.s32.totalorder %s4826_s13, %s4820_s16 }
 0xaf8   : > { %p4822_p1 = pnand %p4821_p0, %p4984_p5  ;;  %p4829_p6 = por %p4828_p4, %p4827_p3 }
 0xafa   : > { %p4823_p2 = pneg %p4822_p1 }
 0xafc   : > { %p4830_p7 = pnand %p4829_p6, %p4823_p2 }
 0xb13   : > { %v4317_v54 = vpop.f32.mrb[60].mxu0 }
 0xb14   : > { %v3145_v32 = vpop.f32.mrb[61].mxu0 }
 0xb15   : > { %v4318_v9 = vpop.f32.mrb[62].mxu0 }
 0xb16   : > { %v3167_v12 = vpack.c.bf16 %v4318_v9, %v4317_v54  ;;  %v3148_v53 = vpop.f32.mrb[63].mxu0  ;;  %v6350_v54 = vld [vmem:[#allocation23_spill] sm:$0xff] }
 0xb17   : > { %v3166_v57 = vpack.c.bf16 %v3148_v53, %v3145_v32  ;;  %v6351_v32 = vld [vmem:[#allocation21_spill] sm:$0xff] }
 0xb18   : > { %v6352_v9 = vpack.c.bf16 %v6350_v54, %v6351_v32 }
 0xb19   : > { %3236 = vrot.lane.b32.xlu1 %v3166_v57, %s4900_s30 }
 0xb1d   : > { %3238 = vrot.lane.b32.xlu1 %v3167_v12, %s4900_s30  ;;  %v3260_v12 = vsel %vm772_vm0, %v6352_v9, %v3189_v21  ;;  %s3918_s30 = sshll.u32 %s4890_s24, 13 }
 0xb1e   : > { %v3278_v53 = vsel %vm3264_vm1, %v3260_v12, %v3213_v23  ;;  %s6194_s12 = scalar_lea.hbm %s6277_s6, %s3918_s30 }
 0xb4e   : > { %v3227_v22 = vpop.permute.xlu0 %3226 }
 0xb4f   : > { %v3286_v3 = vsel %vm3281_vm2, %v3268_v38, %v3227_v22 }
 0xb52   : > { %v3225_v58 = vpop.permute.xlu0 %3224 }
 0xb53   : > { %v3283_v11 = vsel %vm3281_vm2, %v3266_v8, %v3225_v58 }
 0xb54   : > { %4335 = vmatprep.mubr.bf16.mxu0 %v3283_v11 }
 0xb55   : > { %4336 = vmatmul.mubr.bf16.vlgmr.msra.gmra.mrb[64].mxu0 %v3286_v3 }
 0xb56   : > { %v3207_v41 = vpop.permute.xlu0 %3206 }
 0xb57   : > { %v3272_v60 = vsel %vm3264_vm1, %v3251_v25, %v3207_v41 }
 0xb5a   : > { %v3229_v40 = vpop.permute.xlu0 %3228 }
 0xb5b   : > { %v3289_v20 = vsel %vm3281_vm2, %v3270_v31, %v3229_v40 }
 0xb5c   : > { %4339 = vmatprep.mubr.bf16.mxu0 %v3289_v20 }
 0xb5e   : > { %v3231_v4 = vpop.permute.xlu0 %3230  ;;  %v3235_v49 = vpop.permute.xlu1 %3234 }
 0xb5f   : > { %v3292_v27 = vsel %vm3281_vm2, %v3272_v60, %v3231_v4  ;;  %v3298_v33 = vsel %vm3281_vm2, %v3276_v16, %v3235_v49 }
 0xb60   : > { %4340 = vmatmul.mubr.bf16.gmra.mrb[68].mxu0 %v3292_v27 }
 0xb62   : > { %v3233_v19 = vpop.permute.xlu1 %3232 }
 0xb63   : > { %v3295_v26 = vsel %vm3281_vm2, %v3274_v5, %v3233_v19 }
 0xb64   : > { %4343 = vmatprep.mubr.bf16.mxu1 %v3295_v26 }
 0xb65   : > { %4344 = vmatmul.mubr.bf16.vlgmr.msra.gmra.mrb[64].mxu1 %v3298_v33 }
 0xb66   : > { %v3215_v55 = vpop.permute.xlu1 %3214 }
 0xb67   : > { %v3280_v6 = vsel %vm3264_vm1, %v3263_v17, %v3215_v55 }
 0xb8b   : > { %v3237_v57 = vpop.permute.xlu1 %3236 }
 0xb8c   : > { %v3301_v48 = vsel %vm3281_vm2, %v3278_v53, %v3237_v57 }
 0xb8d   : > { %4347 = vmatprep.mubr.bf16.mxu1 %v3301_v48 }
 0xb8f   : > { %v3239_v15 = vpop.permute.xlu1 %3238 }
 0xb90   : > { %v3304_v61 = vsel %vm3281_vm2, %v3280_v6, %v3239_v15 }
 0xb91   : > { %4348 = vmatmul.mubr.bf16.gmra.mrb[68].mxu1 %v3304_v61 }
 0xb92   : > { %4833 = shalt.err (!%p4830_p7)
}
 0xb93   : > { %s4834_s7 = scalar_lea.hbm %s6194_s12, 8192  ;;  %s4838_s30 = scalar_lea.hbm %s6277_s6, 16384 }
 0xb94   : > { %p4835_p8 = scmp.ne.s32.totalorder %s6194_s12, %s4834_s7  ;;  %p4839_p13 = scmp.lt.u32.totalorder %s6194_s12, %s6277_s6 }
 0xb95   : > { %p4840_p0 = scmp.lt.u32.totalorder %s4838_s30, %s4834_s7  ;;  %p4842_p2 = scmp.lt.u32.totalorder %s4834_s7, %s6194_s12 }
 0xb96   : > { %p4836_p11 = pnand %p4835_p8, %p4984_p5 }
 0xb97   : > { %p4841_p1 = por %p4840_p0, %p4839_p13 }
 0xb98   : > { %p4837_p12 = pneg %p4836_p11 }
 0xb99   : > { %p4843_p3 = por %p4842_p2, %p4841_p1 }
 0xb9b   : > { %p4844_p4 = pnand %p4843_p3, %p4837_p12 }
 0xb9d   : > { %4847 = shalt.err (!%p4844_p4)
}
 0xb9e   : > { %s4904_s16 = smov 128   ;;  %s4905_s17 = smov 8   ;;  %v3903_v14 = vld [vmem:[%s6275_s4] ss:$0 sm:$0xff] }
 0xb9f   : > { %4400 = dma.vmem_to_hbm [thread:$0]  (%p4984_p5), %s6196_s14, 8192, %s6194_s12, %s3500_s15, %s4904_s16, %s4904_s16, %s4905_s17  }
 0xba0   : > { %p633_p6 = scmp.lt.s32.totalorder %s4890_s24, 1 }
 0xba2   : > { %s6364_s24 = smov (!%p633_p6, %s4890_s24), 1 }
 0xba3   : > { %s3917_s18 = sshll.u32 %s6364_s24, 7 }
 0xba4   : > { %s6230_s30 = scalar_lea.vmem %s6276_s5, %s3917_s18 }
 0xc28   : > { %v4337_v29 = vpop.f32.mrb[64].mxu0 }
 0xc29   : > { %v3420_v52 = vadd.f32 %v4337_v29, %v3903_v14  ;;  %v3411_v21 = vpop.f32.mrb[65].mxu0 }
 0xc2a   : > { %v3412_v22 = vadd.f32 %v3903_v14, %v3411_v21  ;;  %v4338_v2 = vpop.f32.mrb[66].mxu0 }
 0xc2b   : > { %3476 = vst [vmem:[%s6230_s30 + $0x10] sm:$0xff] %v3420_v52  ;;  %v3423_v30 = vadd.f32 %v4338_v2, %v3903_v14  ;;  %v3414_v7 = vpop.f32.mrb[67].mxu0 }
 0xc2c   : > { %3474 = vst [vmem:[%s6230_s30] sm:$0xff] %v3412_v22  ;;  %v3415_v51 = vadd.f32 %v3903_v14, %v3414_v7 }
 0xc2d   : > { %3477 = vst [vmem:[%s6230_s30 + $0x18] sm:$0xff] %v3423_v30 }
 0xc2e   : > { %3475 = vst [vmem:[%s6230_s30 + $0x8] sm:$0xff] %v3415_v51 }
 0xc33   : > { %v4341_v37 = vpop.f32.mrb[68].mxu0 }
 0xc34   : > { %v3436_v36 = vadd.f32 %v4341_v37, %v3903_v14  ;;  %v3427_v34 = vpop.f32.mrb[69].mxu0 }
 0xc35   : > { %v3428_v10 = vadd.f32 %v3903_v14, %v3427_v34  ;;  %v4342_v8 = vpop.f32.mrb[70].mxu0 }
 0xc36   : > { %3480 = vst [vmem:[%s6230_s30 + $0x30] sm:$0xff] %v3436_v36  ;;  %v3439_v58 = vadd.f32 %v4342_v8, %v3903_v14  ;;  %v3430_v38 = vpop.f32.mrb[71].mxu0 }
 0xc37   : > { %3478 = vst [vmem:[%s6230_s30 + $0x20] sm:$0xff] %v3428_v10  ;;  %v3431_v11 = vadd.f32 %v3903_v14, %v3430_v38 }
 0xc38   : > { %3481 = vst [vmem:[%s6230_s30 + $0x38] sm:$0xff] %v3439_v58  ;;  %v4345_v13 = vpop.f32.mrb[64].mxu1 }
 0xc39   : > { %3479 = vst [vmem:[%s6230_s30 + $0x28] sm:$0xff] %v3431_v11  ;;  %v3452_v3 = vadd.f32 %v4345_v13, %v3903_v14  ;;  %v3443_v41 = vpop.f32.mrb[65].mxu1 }
 0xc3a   : > { %v3444_v28 = vadd.f32 %v3903_v14, %v3443_v41  ;;  %v4346_v59 = vpop.f32.mrb[66].mxu1 }
 0xc3b   : > { %3484 = vst [vmem:[%s6230_s30 + $0x50] sm:$0xff] %v3452_v3  ;;  %v3455_v50 = vadd.f32 %v4346_v59, %v3903_v14  ;;  %v3446_v45 = vpop.f32.mrb[67].mxu1 }
 0xc3c   : > { %3482 = vst [vmem:[%s6230_s30 + $0x40] sm:$0xff] %v3444_v28  ;;  %v3447_v23 = vadd.f32 %v3903_v14, %v3446_v45 }
 0xc3d   : > { %3485 = vst [vmem:[%s6230_s30 + $0x58] sm:$0xff] %v3455_v50 }
 0xc3e   : > { %3483 = vst [vmem:[%s6230_s30 + $0x48] sm:$0xff] %v3447_v23 }
 0xc64   : > { %v4349_v31 = vpop.f32.mrb[68].mxu1 }
 0xc65   : > { %v3468_v40 = vadd.f32 %v4349_v31, %v3903_v14  ;;  %v3459_v20 = vpop.f32.mrb[69].mxu1 }
 0xc66   : > { %v3460_v1 = vadd.f32 %v3903_v14, %v3459_v20  ;;  %v4350_v63 = vpop.f32.mrb[70].mxu1 }
 0xc67   : > { %3488 = vst [vmem:[%s6230_s30 + $0x70] sm:$0xff] %v3468_v40  ;;  %v3471_v39 = vadd.f32 %v4350_v63, %v3903_v14  ;;  %v3462_v25 = vpop.f32.mrb[71].mxu1 }
 0xc68   : > { %3486 = vst [vmem:[%s6230_s30 + $0x60] sm:$0xff] %v3460_v1  ;;  %v3463_v60 = vadd.f32 %v3903_v14, %v3462_v25 }
 0xc69   : > { %3489 = vst [vmem:[%s6230_s30 + $0x78] sm:$0xff] %v3471_v39 }
 0xc6a   : > { %3487 = vst [vmem:[%s6230_s30 + $0x68] sm:$0xff] %v3463_v60 }
 0xc6b PF: > { %s3546_s24 = sand.u32 1, %s4878_s21   ;;  %p4403_p5 = pnand %p3681_p10, %p4995_p9 }
 0xc6c   : > { %s3547_s8 = scalar_lea.sflag [#allocation6], %s3546_s24 }
 0xc6d   : > { %4873 = dma.done.wait (!%p4403_p5), %s3547_s8, 8192  }
 0xc6e   : > { %4875 = vsyncadd (!%p4403_p5), %s3547_s8, 4294959104  ;;  %s20_s26 = sadd.s32 1, %s4898_s26   ;;  %s6356_s21 = smov %s4882_s22 }
 0xc6f   : > { %p17_p7 = scmp.ge.s32.totalorder %s20_s26, 4   ;;  %s6357_s22 = smov %s4886_s23 }
 0xc70   : > { %s6358_s23 = smov %s4993_s10  ;;  %s6359_s24 = smov %s4894_s25 }
 0xc71   : > { %s6360_s25 = smov %s6362_s29  ;;  %19 = sbr.rel (!%p17_p7) target bundleno = 4 (0x4), region = 234 }
 0xc78   :  { %3552 = vsyncpa [#allocation6], 1 }
 0xc79   :  { %3554 = vsyncpa [#allocation6 + $0x1], 1 }

</bundles_post_ra>
